<compile_context>
chip_gen: v7x
topology: tpu7x:2x2x1
jax: 0.10.0
libtpu: 0.0.40
codegen_flags: <defaults>
</compile_context>

<pallas_src>
import functools

import jax
import jax.numpy as jnp
from jax.experimental import pallas as pl
from jax.experimental.pallas import tpu as pltpu

_BB = 8  # batch rows per grid step (one full sublane tile)


# ----------------------------------------------------------------------------
# Fused kernel: encode_x + e_rnn/encode_y + e-head + decoder + p-head
# ----------------------------------------------------------------------------
def fused_actvae_kernel(
    T_p, T_f, horizon,
    # data (one batch block, sequences flattened time-major: row = t*B + b)
    x_ref, y_ref, act_ref, fn_ref,
    # x_rnn fwd/bwd (0.5 folded into i/f/o gate columns)
    wxf_ih_ref, wxb_ih_ref, bxf_ref, bxb_ref, wxf_hh_ref, wxb_hh_ref,
    # e_rnn
    we_ih_ref, be_ref, we_hh_ref,
    # p_act_mlp
    wa_ref, ba_ref,
    # e_mlp (BN folded) + e head ([e_mu | e_logvar])
    we1_ref, be1_ref, we2_ref, be2_ref, weh_ref, beh_ref,
    # p_mlp (BN folded) + p head ([p_mu | p_logvar])
    wp1_ref, bp1_ref, wp2_ref, bp2_ref, wph_ref, bph_ref,
    # d_rnn split (ctx / y_p / h rows; 0.5 folded) + d_out folded into gates
    wd_ctx_ref, wd_y_ref, wd_h_ref, bd_ref, w_my_ref, b_y_ref,
    # d_mlp + d_out
    wd1_ref, bd1_ref, wd2_ref, bd2_ref, wdo_ref, bdo_ref,
    # outputs
    y_out_ref, e_out_ref, p_out_ref,
):
    f32 = jnp.float32
    B = x_ref.shape[1] // T_p
    ny = y_ref.shape[2]
    H2 = wxf_hh_ref.shape[0]          # hidden per direction of x_rnn (= nh // 2)
    nh = we_hh_ref.shape[0]
    nz = weh_ref.shape[1] // 2

    def dot(a, b):
        return jnp.dot(a, b, preferred_element_type=f32)

    def lstm_step(gates, c, H):
        # i/f/o gate columns of every weight/bias are pre-scaled by 0.5 in the
        # wrapper, so sigmoid(orig) == 0.5 * tanh(scaled) + 0.5 and the whole
        # [B, 4H] gate vector needs a single tanh (plus tanh(c_new)).
        t = jnp.tanh(gates)
        i = 0.5 * t[:, 0:H] + 0.5
        f = 0.5 * t[:, H:2 * H] + 0.5
        g = t[:, 2 * H:3 * H]
        o = 0.5 * t[:, 3 * H:4 * H] + 0.5
        c_new = f * c + i * g
        return o * jnp.tanh(c_new), c_new

    # ---- batched input projections (one MXU pass per chain, off the
    #      recurrent critical path) ------------------------------------------
    x2d = x_ref[0]                                     # [T_p*B, nx]
    y2d = y_ref[0]                                     # [T_f*B, ny]
    fn2d = fn_ref[0]                                   # [T_f*B, 1]
    gxf = dot(x2d, wxf_ih_ref[...]) + bxf_ref[...]     # [T_p*B, 4*H2]
    gxb = dot(x2d, wxb_ih_ref[...]) + bxb_ref[...]     # [T_p*B, 4*H2]
    gye = dot(y2d, we_ih_ref[...]) + be_ref[...]       # [T_f*B, 4*nh]

    wxf_hh = wxf_hh_ref[...]
    wxb_hh = wxb_hh_ref[...]
    we_hh = we_hh_ref[...]

    # ---- x fwd / x bwd / e_rnn recurrences fused in one unrolled loop -------
    z_h2 = jnp.zeros((B, H2), f32)
    z_nh = jnp.zeros((B, nh), f32)
    hf = cf = acc_f = z_h2
    hb = cb = acc_b = z_h2
    h_e = c_e = h_y = z_nh

    def x_step(t, hf, cf, acc_f, hb, cb, acc_b):
        gf = gxf[t * B:(t + 1) * B, :] + dot(hf, wxf_hh)
        hf, cf = lstm_step(gf, cf, H2)
        tb = T_p - 1 - t
        gb = gxb[tb * B:(tb + 1) * B, :] + dot(hb, wxb_hh)
        hb, cb = lstm_step(gb, cb, H2)
        return hf, cf, acc_f + hf, hb, cb, acc_b + hb

    def e_step(t, h_e, c_e, h_y):
        ge = gye[t * B:(t + 1) * B, :] + dot(h_e, we_hh)
        h_e, c_e = lstm_step(ge, c_e, nh)
        # fused fn one-hot selection -- hy_all is never materialized
        return h_e, c_e, h_y + fn2d[t * B:(t + 1) * B, :] * h_e

    # TODO(synk): for long sequences / horizons (>~32) switch these fully
    # unrolled Python loops to lax.fori_loop or an extra grid axis to bound
    # instruction memory.
    T_c = min(T_p, T_f)
    for t in range(T_c):
        hf, cf, acc_f, hb, cb, acc_b = x_step(t, hf, cf, acc_f, hb, cb, acc_b)
        h_e, c_e, h_y = e_step(t, h_e, c_e, h_y)
    for t in range(T_c, T_p):
        hf, cf, acc_f, hb, cb, acc_b = x_step(t, hf, cf, acc_f, hb, cb, acc_b)
    for t in range(T_c, T_f):
        h_e, c_e, h_y = e_step(t, h_e, c_e, h_y)

    inv_t = 1.0 / T_p
    h_x = jnp.concatenate([acc_f * inv_t, acc_b * inv_t], axis=1)   # [B, nh]

    # ---- e head (feeds z -> decoder); BN already folded into weights --------
    h_act = dot(act_ref[...], wa_ref[...]) + ba_ref[...]
    he_in = jnp.concatenate([h_x, h_y, h_act], axis=1)
    t1 = jnp.tanh(dot(he_in, we1_ref[...]) + be1_ref[...])
    t2 = jnp.tanh(dot(t1, we2_ref[...]) + be2_ref[...])
    e_out = dot(t2, weh_ref[...]) + beh_ref[...]
    e_out_ref[...] = e_out
    # eval-mode forward: reparameterize() collapses to z = mu
    # TODO(synk): training-mode reparameterization (randn noise) not implemented.
    z = e_out[:, 0:nz]

    # ---- decoder: hoisted ctx projection, d_out folded into the gate path ---
    x_last = x2d[(T_p - 1) * B:T_p * B, :]             # [B, ny]  (ny == nx)
    ctx = jnp.concatenate([h_x, h_act, z], axis=1)
    ctx_gates = dot(ctx, wd_ctx_ref[...]) + bd_ref[...]
    g_x = ctx_gates + dot(x_last, wd_y_ref[...])       # step-0 gates (h0 == 0)
    g_base = g_x + b_y_ref[...]                        # baseline for steps >= 1

    wd_h = wd_h_ref[...]
    w_my = w_my_ref[...]
    wd1 = wd1_ref[...]; bd1 = bd1_ref[...]
    wd2 = wd2_ref[...]; bd2 = bd2_ref[...]
    wdo = wdo_ref[...]; bdo = bdo_ref[...]

    def d_mlp(h):
        m = jnp.tanh(dot(h, wd1) + bd1)
        return jnp.tanh(dot(m, wd2) + bd2)

    ys = []
    # step 0 peeled: y_p = x_last, h0 = c0 = 0 (so the h @ wd_h term vanishes)
    h, c = lstm_step(g_x, z_nh, nh)
    m = d_mlp(h)
    ys.append(dot(m, wdo) + bdo + x_last)              # off the critical path

    for _ in range(1, horizon):
        # y_{i-1} @ wd_y == m_{i-1} @ (wdo @ wd_y) + (bdo + x_last) @ wd_y,
        # the second term already lives inside g_base.
        gates = g_base + dot(m, w_my) + dot(h, wd_h)
        h, c = lstm_step(gates, c, nh)
        m = d_mlp(h)
        ys.append(dot(m, wdo) + bdo + x_last)

    y_out_ref[...] = jnp.concatenate(ys, axis=1)       # one lane-dense store

    # ---- p head: feeds nothing in-kernel -> computed after the decoder ------
    hp_in = jnp.concatenate([h_x, h_act], axis=1)
    s1 = jnp.tanh(dot(hp_in, wp1_ref[...]) + bp1_ref[...])
    s2 = jnp.tanh(dot(s1, wp2_ref[...]) + bp2_ref[...])
    p_out_ref[...] = dot(s2, wph_ref[...]) + bph_ref[...]


# ----------------------------------------------------------------------------
# Wrapper-side weight folding (weight-only, exact up to round-off)
# ----------------------------------------------------------------------------
def _fold_ifo_half(lstm):
    """Scale the i/f/o gate columns by 0.5 (PyTorch gate order i,f,g,o)."""
    H = lstm['whh'].shape[0]
    s = jnp.concatenate([jnp.full((2 * H,), 0.5, jnp.float32),
                         jnp.ones((H,), jnp.float32),
                         jnp.full((H,), 0.5, jnp.float32)])
    return {'wih': lstm['wih'] * s, 'whh': lstm['whh'] * s, 'b': lstm['b'] * s}


def _fold_bn(lin, bn):
    """Fold an eval-mode BN affine into the preceding Linear."""
    return {'w': lin['w'] * bn['s'], 'b': lin['b'] * bn['s'] + bn['t']}


# ----------------------------------------------------------------------------
# JAX wrapper: pad batch to 8, block it over a parallel grid, single pallas_call
# ----------------------------------------------------------------------------
def act_vae_forward(p, x, y, act, fn, horizon):
    T_past, B, nx = x.shape
    T_fut, _, ny = y.shape
    nh = p['e_rnn']['whh'].shape[0]
    nz2 = p['e_head']['w'].shape[1]
    nz = nz2 // 2
    n_action = act.shape[1]
    assert nh % 2 == 0, "nh_rnn must be even for the bi-directional x_rnn"
    assert nx == ny, "decoder feeds x[-1] as y_p and adds it to d_out output"

    # ---- pad batch to a multiple of 8 so every vreg/MXU pass is full --------
    nb = (B + _BB - 1) // _BB
    B_pad = nb * _BB
    if B_pad != B:
        pb = B_pad - B
        x = jnp.pad(x, ((0, 0), (0, pb), (0, 0)))
        y = jnp.pad(y, ((0, 0), (0, pb), (0, 0)))
        act = jnp.pad(act, ((0, pb), (0, 0)))
        fn = jnp.pad(fn, ((0, pb), (0, 0)))

    # per-batch-block, time-major flattened sequences: [nb, T*BB, feat]
    def _blk_seq(s):
        T_, _, f = s.shape
        return (s.reshape(T_, nb, _BB, f).transpose(1, 0, 2, 3)
                 .reshape(nb, T_ * _BB, f))

    x_blk = _blk_seq(x.astype(jnp.float32))
    y_blk = _blk_seq(y.astype(jnp.float32))
    fn_blk = _blk_seq(fn.astype(jnp.float32).T[:, :, None])   # [nb, T_fut*BB, 1]
    act_p = act.astype(jnp.float32)

    # ---- weight folding ------------------------------------------------------
    xf = _fold_ifo_half(p['x_f'])
    xb = _fold_ifo_half(p['x_b'])
    er = _fold_ifo_half(p['e_rnn'])
    dr = _fold_ifo_half(p['d_rnn'])
    e1 = _fold_bn(p['e1'], p['e1_bn']); e2 = _fold_bn(p['e2'], p['e2_bn'])
    p1 = _fold_bn(p['p1'], p['p1_bn']); p2 = _fold_bn(p['p2'], p['p2_bn'])
    n_ctx = 2 * nh + nz                                  # rows of [h_x|h_act|z]
    wd_ctx, wd_y = dr['wih'][:n_ctx], dr['wih'][n_ctx:]
    w_my = p['d_out']['w'] @ wd_y                        # fold d_out into gates
    b_y = p['d_out']['b'] @ wd_y

    inputs = (
        x_blk, y_blk, act_p, fn_blk,
        xf['wih'], xb['wih'], xf['b'], xb['b'], xf['whh'], xb['whh'],
        er['wih'], er['b'], er['whh'],
        p['p_act']['w'], p['p_act']['b'],
        e1['w'], e1['b'], e2['w'], e2['b'], p['e_head']['w'], p['e_head']['b'],
        p1['w'], p1['b'], p2['w'], p2['b'], p['p_head']['w'], p['p_head']['b'],
        wd_ctx, wd_y, dr['whh'], dr['b'], w_my, b_y,
        p['d1']['w'], p['d1']['b'], p['d2']['w'], p['d2']['b'],
        p['d_out']['w'], p['d_out']['b'],
    )

    seq_x_spec = pl.BlockSpec((1, T_past * _BB, nx), lambda i: (i, 0, 0))
    seq_y_spec = pl.BlockSpec((1, T_fut * _BB, ny), lambda i: (i, 0, 0))
    act_spec = pl.BlockSpec((_BB, n_action), lambda i: (i, 0))
    fn_spec = pl.BlockSpec((1, T_fut * _BB, 1), lambda i: (i, 0, 0))
    weight_specs = [pl.BlockSpec(memory_space=pltpu.MemorySpace.VMEM)
                    for _ in range(len(inputs) - 4)]

    kernel = functools.partial(fused_actvae_kernel, T_past, T_fut, horizon)

    y_flat, e_out, p_out = pl.pallas_call(
        kernel,
        out_shape=(jax.ShapeDtypeStruct((B_pad, horizon * ny), jnp.float32),
                   jax.ShapeDtypeStruct((B_pad, nz2), jnp.float32),
                   jax.ShapeDtypeStruct((B_pad, nz2), jnp.float32)),
        grid=(nb,),
        in_specs=[seq_x_spec, seq_y_spec, act_spec, fn_spec] + weight_specs,
        out_specs=(pl.BlockSpec((_BB, horizon * ny), lambda i: (i, 0)),
                   pl.BlockSpec((_BB, nz2), lambda i: (i, 0)),
                   pl.BlockSpec((_BB, nz2), lambda i: (i, 0))),
        compiler_params=pltpu.CompilerParams(
            dimension_semantics=("parallel",)),
    )(*inputs)

    y_pred = y_flat[:B].reshape(B, horizon, ny).transpose(1, 0, 2)
    e_out, p_out = e_out[:B], p_out[:B]
    mu, logvar = e_out[:, :nz], e_out[:, nz:]
    pmu, plogvar = p_out[:, :nz], p_out[:, nz:]
    return y_pred, mu, logvar, pmu, plogvar


act_vae_forward_jit = jax.jit(act_vae_forward, static_argnums=(5,))


# ----------------------------------------------------------------------------
# Deterministic parameter construction (synthetic, no checkpoint loading)
# ----------------------------------------------------------------------------
def _dense_p(key, din, dout, scale=0.1):
    kw, kb = jax.random.split(key)
    return {'w': scale * jax.random.normal(kw, (din, dout), jnp.float32),
            'b': scale * jax.random.normal(kb, (1, dout), jnp.float32)}


def _lstm_p(key, din, h, scale=0.1):
    k1, k2, k3 = jax.random.split(key, 3)
    # bias_ih + bias_hh folded into a single bias
    return {'wih': scale * jax.random.normal(k1, (din, 4 * h), jnp.float32),
            'whh': scale * jax.random.normal(k2, (h, 4 * h), jnp.float32),
            'b':   scale * jax.random.normal(k3, (1, 4 * h), jnp.float32)}


def _bn_p(key, d, eps=1e-5):
    kg, kb, km, kv = jax.random.split(key, 4)
    gamma = 1.0 + 0.1 * jax.random.normal(kg, (1, d), jnp.float32)
    beta = 0.1 * jax.random.normal(kb, (1, d), jnp.float32)
    mean = 0.1 * jax.random.normal(km, (1, d), jnp.float32)
    var = 1.0 + 0.1 * jnp.abs(jax.random.normal(kv, (1, d), jnp.float32))
    scale = gamma / jnp.sqrt(var + eps)     # eval-mode BN as affine scale/shift
    shift = beta - mean * scale
    return {'s': scale, 't': shift}


def init_params(key, nx, ny, nz, nh, nh_mlp, n_action):
    keys = jax.random.split(key, 18)
    h2 = nh // 2
    m1, m2 = nh_mlp
    p = {}
    p['x_f'] = _lstm_p(keys[0], nx, h2)                 # x_rnn forward cell
    p['x_b'] = _lstm_p(keys[1], nx, h2)                 # x_rnn backward cell
    p['e_rnn'] = _lstm_p(keys[2], ny, nh)
    p['p_act'] = _dense_p(keys[3], n_action, nh)
    p['e1'] = _dense_p(keys[4], 3 * nh, m1); p['e1_bn'] = _bn_p(keys[5], m1)
    p['e2'] = _dense_p(keys[6], m1, m2);     p['e2_bn'] = _bn_p(keys[7], m2)
    p['e_head'] = _dense_p(keys[8], m2, 2 * nz)          # [e_mu | e_logvar]
    p['p1'] = _dense_p(keys[9], 2 * nh, m1); p['p1_bn'] = _bn_p(keys[10], m1)
    p['p2'] = _dense_p(keys[11], m1, m2);    p['p2_bn'] = _bn_p(keys[12], m2)
    p['p_head'] = _dense_p(keys[13], m2, 2 * nz)         # [p_mu | p_logvar]
    # d_rnn input rows ordered as [h_x | h_act | z | y_p]
    p['d_rnn'] = _lstm_p(keys[14], nh + nh + nz + ny, nh)
    p['d1'] = _dense_p(keys[15], nh, m1)
    p['d2'] = _dense_p(keys[16], m1, m2)
    p['d_out'] = _dense_p(keys[17], m2, ny)
    return p


# ----------------------------------------------------------------------------
# Pure-JAX reference (original un-folded math) for verification
# ----------------------------------------------------------------------------
def _ref_cell(xt, h, c, wih, whh, b):
    gates = xt @ wih + h @ whh + b
    H = h.shape[-1]
    i = jax.nn.sigmoid(gates[:, :H]); f = jax.nn.sigmoid(gates[:, H:2 * H])
    g = jnp.tanh(gates[:, 2 * H:3 * H]); o = jax.nn.sigmoid(gates[:, 3 * H:])
    c = f * c + i * g
    return o * jnp.tanh(c), c


def reference_forward(p, x, y, act, fn, horizon):
    T, B, _ = x.shape
    Tf = y.shape[0]
    nh = p['e_rnn']['whh'].shape[0]
    h2 = nh // 2
    nz = p['e_head']['w'].shape[1] // 2

    hf = cf = accf = jnp.zeros((B, h2))
    for t in range(T):
        hf, cf = _ref_cell(x[t], hf, cf, p['x_f']['wih'], p['x_f']['whh'], p['x_f']['b'])
        accf = accf + hf
    hb = cb = accb = jnp.zeros((B, h2))
    for t in reversed(range(T)):
        hb, cb = _ref_cell(x[t], hb, cb, p['x_b']['wih'], p['x_b']['whh'], p['x_b']['b'])
        accb = accb + hb
    h_x = jnp.concatenate([accf / T, accb / T], axis=1)

    he = ce = jnp.zeros((B, nh))
    outs = []
    for t in range(Tf):
        he, ce = _ref_cell(y[t], he, ce, p['e_rnn']['wih'], p['e_rnn']['whh'], p['e_rnn']['b'])
        outs.append(he)
    hy_all = jnp.stack(outs)
    h_y = jnp.einsum('tbh,bt->bh', hy_all, fn.astype(jnp.float32))
    h_act = act @ p['p_act']['w'] + p['p_act']['b']

    def mlp2(hin, l1, bn1, l2, bn2):
        h = jnp.tanh((hin @ l1['w'] + l1['b']) * bn1['s'] + bn1['t'])
        return jnp.tanh((h @ l2['w'] + l2['b']) * bn2['s'] + bn2['t'])

    he_ = mlp2(jnp.concatenate([h_x, h_y, h_act], axis=1), p['e1'], p['e1_bn'], p['e2'], p['e2_bn'])
    e_out = he_ @ p['e_head']['w'] + p['e_head']['b']
    hp_ = mlp2(jnp.concatenate([h_x, h_act], axis=1), p['p1'], p['p1_bn'], p['p2'], p['p2_bn'])
    p_out = hp_ @ p['p_head']['w'] + p['p_head']['b']
    mu, logvar = e_out[:, :nz], e_out[:, nz:]
    pmu, plogvar = p_out[:, :nz], p_out[:, nz:]
    z = mu

    h = c = jnp.zeros((B, nh))
    y_p = x[-1]
    ys = []
    for _ in range(horizon):
        rin = jnp.concatenate([h_x, h_act, z, y_p], axis=1)
        h, c = _ref_cell(rin, h, c, p['d_rnn']['wih'], p['d_rnn']['whh'], p['d_rnn']['b'])
        m = jnp.tanh(h @ p['d1']['w'] + p['d1']['b'])
        m = jnp.tanh(m @ p['d2']['w'] + p['d2']['b'])
        y_i = m @ p['d_out']['w'] + p['d_out']['b'] + x[-1]
        ys.append(y_i)
        y_p = y_i
    return jnp.stack(ys), mu, logvar, pmu, plogvar


# ----------------------------------------------------------------------------
if __name__ == "__main__":
    B, T_past, T_fut = 2, 8, 8
    nx = ny = 16
    nz = 8
    horizon = T_fut
    nh_rnn = 32
    nh_mlp = (48, 32)
    n_action = 15

    key = jax.random.PRNGKey(0)
    kp, kx, ky = jax.random.split(key, 3)
    params = init_params(kp, nx, ny, nz, nh_rnn, nh_mlp, n_action)

    x = jax.random.normal(kx, (T_past, B, nx), jnp.float32)
    y = jax.random.normal(ky, (T_fut, B, ny), jnp.float32)
    act = jax.nn.one_hot(jnp.array([3, 7]), n_action, dtype=jnp.float32)   # [B, n_action]
    # fn marks exactly one valid end frame per sequence (so h_y[fn == 1] is [B, nh])
    fn = jnp.zeros((B, T_fut), jnp.float32).at[0, 5].set(1.0).at[1, T_fut - 1].set(1.0)

    outs = act_vae_forward_jit(params, x, y, act, fn, horizon)
    outs = jax.block_until_ready(outs)
    y_pred, mu, logvar, pmu, plogvar = outs

    refs = reference_forward(params, x, y, act, fn, horizon)
    names = ("y_pred", "mu", "logvar", "pmu", "plogvar")
    for name, o, r in zip(names, outs, refs):
        assert o.shape == r.shape, (name, o.shape, r.shape)
        assert bool(jnp.all(jnp.isfinite(o))), name
        err = float(jnp.max(jnp.abs(o - r)))
        assert bool(jnp.allclose(o, r, atol=1e-2, rtol=1e-2)), (name, err)

    print("KERNEL_OK")
</pallas_src>

<mosaic_0001>
module attributes {stable_mosaic.version = 11 : i64} {
  func.func @fused_actvae_kernel(%arg0: i32, %arg1: memref<1x64x16xf32, #tpu.memory_space<vmem>>, %arg2: memref<1x64x16xf32, #tpu.memory_space<vmem>>, %arg3: memref<8x15xf32, #tpu.memory_space<vmem>>, %arg4: memref<1x64x1xf32, #tpu.memory_space<vmem>>, %arg5: memref<16x64xf32, #tpu.memory_space<vmem>>, %arg6: memref<16x64xf32, #tpu.memory_space<vmem>>, %arg7: memref<1x64xf32, #tpu.memory_space<vmem>>, %arg8: memref<1x64xf32, #tpu.memory_space<vmem>>, %arg9: memref<16x64xf32, #tpu.memory_space<vmem>>, %arg10: memref<16x64xf32, #tpu.memory_space<vmem>>, %arg11: memref<16x128xf32, #tpu.memory_space<vmem>>, %arg12: memref<1x128xf32, #tpu.memory_space<vmem>>, %arg13: memref<32x128xf32, #tpu.memory_space<vmem>>, %arg14: memref<15x32xf32, #tpu.memory_space<vmem>>, %arg15: memref<1x32xf32, #tpu.memory_space<vmem>>, %arg16: memref<96x48xf32, #tpu.memory_space<vmem>>, %arg17: memref<1x48xf32, #tpu.memory_space<vmem>>, %arg18: memref<48x32xf32, #tpu.memory_space<vmem>>, %arg19: memref<1x32xf32, #tpu.memory_space<vmem>>, %arg20: memref<32x16xf32, #tpu.memory_space<vmem>>, %arg21: memref<1x16xf32, #tpu.memory_space<vmem>>, %arg22: memref<64x48xf32, #tpu.memory_space<vmem>>, %arg23: memref<1x48xf32, #tpu.memory_space<vmem>>, %arg24: memref<48x32xf32, #tpu.memory_space<vmem>>, %arg25: memref<1x32xf32, #tpu.memory_space<vmem>>, %arg26: memref<32x16xf32, #tpu.memory_space<vmem>>, %arg27: memref<1x16xf32, #tpu.memory_space<vmem>>, %arg28: memref<72x128xf32, #tpu.memory_space<vmem>>, %arg29: memref<16x128xf32, #tpu.memory_space<vmem>>, %arg30: memref<32x128xf32, #tpu.memory_space<vmem>>, %arg31: memref<1x128xf32, #tpu.memory_space<vmem>>, %arg32: memref<32x128xf32, #tpu.memory_space<vmem>>, %arg33: memref<1x128xf32, #tpu.memory_space<vmem>>, %arg34: memref<32x48xf32, #tpu.memory_space<vmem>>, %arg35: memref<1x48xf32, #tpu.memory_space<vmem>>, %arg36: memref<48x32xf32, #tpu.memory_space<vmem>>, %arg37: memref<1x32xf32, #tpu.memory_space<vmem>>, %arg38: memref<32x16xf32, #tpu.memory_space<vmem>>, %arg39: memref<1x16xf32, #tpu.memory_space<vmem>>, %arg40: memref<8x128xf32, #tpu.memory_space<vmem>>, %arg41: memref<8x16xf32, #tpu.memory_space<vmem>>, %arg42: memref<8x16xf32, #tpu.memory_space<vmem>>) attributes {dimension_semantics = [#tpu.dimension_semantics<parallel>], iteration_bounds = array<i64: 1>, scalar_prefetch = 0 : i64, scratch_operands = 0 : i64, tpu.core_type = #tpu.core_type<tc>, window_params = [{transform_indices = @transform_0, window_bounds = array<i64: 1, 64, 16>}, {transform_indices = @transform_1, window_bounds = array<i64: 1, 64, 16>}, {transform_indices = @transform_2, window_bounds = array<i64: 8, 15>}, {transform_indices = @transform_3, window_bounds = array<i64: 1, 64, 1>}, {pipeline_mode = #tpu.pipeline_mode<synchronous>, transform_indices = @transform_4, window_bounds = array<i64: 16, 64>}, {pipeline_mode = #tpu.pipeline_mode<synchronous>, transform_indices = @transform_5, window_bounds = array<i64: 16, 64>}, {pipeline_mode = #tpu.pipeline_mode<synchronous>, transform_indices = @transform_6, window_bounds = array<i64: 1, 64>}, {pipeline_mode = #tpu.pipeline_mode<synchronous>, transform_indices = @transform_7, window_bounds = array<i64: 1, 64>}, {pipeline_mode = #tpu.pipeline_mode<synchronous>, transform_indices = @transform_8, window_bounds = array<i64: 16, 64>}, {pipeline_mode = #tpu.pipeline_mode<synchronous>, transform_indices = @transform_9, window_bounds = array<i64: 16, 64>}, {pipeline_mode = #tpu.pipeline_mode<synchronous>, transform_indices = @transform_10, window_bounds = array<i64: 16, 128>}, {pipeline_mode = #tpu.pipeline_mode<synchronous>, transform_indices = @transform_11, window_bounds = array<i64: 1, 128>}, {pipeline_mode = #tpu.pipeline_mode<synchronous>, transform_indices = @transform_12, window_bounds = array<i64: 32, 128>}, {pipeline_mode = #tpu.pipeline_mode<synchronous>, transform_indices = @transform_13, window_bounds = array<i64: 15, 32>}, {pipeline_mode = #tpu.pipeline_mode<synchronous>, transform_indices = @transform_14, window_bounds = array<i64: 1, 32>}, {pipeline_mode = #tpu.pipeline_mode<synchronous>, transform_indices = @transform_15, window_bounds = array<i64: 96, 48>}, {pipeline_mode = #tpu.pipeline_mode<synchronous>, transform_indices = @transform_16, window_bounds = array<i64: 1, 48>}, {pipeline_mode = #tpu.pipeline_mode<synchronous>, transform_indices = @transform_17, window_bounds = array<i64: 48, 32>}, {pipeline_mode = #tpu.pipeline_mode<synchronous>, transform_indices = @transform_18, window_bounds = array<i64: 1, 32>}, {pipeline_mode = #tpu.pipeline_mode<synchronous>, transform_indices = @transform_19, window_bounds = array<i64: 32, 16>}, {pipeline_mode = #tpu.pipeline_mode<synchronous>, transform_indices = @transform_20, window_bounds = array<i64: 1, 16>}, {pipeline_mode = #tpu.pipeline_mode<synchronous>, transform_indices = @transform_21, window_bounds = array<i64: 64, 48>}, {pipeline_mode = #tpu.pipeline_mode<synchronous>, transform_indices = @transform_22, window_bounds = array<i64: 1, 48>}, {pipeline_mode = #tpu.pipeline_mode<synchronous>, transform_indices = @transform_23, window_bounds = array<i64: 48, 32>}, {pipeline_mode = #tpu.pipeline_mode<synchronous>, transform_indices = @transform_24, window_bounds = array<i64: 1, 32>}, {pipeline_mode = #tpu.pipeline_mode<synchronous>, transform_indices = @transform_25, window_bounds = array<i64: 32, 16>}, {pipeline_mode = #tpu.pipeline_mode<synchronous>, transform_indices = @transform_26, window_bounds = array<i64: 1, 16>}, {pipeline_mode = #tpu.pipeline_mode<synchronous>, transform_indices = @transform_27, window_bounds = array<i64: 72, 128>}, {pipeline_mode = #tpu.pipeline_mode<synchronous>, transform_indices = @transform_28, window_bounds = array<i64: 16, 128>}, {pipeline_mode = #tpu.pipeline_mode<synchronous>, transform_indices = @transform_29, window_bounds = array<i64: 32, 128>}, {pipeline_mode = #tpu.pipeline_mode<synchronous>, transform_indices = @transform_30, window_bounds = array<i64: 1, 128>}, {pipeline_mode = #tpu.pipeline_mode<synchronous>, transform_indices = @transform_31, window_bounds = array<i64: 32, 128>}, {pipeline_mode = #tpu.pipeline_mode<synchronous>, transform_indices = @transform_32, window_bounds = array<i64: 1, 128>}, {pipeline_mode = #tpu.pipeline_mode<synchronous>, transform_indices = @transform_33, window_bounds = array<i64: 32, 48>}, {pipeline_mode = #tpu.pipeline_mode<synchronous>, transform_indices = @transform_34, window_bounds = array<i64: 1, 48>}, {pipeline_mode = #tpu.pipeline_mode<synchronous>, transform_indices = @transform_35, window_bounds = array<i64: 48, 32>}, {pipeline_mode = #tpu.pipeline_mode<synchronous>, transform_indices = @transform_36, window_bounds = array<i64: 1, 32>}, {pipeline_mode = #tpu.pipeline_mode<synchronous>, transform_indices = @transform_37, window_bounds = array<i64: 32, 16>}, {pipeline_mode = #tpu.pipeline_mode<synchronous>, transform_indices = @transform_38, window_bounds = array<i64: 1, 16>}, {transform_indices = @transform_39, window_bounds = array<i64: 8, 128>}, {transform_indices = @transform_40, window_bounds = array<i64: 8, 16>}, {transform_indices = @transform_41, window_bounds = array<i64: 8, 16>}]} {
    %c0 = arith.constant 0 : index
    %c0_0 = arith.constant 0 : index
    %c0_1 = arith.constant 0 : index
    %0 = vector.load %arg1[%c0, %c0_0, %c0_1] : memref<1x64x16xf32, #tpu.memory_space<vmem>>, vector<1x64x16xf32>
    %1 = vector.shape_cast %0 : vector<1x64x16xf32> to vector<64x16xf32>
    %c0_2 = arith.constant 0 : index
    %c0_3 = arith.constant 0 : index
    %c0_4 = arith.constant 0 : index
    %2 = vector.load %arg2[%c0_2, %c0_3, %c0_4] : memref<1x64x16xf32, #tpu.memory_space<vmem>>, vector<1x64x16xf32>
    %3 = vector.shape_cast %2 : vector<1x64x16xf32> to vector<64x16xf32>
    %c0_5 = arith.constant 0 : index
    %c0_6 = arith.constant 0 : index
    %c0_7 = arith.constant 0 : index
    %4 = vector.load %arg4[%c0_5, %c0_6, %c0_7] : memref<1x64x1xf32, #tpu.memory_space<vmem>>, vector<1x64x1xf32>
    %5 = vector.shape_cast %4 : vector<1x64x1xf32> to vector<64x1xf32>
    %c0_8 = arith.constant 0 : index
    %c0_9 = arith.constant 0 : index
    %6 = vector.load %arg5[%c0_8, %c0_9] : memref<16x64xf32, #tpu.memory_space<vmem>>, vector<16x64xf32>
    %cst = arith.constant dense<0.000000e+00> : vector<64x64xf32>
    %7 = tpu.matmul %1, %6, %cst {dimension_numbers = #tpu.dot_dimension_numbers<[1], [0], [0], [1], [0, 0, 1, 1], [], []>} : vector<64x16xf32>, vector<16x64xf32>, vector<64x64xf32> -> vector<64x64xf32>
    %c0_10 = arith.constant 0 : index
    %c0_11 = arith.constant 0 : index
    %8 = vector.load %arg7[%c0_10, %c0_11] : memref<1x64xf32, #tpu.memory_space<vmem>>, vector<1x64xf32>
    %9 = vector.broadcast %8 : vector<1x64xf32> to vector<64x64xf32>
    %10 = arith.addf %7, %9 : vector<64x64xf32>
    %c0_12 = arith.constant 0 : index
    %c0_13 = arith.constant 0 : index
    %11 = vector.load %arg6[%c0_12, %c0_13] : memref<16x64xf32, #tpu.memory_space<vmem>>, vector<16x64xf32>
    %cst_14 = arith.constant dense<0.000000e+00> : vector<64x64xf32>
    %12 = tpu.matmul %1, %11, %cst_14 {dimension_numbers = #tpu.dot_dimension_numbers<[1], [0], [0], [1], [0, 0, 1, 1], [], []>} : vector<64x16xf32>, vector<16x64xf32>, vector<64x64xf32> -> vector<64x64xf32>
    %c0_15 = arith.constant 0 : index
    %c0_16 = arith.constant 0 : index
    %13 = vector.load %arg8[%c0_15, %c0_16] : memref<1x64xf32, #tpu.memory_space<vmem>>, vector<1x64xf32>
    %14 = vector.broadcast %13 : vector<1x64xf32> to vector<64x64xf32>
    %15 = arith.addf %12, %14 : vector<64x64xf32>
    %c0_17 = arith.constant 0 : index
    %c0_18 = arith.constant 0 : index
    %16 = vector.load %arg11[%c0_17, %c0_18] : memref<16x128xf32, #tpu.memory_space<vmem>>, vector<16x128xf32>
    %cst_19 = arith.constant dense<0.000000e+00> : vector<64x128xf32>
    %17 = tpu.matmul %3, %16, %cst_19 {dimension_numbers = #tpu.dot_dimension_numbers<[1], [0], [0], [1], [0, 0, 1, 1], [], []>} : vector<64x16xf32>, vector<16x128xf32>, vector<64x128xf32> -> vector<64x128xf32>
    %c0_20 = arith.constant 0 : index
    %c0_21 = arith.constant 0 : index
    %18 = vector.load %arg12[%c0_20, %c0_21] : memref<1x128xf32, #tpu.memory_space<vmem>>, vector<1x128xf32>
    %19 = vector.broadcast %18 : vector<1x128xf32> to vector<64x128xf32>
    %20 = arith.addf %17, %19 : vector<64x128xf32>
    %c0_22 = arith.constant 0 : index
    %c0_23 = arith.constant 0 : index
    %21 = vector.load %arg9[%c0_22, %c0_23] : memref<16x64xf32, #tpu.memory_space<vmem>>, vector<16x64xf32>
    %c0_24 = arith.constant 0 : index
    %c0_25 = arith.constant 0 : index
    %22 = vector.load %arg10[%c0_24, %c0_25] : memref<16x64xf32, #tpu.memory_space<vmem>>, vector<16x64xf32>
    %c0_26 = arith.constant 0 : index
    %c0_27 = arith.constant 0 : index
    %23 = vector.load %arg13[%c0_26, %c0_27] : memref<32x128xf32, #tpu.memory_space<vmem>>, vector<32x128xf32>
    %cst_28 = arith.constant 0.000000e+00 : f32
    %24 = vector.broadcast %cst_28 : f32 to vector<8x16xf32>
    %cst_29 = arith.constant 0.000000e+00 : f32
    %25 = vector.broadcast %cst_29 : f32 to vector<8x32xf32>
    %26 = vector.extract_strided_slice %10 {offsets = [0, 0], sizes = [8, 64], strides = [1, 1]} : vector<64x64xf32> to vector<8x64xf32>
    %cst_30 = arith.constant dense<0.000000e+00> : vector<8x64xf32>
    %27 = tpu.matmul %24, %21, %cst_30 {dimension_numbers = #tpu.dot_dimension_numbers<[1], [0], [0], [1], [0, 0, 1, 1], [], []>} : vector<8x16xf32>, vector<16x64xf32>, vector<8x64xf32> -> vector<8x64xf32>
    %28 = arith.addf %26, %27 : vector<8x64xf32>
    %29 = math.tanh %28 : vector<8x64xf32>
    %30 = vector.extract_strided_slice %29 {offsets = [0, 0], sizes = [8, 16], strides = [1, 1]} : vector<8x64xf32> to vector<8x16xf32>
    %cst_31 = arith.constant 5.000000e-01 : f32
    %31 = vector.broadcast %cst_31 : f32 to vector<8x16xf32>
    %32 = arith.mulf %31, %30 : vector<8x16xf32>
    %cst_32 = arith.constant 5.000000e-01 : f32
    %33 = vector.broadcast %cst_32 : f32 to vector<8x16xf32>
    %34 = arith.addf %32, %33 : vector<8x16xf32>
    %35 = vector.extract_strided_slice %29 {offsets = [0, 16], sizes = [8, 16], strides = [1, 1]} : vector<8x64xf32> to vector<8x16xf32>
    %cst_33 = arith.constant 5.000000e-01 : f32
    %36 = vector.broadcast %cst_33 : f32 to vector<8x16xf32>
    %37 = arith.mulf %36, %35 : vector<8x16xf32>
    %cst_34 = arith.constant 5.000000e-01 : f32
    %38 = vector.broadcast %cst_34 : f32 to vector<8x16xf32>
    %39 = arith.addf %37, %38 : vector<8x16xf32>
    %40 = vector.extract_strided_slice %29 {offsets = [0, 32], sizes = [8, 16], strides = [1, 1]} : vector<8x64xf32> to vector<8x16xf32>
    %41 = vector.extract_strided_slice %29 {offsets = [0, 48], sizes = [8, 16], strides = [1, 1]} : vector<8x64xf32> to vector<8x16xf32>
    %cst_35 = arith.constant 5.000000e-01 : f32
    %42 = vector.broadcast %cst_35 : f32 to vector<8x16xf32>
    %43 = arith.mulf %42, %41 : vector<8x16xf32>
    %cst_36 = arith.constant 5.000000e-01 : f32
    %44 = vector.broadcast %cst_36 : f32 to vector<8x16xf32>
    %45 = arith.addf %43, %44 : vector<8x16xf32>
    %46 = arith.mulf %39, %24 : vector<8x16xf32>
    %47 = arith.mulf %34, %40 : vector<8x16xf32>
    %48 = arith.addf %46, %47 : vector<8x16xf32>
    %49 = math.tanh %48 : vector<8x16xf32>
    %50 = arith.mulf %45, %49 : vector<8x16xf32>
    %51 = vector.extract_strided_slice %15 {offsets = [56, 0], sizes = [8, 64], strides = [1, 1]} : vector<64x64xf32> to vector<8x64xf32>
    %cst_37 = arith.constant dense<0.000000e+00> : vector<8x64xf32>
    %52 = tpu.matmul %24, %22, %cst_37 {dimension_numbers = #tpu.dot_dimension_numbers<[1], [0], [0], [1], [0, 0, 1, 1], [], []>} : vector<8x16xf32>, vector<16x64xf32>, vector<8x64xf32> -> vector<8x64xf32>
    %53 = arith.addf %51, %52 : vector<8x64xf32>
    %54 = math.tanh %53 : vector<8x64xf32>
    %55 = vector.extract_strided_slice %54 {offsets = [0, 0], sizes = [8, 16], strides = [1, 1]} : vector<8x64xf32> to vector<8x16xf32>
    %cst_38 = arith.constant 5.000000e-01 : f32
    %56 = vector.broadcast %cst_38 : f32 to vector<8x16xf32>
    %57 = arith.mulf %56, %55 : vector<8x16xf32>
    %cst_39 = arith.constant 5.000000e-01 : f32
    %58 = vector.broadcast %cst_39 : f32 to vector<8x16xf32>
    %59 = arith.addf %57, %58 : vector<8x16xf32>
    %60 = vector.extract_strided_slice %54 {offsets = [0, 16], sizes = [8, 16], strides = [1, 1]} : vector<8x64xf32> to vector<8x16xf32>
    %cst_40 = arith.constant 5.000000e-01 : f32
    %61 = vector.broadcast %cst_40 : f32 to vector<8x16xf32>
    %62 = arith.mulf %61, %60 : vector<8x16xf32>
    %cst_41 = arith.constant 5.000000e-01 : f32
    %63 = vector.broadcast %cst_41 : f32 to vector<8x16xf32>
    %64 = arith.addf %62, %63 : vector<8x16xf32>
    %65 = vector.extract_strided_slice %54 {offsets = [0, 32], sizes = [8, 16], strides = [1, 1]} : vector<8x64xf32> to vector<8x16xf32>
    %66 = vector.extract_strided_slice %54 {offsets = [0, 48], sizes = [8, 16], strides = [1, 1]} : vector<8x64xf32> to vector<8x16xf32>
    %cst_42 = arith.constant 5.000000e-01 : f32
    %67 = vector.broadcast %cst_42 : f32 to vector<8x16xf32>
    %68 = arith.mulf %67, %66 : vector<8x16xf32>
    %cst_43 = arith.constant 5.000000e-01 : f32
    %69 = vector.broadcast %cst_43 : f32 to vector<8x16xf32>
    %70 = arith.addf %68, %69 : vector<8x16xf32>
    %71 = arith.mulf %64, %24 : vector<8x16xf32>
    %72 = arith.mulf %59, %65 : vector<8x16xf32>
    %73 = arith.addf %71, %72 : vector<8x16xf32>
    %74 = math.tanh %73 : vector<8x16xf32>
    %75 = arith.mulf %70, %74 : vector<8x16xf32>
    %76 = arith.addf %24, %50 : vector<8x16xf32>
    %77 = arith.addf %24, %75 : vector<8x16xf32>
    %78 = vector.extract_strided_slice %20 {offsets = [0, 0], sizes = [8, 128], strides = [1, 1]} : vector<64x128xf32> to vector<8x128xf32>
    %cst_44 = arith.constant dense<0.000000e+00> : vector<8x128xf32>
    %79 = tpu.matmul %25, %23, %cst_44 {dimension_numbers = #tpu.dot_dimension_numbers<[1], [0], [0], [1], [0, 0, 1, 1], [], []>} : vector<8x32xf32>, vector<32x128xf32>, vector<8x128xf32> -> vector<8x128xf32>
    %80 = arith.addf %78, %79 : vector<8x128xf32>
    %81 = math.tanh %80 : vector<8x128xf32>
    %82 = vector.extract_strided_slice %81 {offsets = [0, 0], sizes = [8, 32], strides = [1, 1]} : vector<8x128xf32> to vector<8x32xf32>
    %cst_45 = arith.constant 5.000000e-01 : f32
    %83 = vector.broadcast %cst_45 : f32 to vector<8x32xf32>
    %84 = arith.mulf %83, %82 : vector<8x32xf32>
    %cst_46 = arith.constant 5.000000e-01 : f32
    %85 = vector.broadcast %cst_46 : f32 to vector<8x32xf32>
    %86 = arith.addf %84, %85 : vector<8x32xf32>
    %87 = vector.extract_strided_slice %81 {offsets = [0, 32], sizes = [8, 32], strides = [1, 1]} : vector<8x128xf32> to vector<8x32xf32>
    %cst_47 = arith.constant 5.000000e-01 : f32
    %88 = vector.broadcast %cst_47 : f32 to vector<8x32xf32>
    %89 = arith.mulf %88, %87 : vector<8x32xf32>
    %cst_48 = arith.constant 5.000000e-01 : f32
    %90 = vector.broadcast %cst_48 : f32 to vector<8x32xf32>
    %91 = arith.addf %89, %90 : vector<8x32xf32>
    %92 = vector.extract_strided_slice %81 {offsets = [0, 64], sizes = [8, 32], strides = [1, 1]} : vector<8x128xf32> to vector<8x32xf32>
    %93 = vector.extract_strided_slice %81 {offsets = [0, 96], sizes = [8, 32], strides = [1, 1]} : vector<8x128xf32> to vector<8x32xf32>
    %cst_49 = arith.constant 5.000000e-01 : f32
    %94 = vector.broadcast %cst_49 : f32 to vector<8x32xf32>
    %95 = arith.mulf %94, %93 : vector<8x32xf32>
    %cst_50 = arith.constant 5.000000e-01 : f32
    %96 = vector.broadcast %cst_50 : f32 to vector<8x32xf32>
    %97 = arith.addf %95, %96 : vector<8x32xf32>
    %98 = arith.mulf %91, %25 : vector<8x32xf32>
    %99 = arith.mulf %86, %92 : vector<8x32xf32>
    %100 = arith.addf %98, %99 : vector<8x32xf32>
    %101 = math.tanh %100 : vector<8x32xf32>
    %102 = arith.mulf %97, %101 : vector<8x32xf32>
    %103 = vector.extract_strided_slice %5 {offsets = [0, 0], sizes = [8, 1], strides = [1, 1]} : vector<64x1xf32> to vector<8x1xf32>
    %104 = vector.broadcast %103 : vector<8x1xf32> to vector<8x32xf32>
    %105 = arith.mulf %104, %102 : vector<8x32xf32>
    %106 = arith.addf %25, %105 : vector<8x32xf32>
    %107 = vector.extract_strided_slice %10 {offsets = [8, 0], sizes = [8, 64], strides = [1, 1]} : vector<64x64xf32> to vector<8x64xf32>
    %cst_51 = arith.constant dense<0.000000e+00> : vector<8x64xf32>
    %108 = tpu.matmul %50, %21, %cst_51 {dimension_numbers = #tpu.dot_dimension_numbers<[1], [0], [0], [1], [0, 0, 1, 1], [], []>} : vector<8x16xf32>, vector<16x64xf32>, vector<8x64xf32> -> vector<8x64xf32>
    %109 = arith.addf %107, %108 : vector<8x64xf32>
    %110 = math.tanh %109 : vector<8x64xf32>
    %111 = vector.extract_strided_slice %110 {offsets = [0, 0], sizes = [8, 16], strides = [1, 1]} : vector<8x64xf32> to vector<8x16xf32>
    %cst_52 = arith.constant 5.000000e-01 : f32
    %112 = vector.broadcast %cst_52 : f32 to vector<8x16xf32>
    %113 = arith.mulf %112, %111 : vector<8x16xf32>
    %cst_53 = arith.constant 5.000000e-01 : f32
    %114 = vector.broadcast %cst_53 : f32 to vector<8x16xf32>
    %115 = arith.addf %113, %114 : vector<8x16xf32>
    %116 = vector.extract_strided_slice %110 {offsets = [0, 16], sizes = [8, 16], strides = [1, 1]} : vector<8x64xf32> to vector<8x16xf32>
    %cst_54 = arith.constant 5.000000e-01 : f32
    %117 = vector.broadcast %cst_54 : f32 to vector<8x16xf32>
    %118 = arith.mulf %117, %116 : vector<8x16xf32>
    %cst_55 = arith.constant 5.000000e-01 : f32
    %119 = vector.broadcast %cst_55 : f32 to vector<8x16xf32>
    %120 = arith.addf %118, %119 : vector<8x16xf32>
    %121 = vector.extract_strided_slice %110 {offsets = [0, 32], sizes = [8, 16], strides = [1, 1]} : vector<8x64xf32> to vector<8x16xf32>
    %122 = vector.extract_strided_slice %110 {offsets = [0, 48], sizes = [8, 16], strides = [1, 1]} : vector<8x64xf32> to vector<8x16xf32>
    %cst_56 = arith.constant 5.000000e-01 : f32
    %123 = vector.broadcast %cst_56 : f32 to vector<8x16xf32>
    %124 = arith.mulf %123, %122 : vector<8x16xf32>
    %cst_57 = arith.constant 5.000000e-01 : f32
    %125 = vector.broadcast %cst_57 : f32 to vector<8x16xf32>
    %126 = arith.addf %124, %125 : vector<8x16xf32>
    %127 = arith.mulf %120, %48 : vector<8x16xf32>
    %128 = arith.mulf %115, %121 : vector<8x16xf32>
    %129 = arith.addf %127, %128 : vector<8x16xf32>
    %130 = math.tanh %129 : vector<8x16xf32>
    %131 = arith.mulf %126, %130 : vector<8x16xf32>
    %132 = vector.extract_strided_slice %15 {offsets = [48, 0], sizes = [8, 64], strides = [1, 1]} : vector<64x64xf32> to vector<8x64xf32>
    %cst_58 = arith.constant dense<0.000000e+00> : vector<8x64xf32>
    %133 = tpu.matmul %75, %22, %cst_58 {dimension_numbers = #tpu.dot_dimension_numbers<[1], [0], [0], [1], [0, 0, 1, 1], [], []>} : vector<8x16xf32>, vector<16x64xf32>, vector<8x64xf32> -> vector<8x64xf32>
    %134 = arith.addf %132, %133 : vector<8x64xf32>
    %135 = math.tanh %134 : vector<8x64xf32>
    %136 = vector.extract_strided_slice %135 {offsets = [0, 0], sizes = [8, 16], strides = [1, 1]} : vector<8x64xf32> to vector<8x16xf32>
    %cst_59 = arith.constant 5.000000e-01 : f32
    %137 = vector.broadcast %cst_59 : f32 to vector<8x16xf32>
    %138 = arith.mulf %137, %136 : vector<8x16xf32>
    %cst_60 = arith.constant 5.000000e-01 : f32
    %139 = vector.broadcast %cst_60 : f32 to vector<8x16xf32>
    %140 = arith.addf %138, %139 : vector<8x16xf32>
    %141 = vector.extract_strided_slice %135 {offsets = [0, 16], sizes = [8, 16], strides = [1, 1]} : vector<8x64xf32> to vector<8x16xf32>
    %cst_61 = arith.constant 5.000000e-01 : f32
    %142 = vector.broadcast %cst_61 : f32 to vector<8x16xf32>
    %143 = arith.mulf %142, %141 : vector<8x16xf32>
    %cst_62 = arith.constant 5.000000e-01 : f32
    %144 = vector.broadcast %cst_62 : f32 to vector<8x16xf32>
    %145 = arith.addf %143, %144 : vector<8x16xf32>
    %146 = vector.extract_strided_slice %135 {offsets = [0, 32], sizes = [8, 16], strides = [1, 1]} : vector<8x64xf32> to vector<8x16xf32>
    %147 = vector.extract_strided_slice %135 {offsets = [0, 48], sizes = [8, 16], strides = [1, 1]} : vector<8x64xf32> to vector<8x16xf32>
    %cst_63 = arith.constant 5.000000e-01 : f32
    %148 = vector.broadcast %cst_63 : f32 to vector<8x16xf32>
    %149 = arith.mulf %148, %147 : vector<8x16xf32>
    %cst_64 = arith.constant 5.000000e-01 : f32
    %150 = vector.broadcast %cst_64 : f32 to vector<8x16xf32>
    %151 = arith.addf %149, %150 : vector<8x16xf32>
    %152 = arith.mulf %145, %73 : vector<8x16xf32>
    %153 = arith.mulf %140, %146 : vector<8x16xf32>
    %154 = arith.addf %152, %153 : vector<8x16xf32>
    %155 = math.tanh %154 : vector<8x16xf32>
    %156 = arith.mulf %151, %155 : vector<8x16xf32>
    %157 = arith.addf %76, %131 : vector<8x16xf32>
    %158 = arith.addf %77, %156 : vector<8x16xf32>
    %159 = vector.extract_strided_slice %20 {offsets = [8, 0], sizes = [8, 128], strides = [1, 1]} : vector<64x128xf32> to vector<8x128xf32>
    %cst_65 = arith.constant dense<0.000000e+00> : vector<8x128xf32>
    %160 = tpu.matmul %102, %23, %cst_65 {dimension_numbers = #tpu.dot_dimension_numbers<[1], [0], [0], [1], [0, 0, 1, 1], [], []>} : vector<8x32xf32>, vector<32x128xf32>, vector<8x128xf32> -> vector<8x128xf32>
    %161 = arith.addf %159, %160 : vector<8x128xf32>
    %162 = math.tanh %161 : vector<8x128xf32>
    %163 = vector.extract_strided_slice %162 {offsets = [0, 0], sizes = [8, 32], strides = [1, 1]} : vector<8x128xf32> to vector<8x32xf32>
    %cst_66 = arith.constant 5.000000e-01 : f32
    %164 = vector.broadcast %cst_66 : f32 to vector<8x32xf32>
    %165 = arith.mulf %164, %163 : vector<8x32xf32>
    %cst_67 = arith.constant 5.000000e-01 : f32
    %166 = vector.broadcast %cst_67 : f32 to vector<8x32xf32>
    %167 = arith.addf %165, %166 : vector<8x32xf32>
    %168 = vector.extract_strided_slice %162 {offsets = [0, 32], sizes = [8, 32], strides = [1, 1]} : vector<8x128xf32> to vector<8x32xf32>
    %cst_68 = arith.constant 5.000000e-01 : f32
    %169 = vector.broadcast %cst_68 : f32 to vector<8x32xf32>
    %170 = arith.mulf %169, %168 : vector<8x32xf32>
    %cst_69 = arith.constant 5.000000e-01 : f32
    %171 = vector.broadcast %cst_69 : f32 to vector<8x32xf32>
    %172 = arith.addf %170, %171 : vector<8x32xf32>
    %173 = vector.extract_strided_slice %162 {offsets = [0, 64], sizes = [8, 32], strides = [1, 1]} : vector<8x128xf32> to vector<8x32xf32>
    %174 = vector.extract_strided_slice %162 {offsets = [0, 96], sizes = [8, 32], strides = [1, 1]} : vector<8x128xf32> to vector<8x32xf32>
    %cst_70 = arith.constant 5.000000e-01 : f32
    %175 = vector.broadcast %cst_70 : f32 to vector<8x32xf32>
    %176 = arith.mulf %175, %174 : vector<8x32xf32>
    %cst_71 = arith.constant 5.000000e-01 : f32
    %177 = vector.broadcast %cst_71 : f32 to vector<8x32xf32>
    %178 = arith.addf %176, %177 : vector<8x32xf32>
    %179 = arith.mulf %172, %100 : vector<8x32xf32>
    %180 = arith.mulf %167, %173 : vector<8x32xf32>
    %181 = arith.addf %179, %180 : vector<8x32xf32>
    %182 = math.tanh %181 : vector<8x32xf32>
    %183 = arith.mulf %178, %182 : vector<8x32xf32>
    %184 = vector.extract_strided_slice %5 {offsets = [8, 0], sizes = [8, 1], strides = [1, 1]} : vector<64x1xf32> to vector<8x1xf32>
    %185 = vector.broadcast %184 : vector<8x1xf32> to vector<8x32xf32>
    %186 = arith.mulf %185, %183 : vector<8x32xf32>
    %187 = arith.addf %106, %186 : vector<8x32xf32>
    %188 = vector.extract_strided_slice %10 {offsets = [16, 0], sizes = [8, 64], strides = [1, 1]} : vector<64x64xf32> to vector<8x64xf32>
    %cst_72 = arith.constant dense<0.000000e+00> : vector<8x64xf32>
    %189 = tpu.matmul %131, %21, %cst_72 {dimension_numbers = #tpu.dot_dimension_numbers<[1], [0], [0], [1], [0, 0, 1, 1], [], []>} : vector<8x16xf32>, vector<16x64xf32>, vector<8x64xf32> -> vector<8x64xf32>
    %190 = arith.addf %188, %189 : vector<8x64xf32>
    %191 = math.tanh %190 : vector<8x64xf32>
    %192 = vector.extract_strided_slice %191 {offsets = [0, 0], sizes = [8, 16], strides = [1, 1]} : vector<8x64xf32> to vector<8x16xf32>
    %cst_73 = arith.constant 5.000000e-01 : f32
    %193 = vector.broadcast %cst_73 : f32 to vector<8x16xf32>
    %194 = arith.mulf %193, %192 : vector<8x16xf32>
    %cst_74 = arith.constant 5.000000e-01 : f32
    %195 = vector.broadcast %cst_74 : f32 to vector<8x16xf32>
    %196 = arith.addf %194, %195 : vector<8x16xf32>
    %197 = vector.extract_strided_slice %191 {offsets = [0, 16], sizes = [8, 16], strides = [1, 1]} : vector<8x64xf32> to vector<8x16xf32>
    %cst_75 = arith.constant 5.000000e-01 : f32
    %198 = vector.broadcast %cst_75 : f32 to vector<8x16xf32>
    %199 = arith.mulf %198, %197 : vector<8x16xf32>
    %cst_76 = arith.constant 5.000000e-01 : f32
    %200 = vector.broadcast %cst_76 : f32 to vector<8x16xf32>
    %201 = arith.addf %199, %200 : vector<8x16xf32>
    %202 = vector.extract_strided_slice %191 {offsets = [0, 32], sizes = [8, 16], strides = [1, 1]} : vector<8x64xf32> to vector<8x16xf32>
    %203 = vector.extract_strided_slice %191 {offsets = [0, 48], sizes = [8, 16], strides = [1, 1]} : vector<8x64xf32> to vector<8x16xf32>
    %cst_77 = arith.constant 5.000000e-01 : f32
    %204 = vector.broadcast %cst_77 : f32 to vector<8x16xf32>
    %205 = arith.mulf %204, %203 : vector<8x16xf32>
    %cst_78 = arith.constant 5.000000e-01 : f32
    %206 = vector.broadcast %cst_78 : f32 to vector<8x16xf32>
    %207 = arith.addf %205, %206 : vector<8x16xf32>
    %208 = arith.mulf %201, %129 : vector<8x16xf32>
    %209 = arith.mulf %196, %202 : vector<8x16xf32>
    %210 = arith.addf %208, %209 : vector<8x16xf32>
    %211 = math.tanh %210 : vector<8x16xf32>
    %212 = arith.mulf %207, %211 : vector<8x16xf32>
    %213 = vector.extract_strided_slice %15 {offsets = [40, 0], sizes = [8, 64], strides = [1, 1]} : vector<64x64xf32> to vector<8x64xf32>
    %cst_79 = arith.constant dense<0.000000e+00> : vector<8x64xf32>
    %214 = tpu.matmul %156, %22, %cst_79 {dimension_numbers = #tpu.dot_dimension_numbers<[1], [0], [0], [1], [0, 0, 1, 1], [], []>} : vector<8x16xf32>, vector<16x64xf32>, vector<8x64xf32> -> vector<8x64xf32>
    %215 = arith.addf %213, %214 : vector<8x64xf32>
    %216 = math.tanh %215 : vector<8x64xf32>
    %217 = vector.extract_strided_slice %216 {offsets = [0, 0], sizes = [8, 16], strides = [1, 1]} : vector<8x64xf32> to vector<8x16xf32>
    %cst_80 = arith.constant 5.000000e-01 : f32
    %218 = vector.broadcast %cst_80 : f32 to vector<8x16xf32>
    %219 = arith.mulf %218, %217 : vector<8x16xf32>
    %cst_81 = arith.constant 5.000000e-01 : f32
    %220 = vector.broadcast %cst_81 : f32 to vector<8x16xf32>
    %221 = arith.addf %219, %220 : vector<8x16xf32>
    %222 = vector.extract_strided_slice %216 {offsets = [0, 16], sizes = [8, 16], strides = [1, 1]} : vector<8x64xf32> to vector<8x16xf32>
    %cst_82 = arith.constant 5.000000e-01 : f32
    %223 = vector.broadcast %cst_82 : f32 to vector<8x16xf32>
    %224 = arith.mulf %223, %222 : vector<8x16xf32>
    %cst_83 = arith.constant 5.000000e-01 : f32
    %225 = vector.broadcast %cst_83 : f32 to vector<8x16xf32>
    %226 = arith.addf %224, %225 : vector<8x16xf32>
    %227 = vector.extract_strided_slice %216 {offsets = [0, 32], sizes = [8, 16], strides = [1, 1]} : vector<8x64xf32> to vector<8x16xf32>
    %228 = vector.extract_strided_slice %216 {offsets = [0, 48], sizes = [8, 16], strides = [1, 1]} : vector<8x64xf32> to vector<8x16xf32>
    %cst_84 = arith.constant 5.000000e-01 : f32
    %229 = vector.broadcast %cst_84 : f32 to vector<8x16xf32>
    %230 = arith.mulf %229, %228 : vector<8x16xf32>
    %cst_85 = arith.constant 5.000000e-01 : f32
    %231 = vector.broadcast %cst_85 : f32 to vector<8x16xf32>
    %232 = arith.addf %230, %231 : vector<8x16xf32>
    %233 = arith.mulf %226, %154 : vector<8x16xf32>
    %234 = arith.mulf %221, %227 : vector<8x16xf32>
    %235 = arith.addf %233, %234 : vector<8x16xf32>
    %236 = math.tanh %235 : vector<8x16xf32>
    %237 = arith.mulf %232, %236 : vector<8x16xf32>
    %238 = arith.addf %157, %212 : vector<8x16xf32>
    %239 = arith.addf %158, %237 : vector<8x16xf32>
    %240 = vector.extract_strided_slice %20 {offsets = [16, 0], sizes = [8, 128], strides = [1, 1]} : vector<64x128xf32> to vector<8x128xf32>
    %cst_86 = arith.constant dense<0.000000e+00> : vector<8x128xf32>
    %241 = tpu.matmul %183, %23, %cst_86 {dimension_numbers = #tpu.dot_dimension_numbers<[1], [0], [0], [1], [0, 0, 1, 1], [], []>} : vector<8x32xf32>, vector<32x128xf32>, vector<8x128xf32> -> vector<8x128xf32>
    %242 = arith.addf %240, %241 : vector<8x128xf32>
    %243 = math.tanh %242 : vector<8x128xf32>
    %244 = vector.extract_strided_slice %243 {offsets = [0, 0], sizes = [8, 32], strides = [1, 1]} : vector<8x128xf32> to vector<8x32xf32>
    %cst_87 = arith.constant 5.000000e-01 : f32
    %245 = vector.broadcast %cst_87 : f32 to vector<8x32xf32>
    %246 = arith.mulf %245, %244 : vector<8x32xf32>
    %cst_88 = arith.constant 5.000000e-01 : f32
    %247 = vector.broadcast %cst_88 : f32 to vector<8x32xf32>
    %248 = arith.addf %246, %247 : vector<8x32xf32>
    %249 = vector.extract_strided_slice %243 {offsets = [0, 32], sizes = [8, 32], strides = [1, 1]} : vector<8x128xf32> to vector<8x32xf32>
    %cst_89 = arith.constant 5.000000e-01 : f32
    %250 = vector.broadcast %cst_89 : f32 to vector<8x32xf32>
    %251 = arith.mulf %250, %249 : vector<8x32xf32>
    %cst_90 = arith.constant 5.000000e-01 : f32
    %252 = vector.broadcast %cst_90 : f32 to vector<8x32xf32>
    %253 = arith.addf %251, %252 : vector<8x32xf32>
    %254 = vector.extract_strided_slice %243 {offsets = [0, 64], sizes = [8, 32], strides = [1, 1]} : vector<8x128xf32> to vector<8x32xf32>
    %255 = vector.extract_strided_slice %243 {offsets = [0, 96], sizes = [8, 32], strides = [1, 1]} : vector<8x128xf32> to vector<8x32xf32>
    %cst_91 = arith.constant 5.000000e-01 : f32
    %256 = vector.broadcast %cst_91 : f32 to vector<8x32xf32>
    %257 = arith.mulf %256, %255 : vector<8x32xf32>
    %cst_92 = arith.constant 5.000000e-01 : f32
    %258 = vector.broadcast %cst_92 : f32 to vector<8x32xf32>
    %259 = arith.addf %257, %258 : vector<8x32xf32>
    %260 = arith.mulf %253, %181 : vector<8x32xf32>
    %261 = arith.mulf %248, %254 : vector<8x32xf32>
    %262 = arith.addf %260, %261 : vector<8x32xf32>
    %263 = math.tanh %262 : vector<8x32xf32>
    %264 = arith.mulf %259, %263 : vector<8x32xf32>
    %265 = vector.extract_strided_slice %5 {offsets = [16, 0], sizes = [8, 1], strides = [1, 1]} : vector<64x1xf32> to vector<8x1xf32>
    %266 = vector.broadcast %265 : vector<8x1xf32> to vector<8x32xf32>
    %267 = arith.mulf %266, %264 : vector<8x32xf32>
    %268 = arith.addf %187, %267 : vector<8x32xf32>
    %269 = vector.extract_strided_slice %10 {offsets = [24, 0], sizes = [8, 64], strides = [1, 1]} : vector<64x64xf32> to vector<8x64xf32>
    %cst_93 = arith.constant dense<0.000000e+00> : vector<8x64xf32>
    %270 = tpu.matmul %212, %21, %cst_93 {dimension_numbers = #tpu.dot_dimension_numbers<[1], [0], [0], [1], [0, 0, 1, 1], [], []>} : vector<8x16xf32>, vector<16x64xf32>, vector<8x64xf32> -> vector<8x64xf32>
    %271 = arith.addf %269, %270 : vector<8x64xf32>
    %272 = math.tanh %271 : vector<8x64xf32>
    %273 = vector.extract_strided_slice %272 {offsets = [0, 0], sizes = [8, 16], strides = [1, 1]} : vector<8x64xf32> to vector<8x16xf32>
    %cst_94 = arith.constant 5.000000e-01 : f32
    %274 = vector.broadcast %cst_94 : f32 to vector<8x16xf32>
    %275 = arith.mulf %274, %273 : vector<8x16xf32>
    %cst_95 = arith.constant 5.000000e-01 : f32
    %276 = vector.broadcast %cst_95 : f32 to vector<8x16xf32>
    %277 = arith.addf %275, %276 : vector<8x16xf32>
    %278 = vector.extract_strided_slice %272 {offsets = [0, 16], sizes = [8, 16], strides = [1, 1]} : vector<8x64xf32> to vector<8x16xf32>
    %cst_96 = arith.constant 5.000000e-01 : f32
    %279 = vector.broadcast %cst_96 : f32 to vector<8x16xf32>
    %280 = arith.mulf %279, %278 : vector<8x16xf32>
    %cst_97 = arith.constant 5.000000e-01 : f32
    %281 = vector.broadcast %cst_97 : f32 to vector<8x16xf32>
    %282 = arith.addf %280, %281 : vector<8x16xf32>
    %283 = vector.extract_strided_slice %272 {offsets = [0, 32], sizes = [8, 16], strides = [1, 1]} : vector<8x64xf32> to vector<8x16xf32>
    %284 = vector.extract_strided_slice %272 {offsets = [0, 48], sizes = [8, 16], strides = [1, 1]} : vector<8x64xf32> to vector<8x16xf32>
    %cst_98 = arith.constant 5.000000e-01 : f32
    %285 = vector.broadcast %cst_98 : f32 to vector<8x16xf32>
    %286 = arith.mulf %285, %284 : vector<8x16xf32>
    %cst_99 = arith.constant 5.000000e-01 : f32
    %287 = vector.broadcast %cst_99 : f32 to vector<8x16xf32>
    %288 = arith.addf %286, %287 : vector<8x16xf32>
    %289 = arith.mulf %282, %210 : vector<8x16xf32>
    %290 = arith.mulf %277, %283 : vector<8x16xf32>
    %291 = arith.addf %289, %290 : vector<8x16xf32>
    %292 = math.tanh %291 : vector<8x16xf32>
    %293 = arith.mulf %288, %292 : vector<8x16xf32>
    %294 = vector.extract_strided_slice %15 {offsets = [32, 0], sizes = [8, 64], strides = [1, 1]} : vector<64x64xf32> to vector<8x64xf32>
    %cst_100 = arith.constant dense<0.000000e+00> : vector<8x64xf32>
    %295 = tpu.matmul %237, %22, %cst_100 {dimension_numbers = #tpu.dot_dimension_numbers<[1], [0], [0], [1], [0, 0, 1, 1], [], []>} : vector<8x16xf32>, vector<16x64xf32>, vector<8x64xf32> -> vector<8x64xf32>
    %296 = arith.addf %294, %295 : vector<8x64xf32>
    %297 = math.tanh %296 : vector<8x64xf32>
    %298 = vector.extract_strided_slice %297 {offsets = [0, 0], sizes = [8, 16], strides = [1, 1]} : vector<8x64xf32> to vector<8x16xf32>
    %cst_101 = arith.constant 5.000000e-01 : f32
    %299 = vector.broadcast %cst_101 : f32 to vector<8x16xf32>
    %300 = arith.mulf %299, %298 : vector<8x16xf32>
    %cst_102 = arith.constant 5.000000e-01 : f32
    %301 = vector.broadcast %cst_102 : f32 to vector<8x16xf32>
    %302 = arith.addf %300, %301 : vector<8x16xf32>
    %303 = vector.extract_strided_slice %297 {offsets = [0, 16], sizes = [8, 16], strides = [1, 1]} : vector<8x64xf32> to vector<8x16xf32>
    %cst_103 = arith.constant 5.000000e-01 : f32
    %304 = vector.broadcast %cst_103 : f32 to vector<8x16xf32>
    %305 = arith.mulf %304, %303 : vector<8x16xf32>
    %cst_104 = arith.constant 5.000000e-01 : f32
    %306 = vector.broadcast %cst_104 : f32 to vector<8x16xf32>
    %307 = arith.addf %305, %306 : vector<8x16xf32>
    %308 = vector.extract_strided_slice %297 {offsets = [0, 32], sizes = [8, 16], strides = [1, 1]} : vector<8x64xf32> to vector<8x16xf32>
    %309 = vector.extract_strided_slice %297 {offsets = [0, 48], sizes = [8, 16], strides = [1, 1]} : vector<8x64xf32> to vector<8x16xf32>
    %cst_105 = arith.constant 5.000000e-01 : f32
    %310 = vector.broadcast %cst_105 : f32 to vector<8x16xf32>
    %311 = arith.mulf %310, %309 : vector<8x16xf32>
    %cst_106 = arith.constant 5.000000e-01 : f32
    %312 = vector.broadcast %cst_106 : f32 to vector<8x16xf32>
    %313 = arith.addf %311, %312 : vector<8x16xf32>
    %314 = arith.mulf %307, %235 : vector<8x16xf32>
    %315 = arith.mulf %302, %308 : vector<8x16xf32>
    %316 = arith.addf %314, %315 : vector<8x16xf32>
    %317 = math.tanh %316 : vector<8x16xf32>
    %318 = arith.mulf %313, %317 : vector<8x16xf32>
    %319 = arith.addf %238, %293 : vector<8x16xf32>
    %320 = arith.addf %239, %318 : vector<8x16xf32>
    %321 = vector.extract_strided_slice %20 {offsets = [24, 0], sizes = [8, 128], strides = [1, 1]} : vector<64x128xf32> to vector<8x128xf32>
    %cst_107 = arith.constant dense<0.000000e+00> : vector<8x128xf32>
    %322 = tpu.matmul %264, %23, %cst_107 {dimension_numbers = #tpu.dot_dimension_numbers<[1], [0], [0], [1], [0, 0, 1, 1], [], []>} : vector<8x32xf32>, vector<32x128xf32>, vector<8x128xf32> -> vector<8x128xf32>
    %323 = arith.addf %321, %322 : vector<8x128xf32>
    %324 = math.tanh %323 : vector<8x128xf32>
    %325 = vector.extract_strided_slice %324 {offsets = [0, 0], sizes = [8, 32], strides = [1, 1]} : vector<8x128xf32> to vector<8x32xf32>
    %cst_108 = arith.constant 5.000000e-01 : f32
    %326 = vector.broadcast %cst_108 : f32 to vector<8x32xf32>
    %327 = arith.mulf %326, %325 : vector<8x32xf32>
    %cst_109 = arith.constant 5.000000e-01 : f32
    %328 = vector.broadcast %cst_109 : f32 to vector<8x32xf32>
    %329 = arith.addf %327, %328 : vector<8x32xf32>
    %330 = vector.extract_strided_slice %324 {offsets = [0, 32], sizes = [8, 32], strides = [1, 1]} : vector<8x128xf32> to vector<8x32xf32>
    %cst_110 = arith.constant 5.000000e-01 : f32
    %331 = vector.broadcast %cst_110 : f32 to vector<8x32xf32>
    %332 = arith.mulf %331, %330 : vector<8x32xf32>
    %cst_111 = arith.constant 5.000000e-01 : f32
    %333 = vector.broadcast %cst_111 : f32 to vector<8x32xf32>
    %334 = arith.addf %332, %333 : vector<8x32xf32>
    %335 = vector.extract_strided_slice %324 {offsets = [0, 64], sizes = [8, 32], strides = [1, 1]} : vector<8x128xf32> to vector<8x32xf32>
    %336 = vector.extract_strided_slice %324 {offsets = [0, 96], sizes = [8, 32], strides = [1, 1]} : vector<8x128xf32> to vector<8x32xf32>
    %cst_112 = arith.constant 5.000000e-01 : f32
    %337 = vector.broadcast %cst_112 : f32 to vector<8x32xf32>
    %338 = arith.mulf %337, %336 : vector<8x32xf32>
    %cst_113 = arith.constant 5.000000e-01 : f32
    %339 = vector.broadcast %cst_113 : f32 to vector<8x32xf32>
    %340 = arith.addf %338, %339 : vector<8x32xf32>
    %341 = arith.mulf %334, %262 : vector<8x32xf32>
    %342 = arith.mulf %329, %335 : vector<8x32xf32>
    %343 = arith.addf %341, %342 : vector<8x32xf32>
    %344 = math.tanh %343 : vector<8x32xf32>
    %345 = arith.mulf %340, %344 : vector<8x32xf32>
    %346 = vector.extract_strided_slice %5 {offsets = [24, 0], sizes = [8, 1], strides = [1, 1]} : vector<64x1xf32> to vector<8x1xf32>
    %347 = vector.broadcast %346 : vector<8x1xf32> to vector<8x32xf32>
    %348 = arith.mulf %347, %345 : vector<8x32xf32>
    %349 = arith.addf %268, %348 : vector<8x32xf32>
    %350 = vector.extract_strided_slice %10 {offsets = [32, 0], sizes = [8, 64], strides = [1, 1]} : vector<64x64xf32> to vector<8x64xf32>
    %cst_114 = arith.constant dense<0.000000e+00> : vector<8x64xf32>
    %351 = tpu.matmul %293, %21, %cst_114 {dimension_numbers = #tpu.dot_dimension_numbers<[1], [0], [0], [1], [0, 0, 1, 1], [], []>} : vector<8x16xf32>, vector<16x64xf32>, vector<8x64xf32> -> vector<8x64xf32>
    %352 = arith.addf %350, %351 : vector<8x64xf32>
    %353 = math.tanh %352 : vector<8x64xf32>
    %354 = vector.extract_strided_slice %353 {offsets = [0, 0], sizes = [8, 16], strides = [1, 1]} : vector<8x64xf32> to vector<8x16xf32>
    %cst_115 = arith.constant 5.000000e-01 : f32
    %355 = vector.broadcast %cst_115 : f32 to vector<8x16xf32>
    %356 = arith.mulf %355, %354 : vector<8x16xf32>
    %cst_116 = arith.constant 5.000000e-01 : f32
    %357 = vector.broadcast %cst_116 : f32 to vector<8x16xf32>
    %358 = arith.addf %356, %357 : vector<8x16xf32>
    %359 = vector.extract_strided_slice %353 {offsets = [0, 16], sizes = [8, 16], strides = [1, 1]} : vector<8x64xf32> to vector<8x16xf32>
    %cst_117 = arith.constant 5.000000e-01 : f32
    %360 = vector.broadcast %cst_117 : f32 to vector<8x16xf32>
    %361 = arith.mulf %360, %359 : vector<8x16xf32>
    %cst_118 = arith.constant 5.000000e-01 : f32
    %362 = vector.broadcast %cst_118 : f32 to vector<8x16xf32>
    %363 = arith.addf %361, %362 : vector<8x16xf32>
    %364 = vector.extract_strided_slice %353 {offsets = [0, 32], sizes = [8, 16], strides = [1, 1]} : vector<8x64xf32> to vector<8x16xf32>
    %365 = vector.extract_strided_slice %353 {offsets = [0, 48], sizes = [8, 16], strides = [1, 1]} : vector<8x64xf32> to vector<8x16xf32>
    %cst_119 = arith.constant 5.000000e-01 : f32
    %366 = vector.broadcast %cst_119 : f32 to vector<8x16xf32>
    %367 = arith.mulf %366, %365 : vector<8x16xf32>
    %cst_120 = arith.constant 5.000000e-01 : f32
    %368 = vector.broadcast %cst_120 : f32 to vector<8x16xf32>
    %369 = arith.addf %367, %368 : vector<8x16xf32>
    %370 = arith.mulf %363, %291 : vector<8x16xf32>
    %371 = arith.mulf %358, %364 : vector<8x16xf32>
    %372 = arith.addf %370, %371 : vector<8x16xf32>
    %373 = math.tanh %372 : vector<8x16xf32>
    %374 = arith.mulf %369, %373 : vector<8x16xf32>
    %375 = vector.extract_strided_slice %15 {offsets = [24, 0], sizes = [8, 64], strides = [1, 1]} : vector<64x64xf32> to vector<8x64xf32>
    %cst_121 = arith.constant dense<0.000000e+00> : vector<8x64xf32>
    %376 = tpu.matmul %318, %22, %cst_121 {dimension_numbers = #tpu.dot_dimension_numbers<[1], [0], [0], [1], [0, 0, 1, 1], [], []>} : vector<8x16xf32>, vector<16x64xf32>, vector<8x64xf32> -> vector<8x64xf32>
    %377 = arith.addf %375, %376 : vector<8x64xf32>
    %378 = math.tanh %377 : vector<8x64xf32>
    %379 = vector.extract_strided_slice %378 {offsets = [0, 0], sizes = [8, 16], strides = [1, 1]} : vector<8x64xf32> to vector<8x16xf32>
    %cst_122 = arith.constant 5.000000e-01 : f32
    %380 = vector.broadcast %cst_122 : f32 to vector<8x16xf32>
    %381 = arith.mulf %380, %379 : vector<8x16xf32>
    %cst_123 = arith.constant 5.000000e-01 : f32
    %382 = vector.broadcast %cst_123 : f32 to vector<8x16xf32>
    %383 = arith.addf %381, %382 : vector<8x16xf32>
    %384 = vector.extract_strided_slice %378 {offsets = [0, 16], sizes = [8, 16], strides = [1, 1]} : vector<8x64xf32> to vector<8x16xf32>
    %cst_124 = arith.constant 5.000000e-01 : f32
    %385 = vector.broadcast %cst_124 : f32 to vector<8x16xf32>
    %386 = arith.mulf %385, %384 : vector<8x16xf32>
    %cst_125 = arith.constant 5.000000e-01 : f32
    %387 = vector.broadcast %cst_125 : f32 to vector<8x16xf32>
    %388 = arith.addf %386, %387 : vector<8x16xf32>
    %389 = vector.extract_strided_slice %378 {offsets = [0, 32], sizes = [8, 16], strides = [1, 1]} : vector<8x64xf32> to vector<8x16xf32>
    %390 = vector.extract_strided_slice %378 {offsets = [0, 48], sizes = [8, 16], strides = [1, 1]} : vector<8x64xf32> to vector<8x16xf32>
    %cst_126 = arith.constant 5.000000e-01 : f32
    %391 = vector.broadcast %cst_126 : f32 to vector<8x16xf32>
    %392 = arith.mulf %391, %390 : vector<8x16xf32>
    %cst_127 = arith.constant 5.000000e-01 : f32
    %393 = vector.broadcast %cst_127 : f32 to vector<8x16xf32>
    %394 = arith.addf %392, %393 : vector<8x16xf32>
    %395 = arith.mulf %388, %316 : vector<8x16xf32>
    %396 = arith.mulf %383, %389 : vector<8x16xf32>
    %397 = arith.addf %395, %396 : vector<8x16xf32>
    %398 = math.tanh %397 : vector<8x16xf32>
    %399 = arith.mulf %394, %398 : vector<8x16xf32>
    %400 = arith.addf %319, %374 : vector<8x16xf32>
    %401 = arith.addf %320, %399 : vector<8x16xf32>
    %402 = vector.extract_strided_slice %20 {offsets = [32, 0], sizes = [8, 128], strides = [1, 1]} : vector<64x128xf32> to vector<8x128xf32>
    %cst_128 = arith.constant dense<0.000000e+00> : vector<8x128xf32>
    %403 = tpu.matmul %345, %23, %cst_128 {dimension_numbers = #tpu.dot_dimension_numbers<[1], [0], [0], [1], [0, 0, 1, 1], [], []>} : vector<8x32xf32>, vector<32x128xf32>, vector<8x128xf32> -> vector<8x128xf32>
    %404 = arith.addf %402, %403 : vector<8x128xf32>
    %405 = math.tanh %404 : vector<8x128xf32>
    %406 = vector.extract_strided_slice %405 {offsets = [0, 0], sizes = [8, 32], strides = [1, 1]} : vector<8x128xf32> to vector<8x32xf32>
    %cst_129 = arith.constant 5.000000e-01 : f32
    %407 = vector.broadcast %cst_129 : f32 to vector<8x32xf32>
    %408 = arith.mulf %407, %406 : vector<8x32xf32>
    %cst_130 = arith.constant 5.000000e-01 : f32
    %409 = vector.broadcast %cst_130 : f32 to vector<8x32xf32>
    %410 = arith.addf %408, %409 : vector<8x32xf32>
    %411 = vector.extract_strided_slice %405 {offsets = [0, 32], sizes = [8, 32], strides = [1, 1]} : vector<8x128xf32> to vector<8x32xf32>
    %cst_131 = arith.constant 5.000000e-01 : f32
    %412 = vector.broadcast %cst_131 : f32 to vector<8x32xf32>
    %413 = arith.mulf %412, %411 : vector<8x32xf32>
    %cst_132 = arith.constant 5.000000e-01 : f32
    %414 = vector.broadcast %cst_132 : f32 to vector<8x32xf32>
    %415 = arith.addf %413, %414 : vector<8x32xf32>
    %416 = vector.extract_strided_slice %405 {offsets = [0, 64], sizes = [8, 32], strides = [1, 1]} : vector<8x128xf32> to vector<8x32xf32>
    %417 = vector.extract_strided_slice %405 {offsets = [0, 96], sizes = [8, 32], strides = [1, 1]} : vector<8x128xf32> to vector<8x32xf32>
    %cst_133 = arith.constant 5.000000e-01 : f32
    %418 = vector.broadcast %cst_133 : f32 to vector<8x32xf32>
    %419 = arith.mulf %418, %417 : vector<8x32xf32>
    %cst_134 = arith.constant 5.000000e-01 : f32
    %420 = vector.broadcast %cst_134 : f32 to vector<8x32xf32>
    %421 = arith.addf %419, %420 : vector<8x32xf32>
    %422 = arith.mulf %415, %343 : vector<8x32xf32>
    %423 = arith.mulf %410, %416 : vector<8x32xf32>
    %424 = arith.addf %422, %423 : vector<8x32xf32>
    %425 = math.tanh %424 : vector<8x32xf32>
    %426 = arith.mulf %421, %425 : vector<8x32xf32>
    %427 = vector.extract_strided_slice %5 {offsets = [32, 0], sizes = [8, 1], strides = [1, 1]} : vector<64x1xf32> to vector<8x1xf32>
    %428 = vector.broadcast %427 : vector<8x1xf32> to vector<8x32xf32>
    %429 = arith.mulf %428, %426 : vector<8x32xf32>
    %430 = arith.addf %349, %429 : vector<8x32xf32>
    %431 = vector.extract_strided_slice %10 {offsets = [40, 0], sizes = [8, 64], strides = [1, 1]} : vector<64x64xf32> to vector<8x64xf32>
    %cst_135 = arith.constant dense<0.000000e+00> : vector<8x64xf32>
    %432 = tpu.matmul %374, %21, %cst_135 {dimension_numbers = #tpu.dot_dimension_numbers<[1], [0], [0], [1], [0, 0, 1, 1], [], []>} : vector<8x16xf32>, vector<16x64xf32>, vector<8x64xf32> -> vector<8x64xf32>
    %433 = arith.addf %431, %432 : vector<8x64xf32>
    %434 = math.tanh %433 : vector<8x64xf32>
    %435 = vector.extract_strided_slice %434 {offsets = [0, 0], sizes = [8, 16], strides = [1, 1]} : vector<8x64xf32> to vector<8x16xf32>
    %cst_136 = arith.constant 5.000000e-01 : f32
    %436 = vector.broadcast %cst_136 : f32 to vector<8x16xf32>
    %437 = arith.mulf %436, %435 : vector<8x16xf32>
    %cst_137 = arith.constant 5.000000e-01 : f32
    %438 = vector.broadcast %cst_137 : f32 to vector<8x16xf32>
    %439 = arith.addf %437, %438 : vector<8x16xf32>
    %440 = vector.extract_strided_slice %434 {offsets = [0, 16], sizes = [8, 16], strides = [1, 1]} : vector<8x64xf32> to vector<8x16xf32>
    %cst_138 = arith.constant 5.000000e-01 : f32
    %441 = vector.broadcast %cst_138 : f32 to vector<8x16xf32>
    %442 = arith.mulf %441, %440 : vector<8x16xf32>
    %cst_139 = arith.constant 5.000000e-01 : f32
    %443 = vector.broadcast %cst_139 : f32 to vector<8x16xf32>
    %444 = arith.addf %442, %443 : vector<8x16xf32>
    %445 = vector.extract_strided_slice %434 {offsets = [0, 32], sizes = [8, 16], strides = [1, 1]} : vector<8x64xf32> to vector<8x16xf32>
    %446 = vector.extract_strided_slice %434 {offsets = [0, 48], sizes = [8, 16], strides = [1, 1]} : vector<8x64xf32> to vector<8x16xf32>
    %cst_140 = arith.constant 5.000000e-01 : f32
    %447 = vector.broadcast %cst_140 : f32 to vector<8x16xf32>
    %448 = arith.mulf %447, %446 : vector<8x16xf32>
    %cst_141 = arith.constant 5.000000e-01 : f32
    %449 = vector.broadcast %cst_141 : f32 to vector<8x16xf32>
    %450 = arith.addf %448, %449 : vector<8x16xf32>
    %451 = arith.mulf %444, %372 : vector<8x16xf32>
    %452 = arith.mulf %439, %445 : vector<8x16xf32>
    %453 = arith.addf %451, %452 : vector<8x16xf32>
    %454 = math.tanh %453 : vector<8x16xf32>
    %455 = arith.mulf %450, %454 : vector<8x16xf32>
    %456 = vector.extract_strided_slice %15 {offsets = [16, 0], sizes = [8, 64], strides = [1, 1]} : vector<64x64xf32> to vector<8x64xf32>
    %cst_142 = arith.constant dense<0.000000e+00> : vector<8x64xf32>
    %457 = tpu.matmul %399, %22, %cst_142 {dimension_numbers = #tpu.dot_dimension_numbers<[1], [0], [0], [1], [0, 0, 1, 1], [], []>} : vector<8x16xf32>, vector<16x64xf32>, vector<8x64xf32> -> vector<8x64xf32>
    %458 = arith.addf %456, %457 : vector<8x64xf32>
    %459 = math.tanh %458 : vector<8x64xf32>
    %460 = vector.extract_strided_slice %459 {offsets = [0, 0], sizes = [8, 16], strides = [1, 1]} : vector<8x64xf32> to vector<8x16xf32>
    %cst_143 = arith.constant 5.000000e-01 : f32
    %461 = vector.broadcast %cst_143 : f32 to vector<8x16xf32>
    %462 = arith.mulf %461, %460 : vector<8x16xf32>
    %cst_144 = arith.constant 5.000000e-01 : f32
    %463 = vector.broadcast %cst_144 : f32 to vector<8x16xf32>
    %464 = arith.addf %462, %463 : vector<8x16xf32>
    %465 = vector.extract_strided_slice %459 {offsets = [0, 16], sizes = [8, 16], strides = [1, 1]} : vector<8x64xf32> to vector<8x16xf32>
    %cst_145 = arith.constant 5.000000e-01 : f32
    %466 = vector.broadcast %cst_145 : f32 to vector<8x16xf32>
    %467 = arith.mulf %466, %465 : vector<8x16xf32>
    %cst_146 = arith.constant 5.000000e-01 : f32
    %468 = vector.broadcast %cst_146 : f32 to vector<8x16xf32>
    %469 = arith.addf %467, %468 : vector<8x16xf32>
    %470 = vector.extract_strided_slice %459 {offsets = [0, 32], sizes = [8, 16], strides = [1, 1]} : vector<8x64xf32> to vector<8x16xf32>
    %471 = vector.extract_strided_slice %459 {offsets = [0, 48], sizes = [8, 16], strides = [1, 1]} : vector<8x64xf32> to vector<8x16xf32>
    %cst_147 = arith.constant 5.000000e-01 : f32
    %472 = vector.broadcast %cst_147 : f32 to vector<8x16xf32>
    %473 = arith.mulf %472, %471 : vector<8x16xf32>
    %cst_148 = arith.constant 5.000000e-01 : f32
    %474 = vector.broadcast %cst_148 : f32 to vector<8x16xf32>
    %475 = arith.addf %473, %474 : vector<8x16xf32>
    %476 = arith.mulf %469, %397 : vector<8x16xf32>
    %477 = arith.mulf %464, %470 : vector<8x16xf32>
    %478 = arith.addf %476, %477 : vector<8x16xf32>
    %479 = math.tanh %478 : vector<8x16xf32>
    %480 = arith.mulf %475, %479 : vector<8x16xf32>
    %481 = arith.addf %400, %455 : vector<8x16xf32>
    %482 = arith.addf %401, %480 : vector<8x16xf32>
    %483 = vector.extract_strided_slice %20 {offsets = [40, 0], sizes = [8, 128], strides = [1, 1]} : vector<64x128xf32> to vector<8x128xf32>
    %cst_149 = arith.constant dense<0.000000e+00> : vector<8x128xf32>
    %484 = tpu.matmul %426, %23, %cst_149 {dimension_numbers = #tpu.dot_dimension_numbers<[1], [0], [0], [1], [0, 0, 1, 1], [], []>} : vector<8x32xf32>, vector<32x128xf32>, vector<8x128xf32> -> vector<8x128xf32>
    %485 = arith.addf %483, %484 : vector<8x128xf32>
    %486 = math.tanh %485 : vector<8x128xf32>
    %487 = vector.extract_strided_slice %486 {offsets = [0, 0], sizes = [8, 32], strides = [1, 1]} : vector<8x128xf32> to vector<8x32xf32>
    %cst_150 = arith.constant 5.000000e-01 : f32
    %488 = vector.broadcast %cst_150 : f32 to vector<8x32xf32>
    %489 = arith.mulf %488, %487 : vector<8x32xf32>
    %cst_151 = arith.constant 5.000000e-01 : f32
    %490 = vector.broadcast %cst_151 : f32 to vector<8x32xf32>
    %491 = arith.addf %489, %490 : vector<8x32xf32>
    %492 = vector.extract_strided_slice %486 {offsets = [0, 32], sizes = [8, 32], strides = [1, 1]} : vector<8x128xf32> to vector<8x32xf32>
    %cst_152 = arith.constant 5.000000e-01 : f32
    %493 = vector.broadcast %cst_152 : f32 to vector<8x32xf32>
    %494 = arith.mulf %493, %492 : vector<8x32xf32>
    %cst_153 = arith.constant 5.000000e-01 : f32
    %495 = vector.broadcast %cst_153 : f32 to vector<8x32xf32>
    %496 = arith.addf %494, %495 : vector<8x32xf32>
    %497 = vector.extract_strided_slice %486 {offsets = [0, 64], sizes = [8, 32], strides = [1, 1]} : vector<8x128xf32> to vector<8x32xf32>
    %498 = vector.extract_strided_slice %486 {offsets = [0, 96], sizes = [8, 32], strides = [1, 1]} : vector<8x128xf32> to vector<8x32xf32>
    %cst_154 = arith.constant 5.000000e-01 : f32
    %499 = vector.broadcast %cst_154 : f32 to vector<8x32xf32>
    %500 = arith.mulf %499, %498 : vector<8x32xf32>
    %cst_155 = arith.constant 5.000000e-01 : f32
    %501 = vector.broadcast %cst_155 : f32 to vector<8x32xf32>
    %502 = arith.addf %500, %501 : vector<8x32xf32>
    %503 = arith.mulf %496, %424 : vector<8x32xf32>
    %504 = arith.mulf %491, %497 : vector<8x32xf32>
    %505 = arith.addf %503, %504 : vector<8x32xf32>
    %506 = math.tanh %505 : vector<8x32xf32>
    %507 = arith.mulf %502, %506 : vector<8x32xf32>
    %508 = vector.extract_strided_slice %5 {offsets = [40, 0], sizes = [8, 1], strides = [1, 1]} : vector<64x1xf32> to vector<8x1xf32>
    %509 = vector.broadcast %508 : vector<8x1xf32> to vector<8x32xf32>
    %510 = arith.mulf %509, %507 : vector<8x32xf32>
    %511 = arith.addf %430, %510 : vector<8x32xf32>
    %512 = vector.extract_strided_slice %10 {offsets = [48, 0], sizes = [8, 64], strides = [1, 1]} : vector<64x64xf32> to vector<8x64xf32>
    %cst_156 = arith.constant dense<0.000000e+00> : vector<8x64xf32>
    %513 = tpu.matmul %455, %21, %cst_156 {dimension_numbers = #tpu.dot_dimension_numbers<[1], [0], [0], [1], [0, 0, 1, 1], [], []>} : vector<8x16xf32>, vector<16x64xf32>, vector<8x64xf32> -> vector<8x64xf32>
    %514 = arith.addf %512, %513 : vector<8x64xf32>
    %515 = math.tanh %514 : vector<8x64xf32>
    %516 = vector.extract_strided_slice %515 {offsets = [0, 0], sizes = [8, 16], strides = [1, 1]} : vector<8x64xf32> to vector<8x16xf32>
    %cst_157 = arith.constant 5.000000e-01 : f32
    %517 = vector.broadcast %cst_157 : f32 to vector<8x16xf32>
    %518 = arith.mulf %517, %516 : vector<8x16xf32>
    %cst_158 = arith.constant 5.000000e-01 : f32
    %519 = vector.broadcast %cst_158 : f32 to vector<8x16xf32>
    %520 = arith.addf %518, %519 : vector<8x16xf32>
    %521 = vector.extract_strided_slice %515 {offsets = [0, 16], sizes = [8, 16], strides = [1, 1]} : vector<8x64xf32> to vector<8x16xf32>
    %cst_159 = arith.constant 5.000000e-01 : f32
    %522 = vector.broadcast %cst_159 : f32 to vector<8x16xf32>
    %523 = arith.mulf %522, %521 : vector<8x16xf32>
    %cst_160 = arith.constant 5.000000e-01 : f32
    %524 = vector.broadcast %cst_160 : f32 to vector<8x16xf32>
    %525 = arith.addf %523, %524 : vector<8x16xf32>
    %526 = vector.extract_strided_slice %515 {offsets = [0, 32], sizes = [8, 16], strides = [1, 1]} : vector<8x64xf32> to vector<8x16xf32>
    %527 = vector.extract_strided_slice %515 {offsets = [0, 48], sizes = [8, 16], strides = [1, 1]} : vector<8x64xf32> to vector<8x16xf32>
    %cst_161 = arith.constant 5.000000e-01 : f32
    %528 = vector.broadcast %cst_161 : f32 to vector<8x16xf32>
    %529 = arith.mulf %528, %527 : vector<8x16xf32>
    %cst_162 = arith.constant 5.000000e-01 : f32
    %530 = vector.broadcast %cst_162 : f32 to vector<8x16xf32>
    %531 = arith.addf %529, %530 : vector<8x16xf32>
    %532 = arith.mulf %525, %453 : vector<8x16xf32>
    %533 = arith.mulf %520, %526 : vector<8x16xf32>
    %534 = arith.addf %532, %533 : vector<8x16xf32>
    %535 = math.tanh %534 : vector<8x16xf32>
    %536 = arith.mulf %531, %535 : vector<8x16xf32>
    %537 = vector.extract_strided_slice %15 {offsets = [8, 0], sizes = [8, 64], strides = [1, 1]} : vector<64x64xf32> to vector<8x64xf32>
    %cst_163 = arith.constant dense<0.000000e+00> : vector<8x64xf32>
    %538 = tpu.matmul %480, %22, %cst_163 {dimension_numbers = #tpu.dot_dimension_numbers<[1], [0], [0], [1], [0, 0, 1, 1], [], []>} : vector<8x16xf32>, vector<16x64xf32>, vector<8x64xf32> -> vector<8x64xf32>
    %539 = arith.addf %537, %538 : vector<8x64xf32>
    %540 = math.tanh %539 : vector<8x64xf32>
    %541 = vector.extract_strided_slice %540 {offsets = [0, 0], sizes = [8, 16], strides = [1, 1]} : vector<8x64xf32> to vector<8x16xf32>
    %cst_164 = arith.constant 5.000000e-01 : f32
    %542 = vector.broadcast %cst_164 : f32 to vector<8x16xf32>
    %543 = arith.mulf %542, %541 : vector<8x16xf32>
    %cst_165 = arith.constant 5.000000e-01 : f32
    %544 = vector.broadcast %cst_165 : f32 to vector<8x16xf32>
    %545 = arith.addf %543, %544 : vector<8x16xf32>
    %546 = vector.extract_strided_slice %540 {offsets = [0, 16], sizes = [8, 16], strides = [1, 1]} : vector<8x64xf32> to vector<8x16xf32>
    %cst_166 = arith.constant 5.000000e-01 : f32
    %547 = vector.broadcast %cst_166 : f32 to vector<8x16xf32>
    %548 = arith.mulf %547, %546 : vector<8x16xf32>
    %cst_167 = arith.constant 5.000000e-01 : f32
    %549 = vector.broadcast %cst_167 : f32 to vector<8x16xf32>
    %550 = arith.addf %548, %549 : vector<8x16xf32>
    %551 = vector.extract_strided_slice %540 {offsets = [0, 32], sizes = [8, 16], strides = [1, 1]} : vector<8x64xf32> to vector<8x16xf32>
    %552 = vector.extract_strided_slice %540 {offsets = [0, 48], sizes = [8, 16], strides = [1, 1]} : vector<8x64xf32> to vector<8x16xf32>
    %cst_168 = arith.constant 5.000000e-01 : f32
    %553 = vector.broadcast %cst_168 : f32 to vector<8x16xf32>
    %554 = arith.mulf %553, %552 : vector<8x16xf32>
    %cst_169 = arith.constant 5.000000e-01 : f32
    %555 = vector.broadcast %cst_169 : f32 to vector<8x16xf32>
    %556 = arith.addf %554, %555 : vector<8x16xf32>
    %557 = arith.mulf %550, %478 : vector<8x16xf32>
    %558 = arith.mulf %545, %551 : vector<8x16xf32>
    %559 = arith.addf %557, %558 : vector<8x16xf32>
    %560 = math.tanh %559 : vector<8x16xf32>
    %561 = arith.mulf %556, %560 : vector<8x16xf32>
    %562 = arith.addf %481, %536 : vector<8x16xf32>
    %563 = arith.addf %482, %561 : vector<8x16xf32>
    %564 = vector.extract_strided_slice %20 {offsets = [48, 0], sizes = [8, 128], strides = [1, 1]} : vector<64x128xf32> to vector<8x128xf32>
    %cst_170 = arith.constant dense<0.000000e+00> : vector<8x128xf32>
    %565 = tpu.matmul %507, %23, %cst_170 {dimension_numbers = #tpu.dot_dimension_numbers<[1], [0], [0], [1], [0, 0, 1, 1], [], []>} : vector<8x32xf32>, vector<32x128xf32>, vector<8x128xf32> -> vector<8x128xf32>
    %566 = arith.addf %564, %565 : vector<8x128xf32>
    %567 = math.tanh %566 : vector<8x128xf32>
    %568 = vector.extract_strided_slice %567 {offsets = [0, 0], sizes = [8, 32], strides = [1, 1]} : vector<8x128xf32> to vector<8x32xf32>
    %cst_171 = arith.constant 5.000000e-01 : f32
    %569 = vector.broadcast %cst_171 : f32 to vector<8x32xf32>
    %570 = arith.mulf %569, %568 : vector<8x32xf32>
    %cst_172 = arith.constant 5.000000e-01 : f32
    %571 = vector.broadcast %cst_172 : f32 to vector<8x32xf32>
    %572 = arith.addf %570, %571 : vector<8x32xf32>
    %573 = vector.extract_strided_slice %567 {offsets = [0, 32], sizes = [8, 32], strides = [1, 1]} : vector<8x128xf32> to vector<8x32xf32>
    %cst_173 = arith.constant 5.000000e-01 : f32
    %574 = vector.broadcast %cst_173 : f32 to vector<8x32xf32>
    %575 = arith.mulf %574, %573 : vector<8x32xf32>
    %cst_174 = arith.constant 5.000000e-01 : f32
    %576 = vector.broadcast %cst_174 : f32 to vector<8x32xf32>
    %577 = arith.addf %575, %576 : vector<8x32xf32>
    %578 = vector.extract_strided_slice %567 {offsets = [0, 64], sizes = [8, 32], strides = [1, 1]} : vector<8x128xf32> to vector<8x32xf32>
    %579 = vector.extract_strided_slice %567 {offsets = [0, 96], sizes = [8, 32], strides = [1, 1]} : vector<8x128xf32> to vector<8x32xf32>
    %cst_175 = arith.constant 5.000000e-01 : f32
    %580 = vector.broadcast %cst_175 : f32 to vector<8x32xf32>
    %581 = arith.mulf %580, %579 : vector<8x32xf32>
    %cst_176 = arith.constant 5.000000e-01 : f32
    %582 = vector.broadcast %cst_176 : f32 to vector<8x32xf32>
    %583 = arith.addf %581, %582 : vector<8x32xf32>
    %584 = arith.mulf %577, %505 : vector<8x32xf32>
    %585 = arith.mulf %572, %578 : vector<8x32xf32>
    %586 = arith.addf %584, %585 : vector<8x32xf32>
    %587 = math.tanh %586 : vector<8x32xf32>
    %588 = arith.mulf %583, %587 : vector<8x32xf32>
    %589 = vector.extract_strided_slice %5 {offsets = [48, 0], sizes = [8, 1], strides = [1, 1]} : vector<64x1xf32> to vector<8x1xf32>
    %590 = vector.broadcast %589 : vector<8x1xf32> to vector<8x32xf32>
    %591 = arith.mulf %590, %588 : vector<8x32xf32>
    %592 = arith.addf %511, %591 : vector<8x32xf32>
    %593 = vector.extract_strided_slice %10 {offsets = [56, 0], sizes = [8, 64], strides = [1, 1]} : vector<64x64xf32> to vector<8x64xf32>
    %cst_177 = arith.constant dense<0.000000e+00> : vector<8x64xf32>
    %594 = tpu.matmul %536, %21, %cst_177 {dimension_numbers = #tpu.dot_dimension_numbers<[1], [0], [0], [1], [0, 0, 1, 1], [], []>} : vector<8x16xf32>, vector<16x64xf32>, vector<8x64xf32> -> vector<8x64xf32>
    %595 = arith.addf %593, %594 : vector<8x64xf32>
    %596 = math.tanh %595 : vector<8x64xf32>
    %597 = vector.extract_strided_slice %596 {offsets = [0, 0], sizes = [8, 16], strides = [1, 1]} : vector<8x64xf32> to vector<8x16xf32>
    %cst_178 = arith.constant 5.000000e-01 : f32
    %598 = vector.broadcast %cst_178 : f32 to vector<8x16xf32>
    %599 = arith.mulf %598, %597 : vector<8x16xf32>
    %cst_179 = arith.constant 5.000000e-01 : f32
    %600 = vector.broadcast %cst_179 : f32 to vector<8x16xf32>
    %601 = arith.addf %599, %600 : vector<8x16xf32>
    %602 = vector.extract_strided_slice %596 {offsets = [0, 16], sizes = [8, 16], strides = [1, 1]} : vector<8x64xf32> to vector<8x16xf32>
    %cst_180 = arith.constant 5.000000e-01 : f32
    %603 = vector.broadcast %cst_180 : f32 to vector<8x16xf32>
    %604 = arith.mulf %603, %602 : vector<8x16xf32>
    %cst_181 = arith.constant 5.000000e-01 : f32
    %605 = vector.broadcast %cst_181 : f32 to vector<8x16xf32>
    %606 = arith.addf %604, %605 : vector<8x16xf32>
    %607 = vector.extract_strided_slice %596 {offsets = [0, 32], sizes = [8, 16], strides = [1, 1]} : vector<8x64xf32> to vector<8x16xf32>
    %608 = vector.extract_strided_slice %596 {offsets = [0, 48], sizes = [8, 16], strides = [1, 1]} : vector<8x64xf32> to vector<8x16xf32>
    %cst_182 = arith.constant 5.000000e-01 : f32
    %609 = vector.broadcast %cst_182 : f32 to vector<8x16xf32>
    %610 = arith.mulf %609, %608 : vector<8x16xf32>
    %cst_183 = arith.constant 5.000000e-01 : f32
    %611 = vector.broadcast %cst_183 : f32 to vector<8x16xf32>
    %612 = arith.addf %610, %611 : vector<8x16xf32>
    %613 = arith.mulf %606, %534 : vector<8x16xf32>
    %614 = arith.mulf %601, %607 : vector<8x16xf32>
    %615 = arith.addf %613, %614 : vector<8x16xf32>
    %616 = math.tanh %615 : vector<8x16xf32>
    %617 = arith.mulf %612, %616 : vector<8x16xf32>
    %618 = vector.extract_strided_slice %15 {offsets = [0, 0], sizes = [8, 64], strides = [1, 1]} : vector<64x64xf32> to vector<8x64xf32>
    %cst_184 = arith.constant dense<0.000000e+00> : vector<8x64xf32>
    %619 = tpu.matmul %561, %22, %cst_184 {dimension_numbers = #tpu.dot_dimension_numbers<[1], [0], [0], [1], [0, 0, 1, 1], [], []>} : vector<8x16xf32>, vector<16x64xf32>, vector<8x64xf32> -> vector<8x64xf32>
    %620 = arith.addf %618, %619 : vector<8x64xf32>
    %621 = math.tanh %620 : vector<8x64xf32>
    %622 = vector.extract_strided_slice %621 {offsets = [0, 0], sizes = [8, 16], strides = [1, 1]} : vector<8x64xf32> to vector<8x16xf32>
    %cst_185 = arith.constant 5.000000e-01 : f32
    %623 = vector.broadcast %cst_185 : f32 to vector<8x16xf32>
    %624 = arith.mulf %623, %622 : vector<8x16xf32>
    %cst_186 = arith.constant 5.000000e-01 : f32
    %625 = vector.broadcast %cst_186 : f32 to vector<8x16xf32>
    %626 = arith.addf %624, %625 : vector<8x16xf32>
    %627 = vector.extract_strided_slice %621 {offsets = [0, 16], sizes = [8, 16], strides = [1, 1]} : vector<8x64xf32> to vector<8x16xf32>
    %cst_187 = arith.constant 5.000000e-01 : f32
    %628 = vector.broadcast %cst_187 : f32 to vector<8x16xf32>
    %629 = arith.mulf %628, %627 : vector<8x16xf32>
    %cst_188 = arith.constant 5.000000e-01 : f32
    %630 = vector.broadcast %cst_188 : f32 to vector<8x16xf32>
    %631 = arith.addf %629, %630 : vector<8x16xf32>
    %632 = vector.extract_strided_slice %621 {offsets = [0, 32], sizes = [8, 16], strides = [1, 1]} : vector<8x64xf32> to vector<8x16xf32>
    %633 = vector.extract_strided_slice %621 {offsets = [0, 48], sizes = [8, 16], strides = [1, 1]} : vector<8x64xf32> to vector<8x16xf32>
    %cst_189 = arith.constant 5.000000e-01 : f32
    %634 = vector.broadcast %cst_189 : f32 to vector<8x16xf32>
    %635 = arith.mulf %634, %633 : vector<8x16xf32>
    %cst_190 = arith.constant 5.000000e-01 : f32
    %636 = vector.broadcast %cst_190 : f32 to vector<8x16xf32>
    %637 = arith.addf %635, %636 : vector<8x16xf32>
    %638 = arith.mulf %631, %559 : vector<8x16xf32>
    %639 = arith.mulf %626, %632 : vector<8x16xf32>
    %640 = arith.addf %638, %639 : vector<8x16xf32>
    %641 = math.tanh %640 : vector<8x16xf32>
    %642 = arith.mulf %637, %641 : vector<8x16xf32>
    %643 = arith.addf %562, %617 : vector<8x16xf32>
    %644 = arith.addf %563, %642 : vector<8x16xf32>
    %645 = vector.extract_strided_slice %20 {offsets = [56, 0], sizes = [8, 128], strides = [1, 1]} : vector<64x128xf32> to vector<8x128xf32>
    %cst_191 = arith.constant dense<0.000000e+00> : vector<8x128xf32>
    %646 = tpu.matmul %588, %23, %cst_191 {dimension_numbers = #tpu.dot_dimension_numbers<[1], [0], [0], [1], [0, 0, 1, 1], [], []>} : vector<8x32xf32>, vector<32x128xf32>, vector<8x128xf32> -> vector<8x128xf32>
    %647 = arith.addf %645, %646 : vector<8x128xf32>
    %648 = math.tanh %647 : vector<8x128xf32>
    %649 = vector.extract_strided_slice %648 {offsets = [0, 0], sizes = [8, 32], strides = [1, 1]} : vector<8x128xf32> to vector<8x32xf32>
    %cst_192 = arith.constant 5.000000e-01 : f32
    %650 = vector.broadcast %cst_192 : f32 to vector<8x32xf32>
    %651 = arith.mulf %650, %649 : vector<8x32xf32>
    %cst_193 = arith.constant 5.000000e-01 : f32
    %652 = vector.broadcast %cst_193 : f32 to vector<8x32xf32>
    %653 = arith.addf %651, %652 : vector<8x32xf32>
    %654 = vector.extract_strided_slice %648 {offsets = [0, 32], sizes = [8, 32], strides = [1, 1]} : vector<8x128xf32> to vector<8x32xf32>
    %cst_194 = arith.constant 5.000000e-01 : f32
    %655 = vector.broadcast %cst_194 : f32 to vector<8x32xf32>
    %656 = arith.mulf %655, %654 : vector<8x32xf32>
    %cst_195 = arith.constant 5.000000e-01 : f32
    %657 = vector.broadcast %cst_195 : f32 to vector<8x32xf32>
    %658 = arith.addf %656, %657 : vector<8x32xf32>
    %659 = vector.extract_strided_slice %648 {offsets = [0, 64], sizes = [8, 32], strides = [1, 1]} : vector<8x128xf32> to vector<8x32xf32>
    %660 = vector.extract_strided_slice %648 {offsets = [0, 96], sizes = [8, 32], strides = [1, 1]} : vector<8x128xf32> to vector<8x32xf32>
    %cst_196 = arith.constant 5.000000e-01 : f32
    %661 = vector.broadcast %cst_196 : f32 to vector<8x32xf32>
    %662 = arith.mulf %661, %660 : vector<8x32xf32>
    %cst_197 = arith.constant 5.000000e-01 : f32
    %663 = vector.broadcast %cst_197 : f32 to vector<8x32xf32>
    %664 = arith.addf %662, %663 : vector<8x32xf32>
    %665 = arith.mulf %658, %586 : vector<8x32xf32>
    %666 = arith.mulf %653, %659 : vector<8x32xf32>
    %667 = arith.addf %665, %666 : vector<8x32xf32>
    %668 = math.tanh %667 : vector<8x32xf32>
    %669 = arith.mulf %664, %668 : vector<8x32xf32>
    %670 = vector.extract_strided_slice %5 {offsets = [56, 0], sizes = [8, 1], strides = [1, 1]} : vector<64x1xf32> to vector<8x1xf32>
    %671 = vector.broadcast %670 : vector<8x1xf32> to vector<8x32xf32>
    %672 = arith.mulf %671, %669 : vector<8x32xf32>
    %673 = arith.addf %592, %672 : vector<8x32xf32>
    %cst_198 = arith.constant 1.250000e-01 : f32
    %674 = vector.broadcast %cst_198 : f32 to vector<8x16xf32>
    %675 = arith.mulf %643, %674 : vector<8x16xf32>
    %cst_199 = arith.constant 1.250000e-01 : f32
    %676 = vector.broadcast %cst_199 : f32 to vector<8x16xf32>
    %677 = arith.mulf %644, %676 : vector<8x16xf32>
    %678 = tpu.concatenate %675, %677 in 1 : vector<8x16xf32>, vector<8x16xf32> -> vector<8x32xf32>
    %c0_200 = arith.constant 0 : index
    %c0_201 = arith.constant 0 : index
    %679 = vector.load %arg3[%c0_200, %c0_201] : memref<8x15xf32, #tpu.memory_space<vmem>>, vector<8x15xf32>
    %c0_202 = arith.constant 0 : index
    %c0_203 = arith.constant 0 : index
    %680 = vector.load %arg14[%c0_202, %c0_203] : memref<15x32xf32, #tpu.memory_space<vmem>>, vector<15x32xf32>
    %cst_204 = arith.constant dense<0.000000e+00> : vector<8x32xf32>
    %681 = tpu.matmul %679, %680, %cst_204 {dimension_numbers = #tpu.dot_dimension_numbers<[1], [0], [0], [1], [0, 0, 1, 1], [], []>} : vector<8x15xf32>, vector<15x32xf32>, vector<8x32xf32> -> vector<8x32xf32>
    %c0_205 = arith.constant 0 : index
    %c0_206 = arith.constant 0 : index
    %682 = vector.load %arg15[%c0_205, %c0_206] : memref<1x32xf32, #tpu.memory_space<vmem>>, vector<1x32xf32>
    %683 = vector.broadcast %682 : vector<1x32xf32> to vector<8x32xf32>
    %684 = arith.addf %681, %683 : vector<8x32xf32>
    %685 = tpu.concatenate %678, %673, %684 in 1 : vector<8x32xf32>, vector<8x32xf32>, vector<8x32xf32> -> vector<8x96xf32>
    %c0_207 = arith.constant 0 : index
    %c0_208 = arith.constant 0 : index
    %686 = vector.load %arg16[%c0_207, %c0_208] : memref<96x48xf32, #tpu.memory_space<vmem>>, vector<96x48xf32>
    %cst_209 = arith.constant dense<0.000000e+00> : vector<8x48xf32>
    %687 = tpu.matmul %685, %686, %cst_209 {dimension_numbers = #tpu.dot_dimension_numbers<[1], [0], [0], [1], [0, 0, 1, 1], [], []>} : vector<8x96xf32>, vector<96x48xf32>, vector<8x48xf32> -> vector<8x48xf32>
    %c0_210 = arith.constant 0 : index
    %c0_211 = arith.constant 0 : index
    %688 = vector.load %arg17[%c0_210, %c0_211] : memref<1x48xf32, #tpu.memory_space<vmem>>, vector<1x48xf32>
    %689 = vector.broadcast %688 : vector<1x48xf32> to vector<8x48xf32>
    %690 = arith.addf %687, %689 : vector<8x48xf32>
    %691 = math.tanh %690 : vector<8x48xf32>
    %c0_212 = arith.constant 0 : index
    %c0_213 = arith.constant 0 : index
    %692 = vector.load %arg18[%c0_212, %c0_213] : memref<48x32xf32, #tpu.memory_space<vmem>>, vector<48x32xf32>
    %cst_214 = arith.constant dense<0.000000e+00> : vector<8x32xf32>
    %693 = tpu.matmul %691, %692, %cst_214 {dimension_numbers = #tpu.dot_dimension_numbers<[1], [0], [0], [1], [0, 0, 1, 1], [], []>} : vector<8x48xf32>, vector<48x32xf32>, vector<8x32xf32> -> vector<8x32xf32>
    %c0_215 = arith.constant 0 : index
    %c0_216 = arith.constant 0 : index
    %694 = vector.load %arg19[%c0_215, %c0_216] : memref<1x32xf32, #tpu.memory_space<vmem>>, vector<1x32xf32>
    %695 = vector.broadcast %694 : vector<1x32xf32> to vector<8x32xf32>
    %696 = arith.addf %693, %695 : vector<8x32xf32>
    %697 = math.tanh %696 : vector<8x32xf32>
    %c0_217 = arith.constant 0 : index
    %c0_218 = arith.constant 0 : index
    %698 = vector.load %arg20[%c0_217, %c0_218] : memref<32x16xf32, #tpu.memory_space<vmem>>, vector<32x16xf32>
    %cst_219 = arith.constant dense<0.000000e+00> : vector<8x16xf32>
    %699 = tpu.matmul %697, %698, %cst_219 {dimension_numbers = #tpu.dot_dimension_numbers<[1], [0], [0], [1], [0, 0, 1, 1], [], []>} : vector<8x32xf32>, vector<32x16xf32>, vector<8x16xf32> -> vector<8x16xf32>
    %c0_220 = arith.constant 0 : index
    %c0_221 = arith.constant 0 : index
    %700 = vector.load %arg21[%c0_220, %c0_221] : memref<1x16xf32, #tpu.memory_space<vmem>>, vector<1x16xf32>
    %701 = vector.broadcast %700 : vector<1x16xf32> to vector<8x16xf32>
    %702 = arith.addf %699, %701 : vector<8x16xf32>
    %c0_222 = arith.constant 0 : index
    %c0_223 = arith.constant 0 : index
    %703 = vector.load %arg41[%c0_222, %c0_223] : memref<8x16xf32, #tpu.memory_space<vmem>>, vector<8x16xf32>
    tpu.vector_store %arg41[%c0_222, %c0_223], %702 {strides = array<i32>} : memref<8x16xf32, #tpu.memory_space<vmem>>, vector<8x16xf32>,
    %704 = vector.extract_strided_slice %702 {offsets = [0, 0], sizes = [8, 8], strides = [1, 1]} : vector<8x16xf32> to vector<8x8xf32>
    %705 = vector.extract_strided_slice %1 {offsets = [56, 0], sizes = [8, 16], strides = [1, 1]} : vector<64x16xf32> to vector<8x16xf32>
    %706 = tpu.concatenate %678, %684, %704 in 1 : vector<8x32xf32>, vector<8x32xf32>, vector<8x8xf32> -> vector<8x72xf32>
    %c0_224 = arith.constant 0 : index
    %c0_225 = arith.constant 0 : index
    %707 = vector.load %arg28[%c0_224, %c0_225] : memref<72x128xf32, #tpu.memory_space<vmem>>, vector<72x128xf32>
    %cst_226 = arith.constant dense<0.000000e+00> : vector<8x128xf32>
    %708 = tpu.matmul %706, %707, %cst_226 {dimension_numbers = #tpu.dot_dimension_numbers<[1], [0], [0], [1], [0, 0, 1, 1], [], []>} : vector<8x72xf32>, vector<72x128xf32>, vector<8x128xf32> -> vector<8x128xf32>
    %c0_227 = arith.constant 0 : index
    %c0_228 = arith.constant 0 : index
    %709 = vector.load %arg31[%c0_227, %c0_228] : memref<1x128xf32, #tpu.memory_space<vmem>>, vector<1x128xf32>
    %710 = vector.broadcast %709 : vector<1x128xf32> to vector<8x128xf32>
    %711 = arith.addf %708, %710 : vector<8x128xf32>
    %c0_229 = arith.constant 0 : index
    %c0_230 = arith.constant 0 : index
    %712 = vector.load %arg29[%c0_229, %c0_230] : memref<16x128xf32, #tpu.memory_space<vmem>>, vector<16x128xf32>
    %cst_231 = arith.constant dense<0.000000e+00> : vector<8x128xf32>
    %713 = tpu.matmul %705, %712, %cst_231 {dimension_numbers = #tpu.dot_dimension_numbers<[1], [0], [0], [1], [0, 0, 1, 1], [], []>} : vector<8x16xf32>, vector<16x128xf32>, vector<8x128xf32> -> vector<8x128xf32>
    %714 = arith.addf %711, %713 : vector<8x128xf32>
    %c0_232 = arith.constant 0 : index
    %c0_233 = arith.constant 0 : index
    %715 = vector.load %arg33[%c0_232, %c0_233] : memref<1x128xf32, #tpu.memory_space<vmem>>, vector<1x128xf32>
    %716 = vector.broadcast %715 : vector<1x128xf32> to vector<8x128xf32>
    %717 = arith.addf %714, %716 : vector<8x128xf32>
    %c0_234 = arith.constant 0 : index
    %c0_235 = arith.constant 0 : index
    %718 = vector.load %arg30[%c0_234, %c0_235] : memref<32x128xf32, #tpu.memory_space<vmem>>, vector<32x128xf32>
    %c0_236 = arith.constant 0 : index
    %c0_237 = arith.constant 0 : index
    %719 = vector.load %arg32[%c0_236, %c0_237] : memref<32x128xf32, #tpu.memory_space<vmem>>, vector<32x128xf32>
    %c0_238 = arith.constant 0 : index
    %c0_239 = arith.constant 0 : index
    %720 = vector.load %arg34[%c0_238, %c0_239] : memref<32x48xf32, #tpu.memory_space<vmem>>, vector<32x48xf32>
    %c0_240 = arith.constant 0 : index
    %c0_241 = arith.constant 0 : index
    %721 = vector.load %arg35[%c0_240, %c0_241] : memref<1x48xf32, #tpu.memory_space<vmem>>, vector<1x48xf32>
    %c0_242 = arith.constant 0 : index
    %c0_243 = arith.constant 0 : index
    %722 = vector.load %arg36[%c0_242, %c0_243] : memref<48x32xf32, #tpu.memory_space<vmem>>, vector<48x32xf32>
    %c0_244 = arith.constant 0 : index
    %c0_245 = arith.constant 0 : index
    %723 = vector.load %arg37[%c0_244, %c0_245] : memref<1x32xf32, #tpu.memory_space<vmem>>, vector<1x32xf32>
    %c0_246 = arith.constant 0 : index
    %c0_247 = arith.constant 0 : index
    %724 = vector.load %arg38[%c0_246, %c0_247] : memref<32x16xf32, #tpu.memory_space<vmem>>, vector<32x16xf32>
    %c0_248 = arith.constant 0 : index
    %c0_249 = arith.constant 0 : index
    %725 = vector.load %arg39[%c0_248, %c0_249] : memref<1x16xf32, #tpu.memory_space<vmem>>, vector<1x16xf32>
    %726 = math.tanh %714 : vector<8x128xf32>
    %727 = vector.extract_strided_slice %726 {offsets = [0, 0], sizes = [8, 32], strides = [1, 1]} : vector<8x128xf32> to vector<8x32xf32>
    %cst_250 = arith.constant 5.000000e-01 : f32
    %728 = vector.broadcast %cst_250 : f32 to vector<8x32xf32>
    %729 = arith.mulf %728, %727 : vector<8x32xf32>
    %cst_251 = arith.constant 5.000000e-01 : f32
    %730 = vector.broadcast %cst_251 : f32 to vector<8x32xf32>
    %731 = arith.addf %729, %730 : vector<8x32xf32>
    %732 = vector.extract_strided_slice %726 {offsets = [0, 32], sizes = [8, 32], strides = [1, 1]} : vector<8x128xf32> to vector<8x32xf32>
    %cst_252 = arith.constant 5.000000e-01 : f32
    %733 = vector.broadcast %cst_252 : f32 to vector<8x32xf32>
    %734 = arith.mulf %733, %732 : vector<8x32xf32>
    %cst_253 = arith.constant 5.000000e-01 : f32
    %735 = vector.broadcast %cst_253 : f32 to vector<8x32xf32>
    %736 = arith.addf %734, %735 : vector<8x32xf32>
    %737 = vector.extract_strided_slice %726 {offsets = [0, 64], sizes = [8, 32], strides = [1, 1]} : vector<8x128xf32> to vector<8x32xf32>
    %738 = vector.extract_strided_slice %726 {offsets = [0, 96], sizes = [8, 32], strides = [1, 1]} : vector<8x128xf32> to vector<8x32xf32>
    %cst_254 = arith.constant 5.000000e-01 : f32
    %739 = vector.broadcast %cst_254 : f32 to vector<8x32xf32>
    %740 = arith.mulf %739, %738 : vector<8x32xf32>
    %cst_255 = arith.constant 5.000000e-01 : f32
    %741 = vector.broadcast %cst_255 : f32 to vector<8x32xf32>
    %742 = arith.addf %740, %741 : vector<8x32xf32>
    %743 = arith.mulf %736, %25 : vector<8x32xf32>
    %744 = arith.mulf %731, %737 : vector<8x32xf32>
    %745 = arith.addf %743, %744 : vector<8x32xf32>
    %746 = math.tanh %745 : vector<8x32xf32>
    %747 = arith.mulf %742, %746 : vector<8x32xf32>
    %cst_256 = arith.constant dense<0.000000e+00> : vector<8x48xf32>
    %748 = tpu.matmul %747, %720, %cst_256 {dimension_numbers = #tpu.dot_dimension_numbers<[1], [0], [0], [1], [0, 0, 1, 1], [], []>} : vector<8x32xf32>, vector<32x48xf32>, vector<8x48xf32> -> vector<8x48xf32>
    %749 = vector.broadcast %721 : vector<1x48xf32> to vector<8x48xf32>
    %750 = arith.addf %748, %749 : vector<8x48xf32>
    %751 = math.tanh %750 : vector<8x48xf32>
    %cst_257 = arith.constant dense<0.000000e+00> : vector<8x32xf32>
    %752 = tpu.matmul %751, %722, %cst_257 {dimension_numbers = #tpu.dot_dimension_numbers<[1], [0], [0], [1], [0, 0, 1, 1], [], []>} : vector<8x48xf32>, vector<48x32xf32>, vector<8x32xf32> -> vector<8x32xf32>
    %753 = vector.broadcast %723 : vector<1x32xf32> to vector<8x32xf32>
    %754 = arith.addf %752, %753 : vector<8x32xf32>
    %755 = math.tanh %754 : vector<8x32xf32>
    %cst_258 = arith.constant dense<0.000000e+00> : vector<8x16xf32>
    %756 = tpu.matmul %755, %724, %cst_258 {dimension_numbers = #tpu.dot_dimension_numbers<[1], [0], [0], [1], [0, 0, 1, 1], [], []>} : vector<8x32xf32>, vector<32x16xf32>, vector<8x16xf32> -> vector<8x16xf32>
    %757 = vector.broadcast %725 : vector<1x16xf32> to vector<8x16xf32>
    %758 = arith.addf %756, %757 : vector<8x16xf32>
    %759 = arith.addf %758, %705 : vector<8x16xf32>
    %cst_259 = arith.constant dense<0.000000e+00> : vector<8x128xf32>
    %760 = tpu.matmul %755, %719, %cst_259 {dimension_numbers = #tpu.dot_dimension_numbers<[1], [0], [0], [1], [0, 0, 1, 1], [], []>} : vector<8x32xf32>, vector<32x128xf32>, vector<8x128xf32> -> vector<8x128xf32>
    %761 = arith.addf %717, %760 : vector<8x128xf32>
    %cst_260 = arith.constant dense<0.000000e+00> : vector<8x128xf32>
    %762 = tpu.matmul %747, %718, %cst_260 {dimension_numbers = #tpu.dot_dimension_numbers<[1], [0], [0], [1], [0, 0, 1, 1], [], []>} : vector<8x32xf32>, vector<32x128xf32>, vector<8x128xf32> -> vector<8x128xf32>
    %763 = arith.addf %761, %762 : vector<8x128xf32>
    %764 = math.tanh %763 : vector<8x128xf32>
    %765 = vector.extract_strided_slice %764 {offsets = [0, 0], sizes = [8, 32], strides = [1, 1]} : vector<8x128xf32> to vector<8x32xf32>
    %cst_261 = arith.constant 5.000000e-01 : f32
    %766 = vector.broadcast %cst_261 : f32 to vector<8x32xf32>
    %767 = arith.mulf %766, %765 : vector<8x32xf32>
    %cst_262 = arith.constant 5.000000e-01 : f32
    %768 = vector.broadcast %cst_262 : f32 to vector<8x32xf32>
    %769 = arith.addf %767, %768 : vector<8x32xf32>
    %770 = vector.extract_strided_slice %764 {offsets = [0, 32], sizes = [8, 32], strides = [1, 1]} : vector<8x128xf32> to vector<8x32xf32>
    %cst_263 = arith.constant 5.000000e-01 : f32
    %771 = vector.broadcast %cst_263 : f32 to vector<8x32xf32>
    %772 = arith.mulf %771, %770 : vector<8x32xf32>
    %cst_264 = arith.constant 5.000000e-01 : f32
    %773 = vector.broadcast %cst_264 : f32 to vector<8x32xf32>
    %774 = arith.addf %772, %773 : vector<8x32xf32>
    %775 = vector.extract_strided_slice %764 {offsets = [0, 64], sizes = [8, 32], strides = [1, 1]} : vector<8x128xf32> to vector<8x32xf32>
    %776 = vector.extract_strided_slice %764 {offsets = [0, 96], sizes = [8, 32], strides = [1, 1]} : vector<8x128xf32> to vector<8x32xf32>
    %cst_265 = arith.constant 5.000000e-01 : f32
    %777 = vector.broadcast %cst_265 : f32 to vector<8x32xf32>
    %778 = arith.mulf %777, %776 : vector<8x32xf32>
    %cst_266 = arith.constant 5.000000e-01 : f32
    %779 = vector.broadcast %cst_266 : f32 to vector<8x32xf32>
    %780 = arith.addf %778, %779 : vector<8x32xf32>
    %781 = arith.mulf %774, %745 : vector<8x32xf32>
    %782 = arith.mulf %769, %775 : vector<8x32xf32>
    %783 = arith.addf %781, %782 : vector<8x32xf32>
    %784 = math.tanh %783 : vector<8x32xf32>
    %785 = arith.mulf %780, %784 : vector<8x32xf32>
    %cst_267 = arith.constant dense<0.000000e+00> : vector<8x48xf32>
    %786 = tpu.matmul %785, %720, %cst_267 {dimension_numbers = #tpu.dot_dimension_numbers<[1], [0], [0], [1], [0, 0, 1, 1], [], []>} : vector<8x32xf32>, vector<32x48xf32>, vector<8x48xf32> -> vector<8x48xf32>
    %787 = vector.broadcast %721 : vector<1x48xf32> to vector<8x48xf32>
    %788 = arith.addf %786, %787 : vector<8x48xf32>
    %789 = math.tanh %788 : vector<8x48xf32>
    %cst_268 = arith.constant dense<0.000000e+00> : vector<8x32xf32>
    %790 = tpu.matmul %789, %722, %cst_268 {dimension_numbers = #tpu.dot_dimension_numbers<[1], [0], [0], [1], [0, 0, 1, 1], [], []>} : vector<8x48xf32>, vector<48x32xf32>, vector<8x32xf32> -> vector<8x32xf32>
    %791 = vector.broadcast %723 : vector<1x32xf32> to vector<8x32xf32>
    %792 = arith.addf %790, %791 : vector<8x32xf32>
    %793 = math.tanh %792 : vector<8x32xf32>
    %cst_269 = arith.constant dense<0.000000e+00> : vector<8x16xf32>
    %794 = tpu.matmul %793, %724, %cst_269 {dimension_numbers = #tpu.dot_dimension_numbers<[1], [0], [0], [1], [0, 0, 1, 1], [], []>} : vector<8x32xf32>, vector<32x16xf32>, vector<8x16xf32> -> vector<8x16xf32>
    %795 = vector.broadcast %725 : vector<1x16xf32> to vector<8x16xf32>
    %796 = arith.addf %794, %795 : vector<8x16xf32>
    %797 = arith.addf %796, %705 : vector<8x16xf32>
    %cst_270 = arith.constant dense<0.000000e+00> : vector<8x128xf32>
    %798 = tpu.matmul %793, %719, %cst_270 {dimension_numbers = #tpu.dot_dimension_numbers<[1], [0], [0], [1], [0, 0, 1, 1], [], []>} : vector<8x32xf32>, vector<32x128xf32>, vector<8x128xf32> -> vector<8x128xf32>
    %799 = arith.addf %717, %798 : vector<8x128xf32>
    %cst_271 = arith.constant dense<0.000000e+00> : vector<8x128xf32>
    %800 = tpu.matmul %785, %718, %cst_271 {dimension_numbers = #tpu.dot_dimension_numbers<[1], [0], [0], [1], [0, 0, 1, 1], [], []>} : vector<8x32xf32>, vector<32x128xf32>, vector<8x128xf32> -> vector<8x128xf32>
    %801 = arith.addf %799, %800 : vector<8x128xf32>
    %802 = math.tanh %801 : vector<8x128xf32>
    %803 = vector.extract_strided_slice %802 {offsets = [0, 0], sizes = [8, 32], strides = [1, 1]} : vector<8x128xf32> to vector<8x32xf32>
    %cst_272 = arith.constant 5.000000e-01 : f32
    %804 = vector.broadcast %cst_272 : f32 to vector<8x32xf32>
    %805 = arith.mulf %804, %803 : vector<8x32xf32>
    %cst_273 = arith.constant 5.000000e-01 : f32
    %806 = vector.broadcast %cst_273 : f32 to vector<8x32xf32>
    %807 = arith.addf %805, %806 : vector<8x32xf32>
    %808 = vector.extract_strided_slice %802 {offsets = [0, 32], sizes = [8, 32], strides = [1, 1]} : vector<8x128xf32> to vector<8x32xf32>
    %cst_274 = arith.constant 5.000000e-01 : f32
    %809 = vector.broadcast %cst_274 : f32 to vector<8x32xf32>
    %810 = arith.mulf %809, %808 : vector<8x32xf32>
    %cst_275 = arith.constant 5.000000e-01 : f32
    %811 = vector.broadcast %cst_275 : f32 to vector<8x32xf32>
    %812 = arith.addf %810, %811 : vector<8x32xf32>
    %813 = vector.extract_strided_slice %802 {offsets = [0, 64], sizes = [8, 32], strides = [1, 1]} : vector<8x128xf32> to vector<8x32xf32>
    %814 = vector.extract_strided_slice %802 {offsets = [0, 96], sizes = [8, 32], strides = [1, 1]} : vector<8x128xf32> to vector<8x32xf32>
    %cst_276 = arith.constant 5.000000e-01 : f32
    %815 = vector.broadcast %cst_276 : f32 to vector<8x32xf32>
    %816 = arith.mulf %815, %814 : vector<8x32xf32>
    %cst_277 = arith.constant 5.000000e-01 : f32
    %817 = vector.broadcast %cst_277 : f32 to vector<8x32xf32>
    %818 = arith.addf %816, %817 : vector<8x32xf32>
    %819 = arith.mulf %812, %783 : vector<8x32xf32>
    %820 = arith.mulf %807, %813 : vector<8x32xf32>
    %821 = arith.addf %819, %820 : vector<8x32xf32>
    %822 = math.tanh %821 : vector<8x32xf32>
    %823 = arith.mulf %818, %822 : vector<8x32xf32>
    %cst_278 = arith.constant dense<0.000000e+00> : vector<8x48xf32>
    %824 = tpu.matmul %823, %720, %cst_278 {dimension_numbers = #tpu.dot_dimension_numbers<[1], [0], [0], [1], [0, 0, 1, 1], [], []>} : vector<8x32xf32>, vector<32x48xf32>, vector<8x48xf32> -> vector<8x48xf32>
    %825 = vector.broadcast %721 : vector<1x48xf32> to vector<8x48xf32>
    %826 = arith.addf %824, %825 : vector<8x48xf32>
    %827 = math.tanh %826 : vector<8x48xf32>
    %cst_279 = arith.constant dense<0.000000e+00> : vector<8x32xf32>
    %828 = tpu.matmul %827, %722, %cst_279 {dimension_numbers = #tpu.dot_dimension_numbers<[1], [0], [0], [1], [0, 0, 1, 1], [], []>} : vector<8x48xf32>, vector<48x32xf32>, vector<8x32xf32> -> vector<8x32xf32>
    %829 = vector.broadcast %723 : vector<1x32xf32> to vector<8x32xf32>
    %830 = arith.addf %828, %829 : vector<8x32xf32>
    %831 = math.tanh %830 : vector<8x32xf32>
    %cst_280 = arith.constant dense<0.000000e+00> : vector<8x16xf32>
    %832 = tpu.matmul %831, %724, %cst_280 {dimension_numbers = #tpu.dot_dimension_numbers<[1], [0], [0], [1], [0, 0, 1, 1], [], []>} : vector<8x32xf32>, vector<32x16xf32>, vector<8x16xf32> -> vector<8x16xf32>
    %833 = vector.broadcast %725 : vector<1x16xf32> to vector<8x16xf32>
    %834 = arith.addf %832, %833 : vector<8x16xf32>
    %835 = arith.addf %834, %705 : vector<8x16xf32>
    %cst_281 = arith.constant dense<0.000000e+00> : vector<8x128xf32>
    %836 = tpu.matmul %831, %719, %cst_281 {dimension_numbers = #tpu.dot_dimension_numbers<[1], [0], [0], [1], [0, 0, 1, 1], [], []>} : vector<8x32xf32>, vector<32x128xf32>, vector<8x128xf32> -> vector<8x128xf32>
    %837 = arith.addf %717, %836 : vector<8x128xf32>
    %cst_282 = arith.constant dense<0.000000e+00> : vector<8x128xf32>
    %838 = tpu.matmul %823, %718, %cst_282 {dimension_numbers = #tpu.dot_dimension_numbers<[1], [0], [0], [1], [0, 0, 1, 1], [], []>} : vector<8x32xf32>, vector<32x128xf32>, vector<8x128xf32> -> vector<8x128xf32>
    %839 = arith.addf %837, %838 : vector<8x128xf32>
    %840 = math.tanh %839 : vector<8x128xf32>
    %841 = vector.extract_strided_slice %840 {offsets = [0, 0], sizes = [8, 32], strides = [1, 1]} : vector<8x128xf32> to vector<8x32xf32>
    %cst_283 = arith.constant 5.000000e-01 : f32
    %842 = vector.broadcast %cst_283 : f32 to vector<8x32xf32>
    %843 = arith.mulf %842, %841 : vector<8x32xf32>
    %cst_284 = arith.constant 5.000000e-01 : f32
    %844 = vector.broadcast %cst_284 : f32 to vector<8x32xf32>
    %845 = arith.addf %843, %844 : vector<8x32xf32>
    %846 = vector.extract_strided_slice %840 {offsets = [0, 32], sizes = [8, 32], strides = [1, 1]} : vector<8x128xf32> to vector<8x32xf32>
    %cst_285 = arith.constant 5.000000e-01 : f32
    %847 = vector.broadcast %cst_285 : f32 to vector<8x32xf32>
    %848 = arith.mulf %847, %846 : vector<8x32xf32>
    %cst_286 = arith.constant 5.000000e-01 : f32
    %849 = vector.broadcast %cst_286 : f32 to vector<8x32xf32>
    %850 = arith.addf %848, %849 : vector<8x32xf32>
    %851 = vector.extract_strided_slice %840 {offsets = [0, 64], sizes = [8, 32], strides = [1, 1]} : vector<8x128xf32> to vector<8x32xf32>
    %852 = vector.extract_strided_slice %840 {offsets = [0, 96], sizes = [8, 32], strides = [1, 1]} : vector<8x128xf32> to vector<8x32xf32>
    %cst_287 = arith.constant 5.000000e-01 : f32
    %853 = vector.broadcast %cst_287 : f32 to vector<8x32xf32>
    %854 = arith.mulf %853, %852 : vector<8x32xf32>
    %cst_288 = arith.constant 5.000000e-01 : f32
    %855 = vector.broadcast %cst_288 : f32 to vector<8x32xf32>
    %856 = arith.addf %854, %855 : vector<8x32xf32>
    %857 = arith.mulf %850, %821 : vector<8x32xf32>
    %858 = arith.mulf %845, %851 : vector<8x32xf32>
    %859 = arith.addf %857, %858 : vector<8x32xf32>
    %860 = math.tanh %859 : vector<8x32xf32>
    %861 = arith.mulf %856, %860 : vector<8x32xf32>
    %cst_289 = arith.constant dense<0.000000e+00> : vector<8x48xf32>
    %862 = tpu.matmul %861, %720, %cst_289 {dimension_numbers = #tpu.dot_dimension_numbers<[1], [0], [0], [1], [0, 0, 1, 1], [], []>} : vector<8x32xf32>, vector<32x48xf32>, vector<8x48xf32> -> vector<8x48xf32>
    %863 = vector.broadcast %721 : vector<1x48xf32> to vector<8x48xf32>
    %864 = arith.addf %862, %863 : vector<8x48xf32>
    %865 = math.tanh %864 : vector<8x48xf32>
    %cst_290 = arith.constant dense<0.000000e+00> : vector<8x32xf32>
    %866 = tpu.matmul %865, %722, %cst_290 {dimension_numbers = #tpu.dot_dimension_numbers<[1], [0], [0], [1], [0, 0, 1, 1], [], []>} : vector<8x48xf32>, vector<48x32xf32>, vector<8x32xf32> -> vector<8x32xf32>
    %867 = vector.broadcast %723 : vector<1x32xf32> to vector<8x32xf32>
    %868 = arith.addf %866, %867 : vector<8x32xf32>
    %869 = math.tanh %868 : vector<8x32xf32>
    %cst_291 = arith.constant dense<0.000000e+00> : vector<8x16xf32>
    %870 = tpu.matmul %869, %724, %cst_291 {dimension_numbers = #tpu.dot_dimension_numbers<[1], [0], [0], [1], [0, 0, 1, 1], [], []>} : vector<8x32xf32>, vector<32x16xf32>, vector<8x16xf32> -> vector<8x16xf32>
    %871 = vector.broadcast %725 : vector<1x16xf32> to vector<8x16xf32>
    %872 = arith.addf %870, %871 : vector<8x16xf32>
    %873 = arith.addf %872, %705 : vector<8x16xf32>
    %cst_292 = arith.constant dense<0.000000e+00> : vector<8x128xf32>
    %874 = tpu.matmul %869, %719, %cst_292 {dimension_numbers = #tpu.dot_dimension_numbers<[1], [0], [0], [1], [0, 0, 1, 1], [], []>} : vector<8x32xf32>, vector<32x128xf32>, vector<8x128xf32> -> vector<8x128xf32>
    %875 = arith.addf %717, %874 : vector<8x128xf32>
    %cst_293 = arith.constant dense<0.000000e+00> : vector<8x128xf32>
    %876 = tpu.matmul %861, %718, %cst_293 {dimension_numbers = #tpu.dot_dimension_numbers<[1], [0], [0], [1], [0, 0, 1, 1], [], []>} : vector<8x32xf32>, vector<32x128xf32>, vector<8x128xf32> -> vector<8x128xf32>
    %877 = arith.addf %875, %876 : vector<8x128xf32>
    %878 = math.tanh %877 : vector<8x128xf32>
    %879 = vector.extract_strided_slice %878 {offsets = [0, 0], sizes = [8, 32], strides = [1, 1]} : vector<8x128xf32> to vector<8x32xf32>
    %cst_294 = arith.constant 5.000000e-01 : f32
    %880 = vector.broadcast %cst_294 : f32 to vector<8x32xf32>
    %881 = arith.mulf %880, %879 : vector<8x32xf32>
    %cst_295 = arith.constant 5.000000e-01 : f32
    %882 = vector.broadcast %cst_295 : f32 to vector<8x32xf32>
    %883 = arith.addf %881, %882 : vector<8x32xf32>
    %884 = vector.extract_strided_slice %878 {offsets = [0, 32], sizes = [8, 32], strides = [1, 1]} : vector<8x128xf32> to vector<8x32xf32>
    %cst_296 = arith.constant 5.000000e-01 : f32
    %885 = vector.broadcast %cst_296 : f32 to vector<8x32xf32>
    %886 = arith.mulf %885, %884 : vector<8x32xf32>
    %cst_297 = arith.constant 5.000000e-01 : f32
    %887 = vector.broadcast %cst_297 : f32 to vector<8x32xf32>
    %888 = arith.addf %886, %887 : vector<8x32xf32>
    %889 = vector.extract_strided_slice %878 {offsets = [0, 64], sizes = [8, 32], strides = [1, 1]} : vector<8x128xf32> to vector<8x32xf32>
    %890 = vector.extract_strided_slice %878 {offsets = [0, 96], sizes = [8, 32], strides = [1, 1]} : vector<8x128xf32> to vector<8x32xf32>
    %cst_298 = arith.constant 5.000000e-01 : f32
    %891 = vector.broadcast %cst_298 : f32 to vector<8x32xf32>
    %892 = arith.mulf %891, %890 : vector<8x32xf32>
    %cst_299 = arith.constant 5.000000e-01 : f32
    %893 = vector.broadcast %cst_299 : f32 to vector<8x32xf32>
    %894 = arith.addf %892, %893 : vector<8x32xf32>
    %895 = arith.mulf %888, %859 : vector<8x32xf32>
    %896 = arith.mulf %883, %889 : vector<8x32xf32>
    %897 = arith.addf %895, %896 : vector<8x32xf32>
    %898 = math.tanh %897 : vector<8x32xf32>
    %899 = arith.mulf %894, %898 : vector<8x32xf32>
    %cst_300 = arith.constant dense<0.000000e+00> : vector<8x48xf32>
    %900 = tpu.matmul %899, %720, %cst_300 {dimension_numbers = #tpu.dot_dimension_numbers<[1], [0], [0], [1], [0, 0, 1, 1], [], []>} : vector<8x32xf32>, vector<32x48xf32>, vector<8x48xf32> -> vector<8x48xf32>
    %901 = vector.broadcast %721 : vector<1x48xf32> to vector<8x48xf32>
    %902 = arith.addf %900, %901 : vector<8x48xf32>
    %903 = math.tanh %902 : vector<8x48xf32>
    %cst_301 = arith.constant dense<0.000000e+00> : vector<8x32xf32>
    %904 = tpu.matmul %903, %722, %cst_301 {dimension_numbers = #tpu.dot_dimension_numbers<[1], [0], [0], [1], [0, 0, 1, 1], [], []>} : vector<8x48xf32>, vector<48x32xf32>, vector<8x32xf32> -> vector<8x32xf32>
    %905 = vector.broadcast %723 : vector<1x32xf32> to vector<8x32xf32>
    %906 = arith.addf %904, %905 : vector<8x32xf32>
    %907 = math.tanh %906 : vector<8x32xf32>
    %cst_302 = arith.constant dense<0.000000e+00> : vector<8x16xf32>
    %908 = tpu.matmul %907, %724, %cst_302 {dimension_numbers = #tpu.dot_dimension_numbers<[1], [0], [0], [1], [0, 0, 1, 1], [], []>} : vector<8x32xf32>, vector<32x16xf32>, vector<8x16xf32> -> vector<8x16xf32>
    %909 = vector.broadcast %725 : vector<1x16xf32> to vector<8x16xf32>
    %910 = arith.addf %908, %909 : vector<8x16xf32>
    %911 = arith.addf %910, %705 : vector<8x16xf32>
    %cst_303 = arith.constant dense<0.000000e+00> : vector<8x128xf32>
    %912 = tpu.matmul %907, %719, %cst_303 {dimension_numbers = #tpu.dot_dimension_numbers<[1], [0], [0], [1], [0, 0, 1, 1], [], []>} : vector<8x32xf32>, vector<32x128xf32>, vector<8x128xf32> -> vector<8x128xf32>
    %913 = arith.addf %717, %912 : vector<8x128xf32>
    %cst_304 = arith.constant dense<0.000000e+00> : vector<8x128xf32>
    %914 = tpu.matmul %899, %718, %cst_304 {dimension_numbers = #tpu.dot_dimension_numbers<[1], [0], [0], [1], [0, 0, 1, 1], [], []>} : vector<8x32xf32>, vector<32x128xf32>, vector<8x128xf32> -> vector<8x128xf32>
    %915 = arith.addf %913, %914 : vector<8x128xf32>
    %916 = math.tanh %915 : vector<8x128xf32>
    %917 = vector.extract_strided_slice %916 {offsets = [0, 0], sizes = [8, 32], strides = [1, 1]} : vector<8x128xf32> to vector<8x32xf32>
    %cst_305 = arith.constant 5.000000e-01 : f32
    %918 = vector.broadcast %cst_305 : f32 to vector<8x32xf32>
    %919 = arith.mulf %918, %917 : vector<8x32xf32>
    %cst_306 = arith.constant 5.000000e-01 : f32
    %920 = vector.broadcast %cst_306 : f32 to vector<8x32xf32>
    %921 = arith.addf %919, %920 : vector<8x32xf32>
    %922 = vector.extract_strided_slice %916 {offsets = [0, 32], sizes = [8, 32], strides = [1, 1]} : vector<8x128xf32> to vector<8x32xf32>
    %cst_307 = arith.constant 5.000000e-01 : f32
    %923 = vector.broadcast %cst_307 : f32 to vector<8x32xf32>
    %924 = arith.mulf %923, %922 : vector<8x32xf32>
    %cst_308 = arith.constant 5.000000e-01 : f32
    %925 = vector.broadcast %cst_308 : f32 to vector<8x32xf32>
    %926 = arith.addf %924, %925 : vector<8x32xf32>
    %927 = vector.extract_strided_slice %916 {offsets = [0, 64], sizes = [8, 32], strides = [1, 1]} : vector<8x128xf32> to vector<8x32xf32>
    %928 = vector.extract_strided_slice %916 {offsets = [0, 96], sizes = [8, 32], strides = [1, 1]} : vector<8x128xf32> to vector<8x32xf32>
    %cst_309 = arith.constant 5.000000e-01 : f32
    %929 = vector.broadcast %cst_309 : f32 to vector<8x32xf32>
    %930 = arith.mulf %929, %928 : vector<8x32xf32>
    %cst_310 = arith.constant 5.000000e-01 : f32
    %931 = vector.broadcast %cst_310 : f32 to vector<8x32xf32>
    %932 = arith.addf %930, %931 : vector<8x32xf32>
    %933 = arith.mulf %926, %897 : vector<8x32xf32>
    %934 = arith.mulf %921, %927 : vector<8x32xf32>
    %935 = arith.addf %933, %934 : vector<8x32xf32>
    %936 = math.tanh %935 : vector<8x32xf32>
    %937 = arith.mulf %932, %936 : vector<8x32xf32>
    %cst_311 = arith.constant dense<0.000000e+00> : vector<8x48xf32>
    %938 = tpu.matmul %937, %720, %cst_311 {dimension_numbers = #tpu.dot_dimension_numbers<[1], [0], [0], [1], [0, 0, 1, 1], [], []>} : vector<8x32xf32>, vector<32x48xf32>, vector<8x48xf32> -> vector<8x48xf32>
    %939 = vector.broadcast %721 : vector<1x48xf32> to vector<8x48xf32>
    %940 = arith.addf %938, %939 : vector<8x48xf32>
    %941 = math.tanh %940 : vector<8x48xf32>
    %cst_312 = arith.constant dense<0.000000e+00> : vector<8x32xf32>
    %942 = tpu.matmul %941, %722, %cst_312 {dimension_numbers = #tpu.dot_dimension_numbers<[1], [0], [0], [1], [0, 0, 1, 1], [], []>} : vector<8x48xf32>, vector<48x32xf32>, vector<8x32xf32> -> vector<8x32xf32>
    %943 = vector.broadcast %723 : vector<1x32xf32> to vector<8x32xf32>
    %944 = arith.addf %942, %943 : vector<8x32xf32>
    %945 = math.tanh %944 : vector<8x32xf32>
    %cst_313 = arith.constant dense<0.000000e+00> : vector<8x16xf32>
    %946 = tpu.matmul %945, %724, %cst_313 {dimension_numbers = #tpu.dot_dimension_numbers<[1], [0], [0], [1], [0, 0, 1, 1], [], []>} : vector<8x32xf32>, vector<32x16xf32>, vector<8x16xf32> -> vector<8x16xf32>
    %947 = vector.broadcast %725 : vector<1x16xf32> to vector<8x16xf32>
    %948 = arith.addf %946, %947 : vector<8x16xf32>
    %949 = arith.addf %948, %705 : vector<8x16xf32>
    %cst_314 = arith.constant dense<0.000000e+00> : vector<8x128xf32>
    %950 = tpu.matmul %945, %719, %cst_314 {dimension_numbers = #tpu.dot_dimension_numbers<[1], [0], [0], [1], [0, 0, 1, 1], [], []>} : vector<8x32xf32>, vector<32x128xf32>, vector<8x128xf32> -> vector<8x128xf32>
    %951 = arith.addf %717, %950 : vector<8x128xf32>
    %cst_315 = arith.constant dense<0.000000e+00> : vector<8x128xf32>
    %952 = tpu.matmul %937, %718, %cst_315 {dimension_numbers = #tpu.dot_dimension_numbers<[1], [0], [0], [1], [0, 0, 1, 1], [], []>} : vector<8x32xf32>, vector<32x128xf32>, vector<8x128xf32> -> vector<8x128xf32>
    %953 = arith.addf %951, %952 : vector<8x128xf32>
    %954 = math.tanh %953 : vector<8x128xf32>
    %955 = vector.extract_strided_slice %954 {offsets = [0, 0], sizes = [8, 32], strides = [1, 1]} : vector<8x128xf32> to vector<8x32xf32>
    %cst_316 = arith.constant 5.000000e-01 : f32
    %956 = vector.broadcast %cst_316 : f32 to vector<8x32xf32>
    %957 = arith.mulf %956, %955 : vector<8x32xf32>
    %cst_317 = arith.constant 5.000000e-01 : f32
    %958 = vector.broadcast %cst_317 : f32 to vector<8x32xf32>
    %959 = arith.addf %957, %958 : vector<8x32xf32>
    %960 = vector.extract_strided_slice %954 {offsets = [0, 32], sizes = [8, 32], strides = [1, 1]} : vector<8x128xf32> to vector<8x32xf32>
    %cst_318 = arith.constant 5.000000e-01 : f32
    %961 = vector.broadcast %cst_318 : f32 to vector<8x32xf32>
    %962 = arith.mulf %961, %960 : vector<8x32xf32>
    %cst_319 = arith.constant 5.000000e-01 : f32
    %963 = vector.broadcast %cst_319 : f32 to vector<8x32xf32>
    %964 = arith.addf %962, %963 : vector<8x32xf32>
    %965 = vector.extract_strided_slice %954 {offsets = [0, 64], sizes = [8, 32], strides = [1, 1]} : vector<8x128xf32> to vector<8x32xf32>
    %966 = vector.extract_strided_slice %954 {offsets = [0, 96], sizes = [8, 32], strides = [1, 1]} : vector<8x128xf32> to vector<8x32xf32>
    %cst_320 = arith.constant 5.000000e-01 : f32
    %967 = vector.broadcast %cst_320 : f32 to vector<8x32xf32>
    %968 = arith.mulf %967, %966 : vector<8x32xf32>
    %cst_321 = arith.constant 5.000000e-01 : f32
    %969 = vector.broadcast %cst_321 : f32 to vector<8x32xf32>
    %970 = arith.addf %968, %969 : vector<8x32xf32>
    %971 = arith.mulf %964, %935 : vector<8x32xf32>
    %972 = arith.mulf %959, %965 : vector<8x32xf32>
    %973 = arith.addf %971, %972 : vector<8x32xf32>
    %974 = math.tanh %973 : vector<8x32xf32>
    %975 = arith.mulf %970, %974 : vector<8x32xf32>
    %cst_322 = arith.constant dense<0.000000e+00> : vector<8x48xf32>
    %976 = tpu.matmul %975, %720, %cst_322 {dimension_numbers = #tpu.dot_dimension_numbers<[1], [0], [0], [1], [0, 0, 1, 1], [], []>} : vector<8x32xf32>, vector<32x48xf32>, vector<8x48xf32> -> vector<8x48xf32>
    %977 = vector.broadcast %721 : vector<1x48xf32> to vector<8x48xf32>
    %978 = arith.addf %976, %977 : vector<8x48xf32>
    %979 = math.tanh %978 : vector<8x48xf32>
    %cst_323 = arith.constant dense<0.000000e+00> : vector<8x32xf32>
    %980 = tpu.matmul %979, %722, %cst_323 {dimension_numbers = #tpu.dot_dimension_numbers<[1], [0], [0], [1], [0, 0, 1, 1], [], []>} : vector<8x48xf32>, vector<48x32xf32>, vector<8x32xf32> -> vector<8x32xf32>
    %981 = vector.broadcast %723 : vector<1x32xf32> to vector<8x32xf32>
    %982 = arith.addf %980, %981 : vector<8x32xf32>
    %983 = math.tanh %982 : vector<8x32xf32>
    %cst_324 = arith.constant dense<0.000000e+00> : vector<8x16xf32>
    %984 = tpu.matmul %983, %724, %cst_324 {dimension_numbers = #tpu.dot_dimension_numbers<[1], [0], [0], [1], [0, 0, 1, 1], [], []>} : vector<8x32xf32>, vector<32x16xf32>, vector<8x16xf32> -> vector<8x16xf32>
    %985 = vector.broadcast %725 : vector<1x16xf32> to vector<8x16xf32>
    %986 = arith.addf %984, %985 : vector<8x16xf32>
    %987 = arith.addf %986, %705 : vector<8x16xf32>
    %cst_325 = arith.constant dense<0.000000e+00> : vector<8x128xf32>
    %988 = tpu.matmul %983, %719, %cst_325 {dimension_numbers = #tpu.dot_dimension_numbers<[1], [0], [0], [1], [0, 0, 1, 1], [], []>} : vector<8x32xf32>, vector<32x128xf32>, vector<8x128xf32> -> vector<8x128xf32>
    %989 = arith.addf %717, %988 : vector<8x128xf32>
    %cst_326 = arith.constant dense<0.000000e+00> : vector<8x128xf32>
    %990 = tpu.matmul %975, %718, %cst_326 {dimension_numbers = #tpu.dot_dimension_numbers<[1], [0], [0], [1], [0, 0, 1, 1], [], []>} : vector<8x32xf32>, vector<32x128xf32>, vector<8x128xf32> -> vector<8x128xf32>
    %991 = arith.addf %989, %990 : vector<8x128xf32>
    %992 = math.tanh %991 : vector<8x128xf32>
    %993 = vector.extract_strided_slice %992 {offsets = [0, 0], sizes = [8, 32], strides = [1, 1]} : vector<8x128xf32> to vector<8x32xf32>
    %cst_327 = arith.constant 5.000000e-01 : f32
    %994 = vector.broadcast %cst_327 : f32 to vector<8x32xf32>
    %995 = arith.mulf %994, %993 : vector<8x32xf32>
    %cst_328 = arith.constant 5.000000e-01 : f32
    %996 = vector.broadcast %cst_328 : f32 to vector<8x32xf32>
    %997 = arith.addf %995, %996 : vector<8x32xf32>
    %998 = vector.extract_strided_slice %992 {offsets = [0, 32], sizes = [8, 32], strides = [1, 1]} : vector<8x128xf32> to vector<8x32xf32>
    %cst_329 = arith.constant 5.000000e-01 : f32
    %999 = vector.broadcast %cst_329 : f32 to vector<8x32xf32>
    %1000 = arith.mulf %999, %998 : vector<8x32xf32>
    %cst_330 = arith.constant 5.000000e-01 : f32
    %1001 = vector.broadcast %cst_330 : f32 to vector<8x32xf32>
    %1002 = arith.addf %1000, %1001 : vector<8x32xf32>
    %1003 = vector.extract_strided_slice %992 {offsets = [0, 64], sizes = [8, 32], strides = [1, 1]} : vector<8x128xf32> to vector<8x32xf32>
    %1004 = vector.extract_strided_slice %992 {offsets = [0, 96], sizes = [8, 32], strides = [1, 1]} : vector<8x128xf32> to vector<8x32xf32>
    %cst_331 = arith.constant 5.000000e-01 : f32
    %1005 = vector.broadcast %cst_331 : f32 to vector<8x32xf32>
    %1006 = arith.mulf %1005, %1004 : vector<8x32xf32>
    %cst_332 = arith.constant 5.000000e-01 : f32
    %1007 = vector.broadcast %cst_332 : f32 to vector<8x32xf32>
    %1008 = arith.addf %1006, %1007 : vector<8x32xf32>
    %1009 = arith.mulf %1002, %973 : vector<8x32xf32>
    %1010 = arith.mulf %997, %1003 : vector<8x32xf32>
    %1011 = arith.addf %1009, %1010 : vector<8x32xf32>
    %1012 = math.tanh %1011 : vector<8x32xf32>
    %1013 = arith.mulf %1008, %1012 : vector<8x32xf32>
    %cst_333 = arith.constant dense<0.000000e+00> : vector<8x48xf32>
    %1014 = tpu.matmul %1013, %720, %cst_333 {dimension_numbers = #tpu.dot_dimension_numbers<[1], [0], [0], [1], [0, 0, 1, 1], [], []>} : vector<8x32xf32>, vector<32x48xf32>, vector<8x48xf32> -> vector<8x48xf32>
    %1015 = vector.broadcast %721 : vector<1x48xf32> to vector<8x48xf32>
    %1016 = arith.addf %1014, %1015 : vector<8x48xf32>
    %1017 = math.tanh %1016 : vector<8x48xf32>
    %cst_334 = arith.constant dense<0.000000e+00> : vector<8x32xf32>
    %1018 = tpu.matmul %1017, %722, %cst_334 {dimension_numbers = #tpu.dot_dimension_numbers<[1], [0], [0], [1], [0, 0, 1, 1], [], []>} : vector<8x48xf32>, vector<48x32xf32>, vector<8x32xf32> -> vector<8x32xf32>
    %1019 = vector.broadcast %723 : vector<1x32xf32> to vector<8x32xf32>
    %1020 = arith.addf %1018, %1019 : vector<8x32xf32>
    %1021 = math.tanh %1020 : vector<8x32xf32>
    %cst_335 = arith.constant dense<0.000000e+00> : vector<8x16xf32>
    %1022 = tpu.matmul %1021, %724, %cst_335 {dimension_numbers = #tpu.dot_dimension_numbers<[1], [0], [0], [1], [0, 0, 1, 1], [], []>} : vector<8x32xf32>, vector<32x16xf32>, vector<8x16xf32> -> vector<8x16xf32>
    %1023 = vector.broadcast %725 : vector<1x16xf32> to vector<8x16xf32>
    %1024 = arith.addf %1022, %1023 : vector<8x16xf32>
    %1025 = arith.addf %1024, %705 : vector<8x16xf32>
    %1026 = tpu.concatenate %759, %797, %835, %873, %911, %949, %987, %1025 in 1 : vector<8x16xf32>, vector<8x16xf32>, vector<8x16xf32>, vector<8x16xf32>, vector<8x16xf32>, vector<8x16xf32>, vector<8x16xf32>, vector<8x16xf32> -> vector<8x128xf32>
    %c0_336 = arith.constant 0 : index
    %c0_337 = arith.constant 0 : index
    %1027 = vector.load %arg40[%c0_336, %c0_337] : memref<8x128xf32, #tpu.memory_space<vmem>>, vector<8x128xf32>
    tpu.vector_store %arg40[%c0_336, %c0_337], %1026 {strides = array<i32>} : memref<8x128xf32, #tpu.memory_space<vmem>>, vector<8x128xf32>,
    %1028 = tpu.concatenate %678, %684 in 1 : vector<8x32xf32>, vector<8x32xf32> -> vector<8x64xf32>
    %c0_338 = arith.constant 0 : index
    %c0_339 = arith.constant 0 : index
    %1029 = vector.load %arg22[%c0_338, %c0_339] : memref<64x48xf32, #tpu.memory_space<vmem>>, vector<64x48xf32>
    %cst_340 = arith.constant dense<0.000000e+00> : vector<8x48xf32>
    %1030 = tpu.matmul %1028, %1029, %cst_340 {dimension_numbers = #tpu.dot_dimension_numbers<[1], [0], [0], [1], [0, 0, 1, 1], [], []>} : vector<8x64xf32>, vector<64x48xf32>, vector<8x48xf32> -> vector<8x48xf32>
    %c0_341 = arith.constant 0 : index
    %c0_342 = arith.constant 0 : index
    %1031 = vector.load %arg23[%c0_341, %c0_342] : memref<1x48xf32, #tpu.memory_space<vmem>>, vector<1x48xf32>
    %1032 = vector.broadcast %1031 : vector<1x48xf32> to vector<8x48xf32>
    %1033 = arith.addf %1030, %1032 : vector<8x48xf32>
    %1034 = math.tanh %1033 : vector<8x48xf32>
    %c0_343 = arith.constant 0 : index
    %c0_344 = arith.constant 0 : index
    %1035 = vector.load %arg24[%c0_343, %c0_344] : memref<48x32xf32, #tpu.memory_space<vmem>>, vector<48x32xf32>
    %cst_345 = arith.constant dense<0.000000e+00> : vector<8x32xf32>
    %1036 = tpu.matmul %1034, %1035, %cst_345 {dimension_numbers = #tpu.dot_dimension_numbers<[1], [0], [0], [1], [0, 0, 1, 1], [], []>} : vector<8x48xf32>, vector<48x32xf32>, vector<8x32xf32> -> vector<8x32xf32>
    %c0_346 = arith.constant 0 : index
    %c0_347 = arith.constant 0 : index
    %1037 = vector.load %arg25[%c0_346, %c0_347] : memref<1x32xf32, #tpu.memory_space<vmem>>, vector<1x32xf32>
    %1038 = vector.broadcast %1037 : vector<1x32xf32> to vector<8x32xf32>
    %1039 = arith.addf %1036, %1038 : vector<8x32xf32>
    %1040 = math.tanh %1039 : vector<8x32xf32>
    %c0_348 = arith.constant 0 : index
    %c0_349 = arith.constant 0 : index
    %1041 = vector.load %arg26[%c0_348, %c0_349] : memref<32x16xf32, #tpu.memory_space<vmem>>, vector<32x16xf32>
    %cst_350 = arith.constant dense<0.000000e+00> : vector<8x16xf32>
    %1042 = tpu.matmul %1040, %1041, %cst_350 {dimension_numbers = #tpu.dot_dimension_numbers<[1], [0], [0], [1], [0, 0, 1, 1], [], []>} : vector<8x32xf32>, vector<32x16xf32>, vector<8x16xf32> -> vector<8x16xf32>
    %c0_351 = arith.constant 0 : index
    %c0_352 = arith.constant 0 : index
    %1043 = vector.load %arg27[%c0_351, %c0_352] : memref<1x16xf32, #tpu.memory_space<vmem>>, vector<1x16xf32>
    %1044 = vector.broadcast %1043 : vector<1x16xf32> to vector<8x16xf32>
    %1045 = arith.addf %1042, %1044 : vector<8x16xf32>
    %c0_353 = arith.constant 0 : index
    %c0_354 = arith.constant 0 : index
    %1046 = vector.load %arg42[%c0_353, %c0_354] : memref<8x16xf32, #tpu.memory_space<vmem>>, vector<8x16xf32>
    tpu.vector_store %arg42[%c0_353, %c0_354], %1045 {strides = array<i32>} : memref<8x16xf32, #tpu.memory_space<vmem>>, vector<8x16xf32>,
    return
  }
  func.func @transform_0(%arg0: i32) -> (i32, i32, i32) {
    %c0_i32 = arith.constant 0 : i32
    %c0_i32_0 = arith.constant 0 : i32
    %c0_i32_1 = arith.constant 0 : i32
    return %arg0, %c0_i32, %c0_i32_0 : i32, i32, i32
  }
  func.func @transform_1(%arg0: i32) -> (i32, i32, i32) {
    %c0_i32 = arith.constant 0 : i32
    %c0_i32_0 = arith.constant 0 : i32
    %c0_i32_1 = arith.constant 0 : i32
    return %arg0, %c0_i32, %c0_i32_0 : i32, i32, i32
  }
  func.func @transform_2(%arg0: i32) -> (i32, i32) {
    %c0_i32 = arith.constant 0 : i32
    %c0_i32_0 = arith.constant 0 : i32
    return %arg0, %c0_i32 : i32, i32
  }
  func.func @transform_3(%arg0: i32) -> (i32, i32, i32) {
    %c0_i32 = arith.constant 0 : i32
    %c0_i32_0 = arith.constant 0 : i32
    %c0_i32_1 = arith.constant 0 : i32
    return %arg0, %c0_i32, %c0_i32_0 : i32, i32, i32
  }
  func.func @transform_4(%arg0: i32) -> (i32, i32) {
    %c0_i32 = arith.constant 0 : i32
    %c0_i32_0 = arith.constant 0 : i32
    %c0_i32_1 = arith.constant 0 : i32
    return %c0_i32, %c0_i32_0 : i32, i32
  }
  func.func @transform_5(%arg0: i32) -> (i32, i32) {
    %c0_i32 = arith.constant 0 : i32
    %c0_i32_0 = arith.constant 0 : i32
    %c0_i32_1 = arith.constant 0 : i32
    return %c0_i32, %c0_i32_0 : i32, i32
  }
  func.func @transform_6(%arg0: i32) -> (i32, i32) {
    %c0_i32 = arith.constant 0 : i32
    %c0_i32_0 = arith.constant 0 : i32
    %c0_i32_1 = arith.constant 0 : i32
    return %c0_i32, %c0_i32_0 : i32, i32
  }
  func.func @transform_7(%arg0: i32) -> (i32, i32) {
    %c0_i32 = arith.constant 0 : i32
    %c0_i32_0 = arith.constant 0 : i32
    %c0_i32_1 = arith.constant 0 : i32
    return %c0_i32, %c0_i32_0 : i32, i32
  }
  func.func @transform_8(%arg0: i32) -> (i32, i32) {
    %c0_i32 = arith.constant 0 : i32
    %c0_i32_0 = arith.constant 0 : i32
    %c0_i32_1 = arith.constant 0 : i32
    return %c0_i32, %c0_i32_0 : i32, i32
  }
  func.func @transform_9(%arg0: i32) -> (i32, i32) {
    %c0_i32 = arith.constant 0 : i32
    %c0_i32_0 = arith.constant 0 : i32
    %c0_i32_1 = arith.constant 0 : i32
    return %c0_i32, %c0_i32_0 : i32, i32
  }
  func.func @transform_10(%arg0: i32) -> (i32, i32) {
    %c0_i32 = arith.constant 0 : i32
    %c0_i32_0 = arith.constant 0 : i32
    %c0_i32_1 = arith.constant 0 : i32
    return %c0_i32, %c0_i32_0 : i32, i32
  }
  func.func @transform_11(%arg0: i32) -> (i32, i32) {
    %c0_i32 = arith.constant 0 : i32
    %c0_i32_0 = arith.constant 0 : i32
    %c0_i32_1 = arith.constant 0 : i32
    return %c0_i32, %c0_i32_0 : i32, i32
  }
  func.func @transform_12(%arg0: i32) -> (i32, i32) {
    %c0_i32 = arith.constant 0 : i32
    %c0_i32_0 = arith.constant 0 : i32
    %c0_i32_1 = arith.constant 0 : i32
    return %c0_i32, %c0_i32_0 : i32, i32
  }
  func.func @transform_13(%arg0: i32) -> (i32, i32) {
    %c0_i32 = arith.constant 0 : i32
    %c0_i32_0 = arith.constant 0 : i32
    %c0_i32_1 = arith.constant 0 : i32
    return %c0_i32, %c0_i32_0 : i32, i32
  }
  func.func @transform_14(%arg0: i32) -> (i32, i32) {
    %c0_i32 = arith.constant 0 : i32
    %c0_i32_0 = arith.constant 0 : i32
    %c0_i32_1 = arith.constant 0 : i32
    return %c0_i32, %c0_i32_0 : i32, i32
  }
  func.func @transform_15(%arg0: i32) -> (i32, i32) {
    %c0_i32 = arith.constant 0 : i32
    %c0_i32_0 = arith.constant 0 : i32
    %c0_i32_1 = arith.constant 0 : i32
    return %c0_i32, %c0_i32_0 : i32, i32
  }
  func.func @transform_16(%arg0: i32) -> (i32, i32) {
    %c0_i32 = arith.constant 0 : i32
    %c0_i32_0 = arith.constant 0 : i32
    %c0_i32_1 = arith.constant 0 : i32
    return %c0_i32, %c0_i32_0 : i32, i32
  }
  func.func @transform_17(%arg0: i32) -> (i32, i32) {
    %c0_i32 = arith.constant 0 : i32
    %c0_i32_0 = arith.constant 0 : i32
    %c0_i32_1 = arith.constant 0 : i32
    return %c0_i32, %c0_i32_0 : i32, i32
  }
  func.func @transform_18(%arg0: i32) -> (i32, i32) {
    %c0_i32 = arith.constant 0 : i32
    %c0_i32_0 = arith.constant 0 : i32
    %c0_i32_1 = arith.constant 0 : i32
    return %c0_i32, %c0_i32_0 : i32, i32
  }
  func.func @transform_19(%arg0: i32) -> (i32, i32) {
    %c0_i32 = arith.constant 0 : i32
    %c0_i32_0 = arith.constant 0 : i32
    %c0_i32_1 = arith.constant 0 : i32
    return %c0_i32, %c0_i32_0 : i32, i32
  }
  func.func @transform_20(%arg0: i32) -> (i32, i32) {
    %c0_i32 = arith.constant 0 : i32
    %c0_i32_0 = arith.constant 0 : i32
    %c0_i32_1 = arith.constant 0 : i32
    return %c0_i32, %c0_i32_0 : i32, i32
  }
  func.func @transform_21(%arg0: i32) -> (i32, i32) {
    %c0_i32 = arith.constant 0 : i32
    %c0_i32_0 = arith.constant 0 : i32
    %c0_i32_1 = arith.constant 0 : i32
    return %c0_i32, %c0_i32_0 : i32, i32
  }
  func.func @transform_22(%arg0: i32) -> (i32, i32) {
    %c0_i32 = arith.constant 0 : i32
    %c0_i32_0 = arith.constant 0 : i32
    %c0_i32_1 = arith.constant 0 : i32
    return %c0_i32, %c0_i32_0 : i32, i32
  }
  func.func @transform_23(%arg0: i32) -> (i32, i32) {
    %c0_i32 = arith.constant 0 : i32
    %c0_i32_0 = arith.constant 0 : i32
    %c0_i32_1 = arith.constant 0 : i32
    return %c0_i32, %c0_i32_0 : i32, i32
  }
  func.func @transform_24(%arg0: i32) -> (i32, i32) {
    %c0_i32 = arith.constant 0 : i32
    %c0_i32_0 = arith.constant 0 : i32
    %c0_i32_1 = arith.constant 0 : i32
    return %c0_i32, %c0_i32_0 : i32, i32
  }
  func.func @transform_25(%arg0: i32) -> (i32, i32) {
    %c0_i32 = arith.constant 0 : i32
    %c0_i32_0 = arith.constant 0 : i32
    %c0_i32_1 = arith.constant 0 : i32
    return %c0_i32, %c0_i32_0 : i32, i32
  }
  func.func @transform_26(%arg0: i32) -> (i32, i32) {
    %c0_i32 = arith.constant 0 : i32
    %c0_i32_0 = arith.constant 0 : i32
    %c0_i32_1 = arith.constant 0 : i32
    return %c0_i32, %c0_i32_0 : i32, i32
  }
  func.func @transform_27(%arg0: i32) -> (i32, i32) {
    %c0_i32 = arith.constant 0 : i32
    %c0_i32_0 = arith.constant 0 : i32
    %c0_i32_1 = arith.constant 0 : i32
    return %c0_i32, %c0_i32_0 : i32, i32
  }
  func.func @transform_28(%arg0: i32) -> (i32, i32) {
    %c0_i32 = arith.constant 0 : i32
    %c0_i32_0 = arith.constant 0 : i32
    %c0_i32_1 = arith.constant 0 : i32
    return %c0_i32, %c0_i32_0 : i32, i32
  }
  func.func @transform_29(%arg0: i32) -> (i32, i32) {
    %c0_i32 = arith.constant 0 : i32
    %c0_i32_0 = arith.constant 0 : i32
    %c0_i32_1 = arith.constant 0 : i32
    return %c0_i32, %c0_i32_0 : i32, i32
  }
  func.func @transform_30(%arg0: i32) -> (i32, i32) {
    %c0_i32 = arith.constant 0 : i32
    %c0_i32_0 = arith.constant 0 : i32
    %c0_i32_1 = arith.constant 0 : i32
    return %c0_i32, %c0_i32_0 : i32, i32
  }
  func.func @transform_31(%arg0: i32) -> (i32, i32) {
    %c0_i32 = arith.constant 0 : i32
    %c0_i32_0 = arith.constant 0 : i32
    %c0_i32_1 = arith.constant 0 : i32
    return %c0_i32, %c0_i32_0 : i32, i32
  }
  func.func @transform_32(%arg0: i32) -> (i32, i32) {
    %c0_i32 = arith.constant 0 : i32
    %c0_i32_0 = arith.constant 0 : i32
    %c0_i32_1 = arith.constant 0 : i32
    return %c0_i32, %c0_i32_0 : i32, i32
  }
  func.func @transform_33(%arg0: i32) -> (i32, i32) {
    %c0_i32 = arith.constant 0 : i32
    %c0_i32_0 = arith.constant 0 : i32
    %c0_i32_1 = arith.constant 0 : i32
    return %c0_i32, %c0_i32_0 : i32, i32
  }
  func.func @transform_34(%arg0: i32) -> (i32, i32) {
    %c0_i32 = arith.constant 0 : i32
    %c0_i32_0 = arith.constant 0 : i32
    %c0_i32_1 = arith.constant 0 : i32
    return %c0_i32, %c0_i32_0 : i32, i32
  }
  func.func @transform_35(%arg0: i32) -> (i32, i32) {
    %c0_i32 = arith.constant 0 : i32
    %c0_i32_0 = arith.constant 0 : i32
    %c0_i32_1 = arith.constant 0 : i32
    return %c0_i32, %c0_i32_0 : i32, i32
  }
  func.func @transform_36(%arg0: i32) -> (i32, i32) {
    %c0_i32 = arith.constant 0 : i32
    %c0_i32_0 = arith.constant 0 : i32
    %c0_i32_1 = arith.constant 0 : i32
    return %c0_i32, %c0_i32_0 : i32, i32
  }
  func.func @transform_37(%arg0: i32) -> (i32, i32) {
    %c0_i32 = arith.constant 0 : i32
    %c0_i32_0 = arith.constant 0 : i32
    %c0_i32_1 = arith.constant 0 : i32
    return %c0_i32, %c0_i32_0 : i32, i32
  }
  func.func @transform_38(%arg0: i32) -> (i32, i32) {
    %c0_i32 = arith.constant 0 : i32
    %c0_i32_0 = arith.constant 0 : i32
    %c0_i32_1 = arith.constant 0 : i32
    return %c0_i32, %c0_i32_0 : i32, i32
  }
  func.func @transform_39(%arg0: i32) -> (i32, i32) {
    %c0_i32 = arith.constant 0 : i32
    %c0_i32_0 = arith.constant 0 : i32
    return %arg0, %c0_i32 : i32, i32
  }
  func.func @transform_40(%arg0: i32) -> (i32, i32) {
    %c0_i32 = arith.constant 0 : i32
    %c0_i32_0 = arith.constant 0 : i32
    return %arg0, %c0_i32 : i32, i32
  }
  func.func @transform_41(%arg0: i32) -> (i32, i32) {
    %c0_i32 = arith.constant 0 : i32
    %c0_i32_0 = arith.constant 0 : i32
    return %arg0, %c0_i32 : i32, i32
  }
}

</mosaic_0001>

<bundles_post_ra>
// kernel: act_vae_forward.1
= control target key start
LH: loop header
LB: loop body
LE: loop exit
PB: predicated region body
PF: predicated region fallthrough
CT: control target
= control target key end

     0   :  { %s8867_s3 = smov 4   ;;  %s8868_s7 = smov 5   ;;  %vm200_vm0 = vcmask 130048   ;;  %v8871_v14 = vmov 0.0|0.0   ;;  %vm8875_vm1 = vmmov 0   ;;  %v8876_v28 = vmov 0.0   ;;  %s10112_s0 = inlined_call_operand.smem [shape: u32[42], index: -1, kind: input, shape index: {}] }
   0x1   :  { %s6817_s6 = sld [smem:[%s10112_s0 + %s8867_s3]]   ;;  %s8869_s14 = smov 10   ;;  %vm777_vm2 = vcmask 261120   ;;  %vm2982_vm3 = vcmask 1046528   ;;  %vm8888_vm4 = vmmov 1   ;;  %vm2978_vm6 = vcmask 121856  }
   0x2   :  { %s6818_s10 = sld [smem:[%s10112_s0 + %s8868_s7]]   ;;  %s8870_s18 = smov 9   ;;  %vm8290_vm5 = vmpackc.low %vm2982_vm3, %vm8888_vm4  ;;  %vm3065_vm7 = vcmask 523264   ;;  %vm3086_vm8 = vcmask 785408   ;;  %vm3174_vm9 = vcmask 392192   ;;  %vm3359_vm10 = vcmask 588800  }
   0x3   :  { %s8932_s13 = sld [smem:[%s10112_s0]]   ;;  %s8872_s22 = smov 1   ;;  %vm6535_vm11 = vcmask 654336   ;;  %vm6538_vm12 = vcmask 916480  }
   0x4   :  { %s6823_s17 = sld [smem:[%s10112_s0 + %s8869_s14]]   ;;  %s8873_s26 = smov 8  }
   0x5   :  { %s6822_s21 = sld [smem:[%s10112_s0 + %s8870_s18]]   ;;  %s8874_s30 = smov 12  }
   0x6   :  { %s8957_s25 = sld [smem:[%s10112_s0 + %s8872_s22]]   ;;  %s8877_s4 = smov 6  }
   0x7   :  { %v191_v0 = vld [vmem:[%s6817_s6] sm:$0xff]  ;;  %v192_v1 = vld [vmem:[%s6817_s6 + $0x8] sm:$0xff]  ;;  %s6821_s29 = sld [smem:[%s10112_s0 + %s8873_s26]]   ;;  %s8878_s8 = smov 7  }
   0x8   :  { %v330_v2 = vld [vmem:[%s6818_s10] sm:$0xff]  ;;  %v8180_v3 = vpack.c.bf16 %v192_v1, %v191_v0  ;;  %v331_v4 = vld [vmem:[%s6818_s10 + $0x8] sm:$0xff]  ;;  %s6825_s3 = sld [smem:[%s10112_s0 + %s8874_s30]]   ;;  %s8879_s12 = smov 11  }
   0x9   :  { %v167_v5 = vld [vmem:[%s8932_s13] sm:$0xff]  ;;  %v8184_v6 = vpack.c.bf16 %v331_v4, %v330_v2  ;;  %v168_v10 = vld [vmem:[%s8932_s13 + $0x8] sm:$0xff]  ;;  %v169_v13 = vld [vmem:[%s8932_s13 + $0x10] sm:$0xff]  ;;  %s6819_s7 = sld [smem:[%s10112_s0 + %s8877_s4]]   ;;  %s8881_s18 = smov 96  }
   0xa   :  { %7353 = vmatprep.mubr.msk.f32.mxu0 %vm200_vm0, %v167_v5  ;;  %7369 = vmatprep.mubr.msk.f32.mxu1 %vm200_vm0, %v167_v5  ;;  %v444_v7 = vld [vmem:[%s6823_s17] sm:$0xff]  ;;  %v445_v8 = vld [vmem:[%s6823_s17 + $0x8] sm:$0xff]  ;;  %v170_v16 = vld [vmem:[%s8932_s13 + $0x18] sm:$0xff]  ;;  %s6820_s11 = sld [smem:[%s10112_s0 + %s8878_s8]]   ;;  %s8880_s17 = smov 64  }
   0xb   :  { %8181 = vmatprep.subr.bf16.mxu0 %v8180_v3  ;;  %v8188_v9 = vpack.c.bf16 %v445_v8, %v444_v7  ;;  %8185 = vmatprep.subr.bf16.mxu1 %v8184_v6  ;;  %v584_v11 = vld [vmem:[%s6822_s21] sm:$0xff]  ;;  %v585_v12 = vld [vmem:[%s6822_s21 + $0x8] sm:$0xff]  ;;  %v173_v19 = vld [vmem:[%s8932_s13 + $0x30] sm:$0xff]  ;;  %s6824_s16 = sld [smem:[%s10112_s0 + %s8879_s12]]   ;;  %s8882_s19 = smov 16  }
   0xc   :  { %8183 = vmatpush3.bf16.msra.mxu0 %v8180_v3  ;;  %8187 = vmatpush3.bf16.msra.mxu1 %v8184_v6  ;;  %v8946_v15 = vpack.c.bf16 %v585_v12, %v584_v11  ;;  %v171_v17 = vld [vmem:[%s8932_s13 + $0x20] sm:$0xff]  ;;  %v172_v18 = vld [vmem:[%s8932_s13 + $0x28] sm:$0xff]  ;;  %v174_v20 = vld [vmem:[%s8932_s13 + $0x38] sm:$0xff]  ;;  %s8883_s20 = smov 32   ;;  %s8884_s21 = smov 80  }
   0xd   :  { %8189 = vmatprep.subr.bf16.mxu0 %v8188_v9  ;;  %8195 = vmatprep.subr.bf16.mxu1 %v8871_v14  ;;  %v175_v21 = vld [vmem:[%s8957_s25] sm:$0xff]  ;;  %v583_v23 = vld [vmem:[%s6821_s29 + $0x8] sm:$0xff]  ;;  %v177_v30 = vld [vmem:[%s8957_s25 + $0x10] sm:$0xff]  ;;  %s8886_s22 = smov 13   ;;  %s8887_s26 = smov 2  }
   0xe   :  { %v582_v22 = vld [vmem:[%s6821_s29] sm:$0xff]  ;;  %v587_v25 = vld [vmem:[%s6825_s3 + $0x8] sm:$0xff]  ;;  %v588_v31 = vld [vmem:[%s6825_s3 + $0x10] sm:$0xff]  ;;  %s6815_s29 = sld [smem:[%s10112_s0 + %s8887_s26]]   ;;  %s8889_s30 = smov 3  }
   0xf   :  { %7354 = vmatmul.mubr.msk.f32.vlgmr.msra.gmra.mrb[0].mxu0 %vm200_vm0, %v168_v10  ;;  %7370 = vmatmul.mubr.msk.f32.vlgmr.msra.gmra.mrb[0].mxu1 %vm200_vm0, %v168_v10  ;;  %v586_v24 = vld [vmem:[%s6825_s3] sm:$0xff]  ;;  %v176_v26 = vld [vmem:[%s8957_s25 + $0x8] sm:$0xff]  ;;  %v8984_v27 = vpack.c.bf16 %v583_v23, %v582_v22  ;;  %v589_v32 = vld [vmem:[%s6825_s3 + $0x18] sm:$0xff]  ;;  %s6816_s3 = sld [smem:[%s10112_s0 + %s8889_s30]]   ;;  %s8890_s4 = smov 15  }
  0x10   :  { %8191 = vmatpush3.bf16.msra.mxu0 %v8188_v9  ;;  %7356 = vmatprep.mubr.msk.f32.mxu0 %vm200_vm0, %v169_v13  ;;  %v8988_v29 = vpack.c.bf16 %v587_v25, %v586_v24  ;;  %v178_v33 = vld [vmem:[%s8957_s25 + $0x18] sm:$0xff]  ;;  %v8997_v34 = vpack.c.bf16 %v589_v32, %v588_v31  ;;  %v179_v35 = vld [vmem:[%s8957_s25 + $0x20] sm:$0xff]  ;;  %v180_v36 = vld [vmem:[%s8957_s25 + $0x28] sm:$0xff]  ;;  %s8891_s8 = smov 14   ;;  %s8892_s12 = smov 17  }
  0x11   :  { %7372 = vmatprep.mubr.msk.f32.mxu1 %vm200_vm0, %v169_v13  ;;  %8197 = vmatpush3.bf16.msra.mxu1 %v8946_v15  ;;  %v181_v37 = vld [vmem:[%s8957_s25 + $0x30] sm:$0xff]  ;;  %v182_v38 = vld [vmem:[%s8957_s25 + $0x38] sm:$0xff]  ;;  %v6855_v39 = vld [vmem:[%s6819_s7] ss:$0 sm:$0xff]  ;;  %s6826_s25 = sld [smem:[%s10112_s0 + %s8886_s22]]   ;;  %s8911_s14 = smov 22  }
  0x12   :  { %8192 = vmatprep.subr.bf16.mxu0 %v8871_v14  ;;  %8198 = vmatprep.subr.bf16.mxu1 %v8871_v14  ;;  %v6864_v40 = vld [vmem:[%s6820_s11] ss:$0 sm:$0xff]  ;;  %s9483_s7 = sld [smem:[%s10112_s0 + %s8890_s4]]   ;;  %s8912_s23 = smov 25  }
  0x13   :  { %7357 = vmatmul.mubr.msk.f32.gmra.mrb[2].mxu0 %vm200_vm0, %v170_v16  ;;  %7373 = vmatmul.mubr.msk.f32.gmra.mrb[2].mxu1 %vm200_vm0, %v170_v16  ;;  %v6873_v5 = vld [vmem:[%s6824_s16] ss:$0 sm:$0xff]  ;;  %s6827_s11 = sld [smem:[%s10112_s0 + %s8891_s8]]   ;;  %s8913_s27 = smov 112  }
  0x14   :  { %7359 = vmatprep.mubr.msk.f32.mxu0 %vm200_vm0, %v171_v17  ;;  %7375 = vmatprep.mubr.msk.f32.mxu1 %vm200_vm0, %v171_v17  ;;  %s6830_s16 = sld [smem:[%s10112_s0 + %s8892_s12]]  }
  0x15   :  { %s6829_s24 = sld [smem:[%s10112_s0 + %s8882_s19]]  }
  0x16   :  { %s6845_s5 = sld [smem:[%s10112_s0 + %s8883_s20]]  }
  0x17   :  { %7360 = vmatmul.mubr.msk.f32.gmra.mrb[4].mxu0 %vm200_vm0, %v172_v18  ;;  %7376 = vmatmul.mubr.msk.f32.gmra.mrb[4].mxu1 %vm200_vm0, %v172_v18  ;;  %s6835_s22 = sld [smem:[%s10112_s0 + %s8911_s14]]  }
  0x18   :  { %7362 = vmatprep.mubr.msk.f32.mxu0 %vm200_vm0, %v173_v19  ;;  %7378 = vmatprep.mubr.msk.f32.mxu1 %vm200_vm0, %v173_v19  ;;  %s6838_s26 = sld [smem:[%s10112_s0 + %s8912_s23]]  }
  0x1b   :  { %7363 = vmatmul.mubr.msk.f32.gmra.mrb[6].mxu0 %vm200_vm0, %v174_v20  ;;  %7379 = vmatmul.mubr.msk.f32.gmra.mrb[6].mxu1 %vm200_vm0, %v174_v20 }
  0x1c   :  { %7385 = vmatprep.mubr.msk.f32.mxu0 %vm200_vm0, %v175_v21  ;;  %7408 = vmatprep.mubr.msk.f32.mxu1 %vm8875_vm1, %v8876_v28 }
  0x1f   :  { %7386 = vmatmul.mubr.msk.f32.vlgmr.msra.gmra.mrb[8].mxu0 %vm200_vm0, %v176_v26  ;;  %7409 = vmatmul.mubr.f32.vlgmr.msra.gmra.mrb[8].mxu1 %v8876_v28 }
  0x20   :  { %8194 = vmatpush3.bf16.msra.mxu0 %v8984_v27  ;;  %8200 = vmatpush3.bf16.msra.mxu1 %v8988_v29 }
  0x21   :  { %7388 = vmatprep.mubr.msk.f32.mxu0 %vm200_vm0, %v177_v30  ;;  %8201 = vmatprep.subr.bf16.mxu1 %v8871_v14 }
  0x22   :  { %7419 = vmatprep.mubr.msk.f32.mxu1 %vm8875_vm1, %v8876_v28  ;;  %8204 = vmatprep.subr.bf16.mxu0 %v8871_v14 }
  0x23   :  { %7389 = vmatmul.mubr.msk.f32.gmra.mrb[10].mxu0 %vm200_vm0, %v178_v33 }
  0x24   :  { %7391 = vmatprep.mubr.msk.f32.mxu0 %vm200_vm0, %v179_v35  ;;  %8203 = vmatpush3.bf16.msra.mxu1 %v8997_v34 }
  0x25   :  { %8207 = vmatprep.subr.bf16.mxu1 %v8871_v14 }
  0x27   :  { %7392 = vmatmul.mubr.msk.f32.gmra.mrb[12].mxu0 %vm200_vm0, %v180_v36  ;;  %7420 = vmatmul.mubr.f32.vlgmr.msra.gmra.mrb[10].mxu1 %v8876_v28 }
  0x28   :  { %7394 = vmatprep.mubr.msk.f32.mxu0 %vm200_vm0, %v181_v37  ;;  %8209 = vmatpush3.bf16.msra.mxu1 %v8946_v15 }
  0x29   :  { %7433 = vmatprep.mubr.msk.f32.mxu1 %vm8875_vm1, %v8876_v28  ;;  %8216 = vmatprep.subr.bf16.mxu1 %v8871_v14 }
  0x2b   :  { %7395 = vmatmul.mubr.msk.f32.gmra.mrb[14].mxu0 %vm200_vm0, %v182_v38 }
  0x2c   :  { %7401 = vmatprep.mubr.msk.f32.mxu0 %vm8875_vm1, %v8876_v28 }
  0x2f   :  { %7402 = vmatmul.mubr.f32.vlgmr.msra.gmra.mrb[16].mxu0 %v8876_v28 }
  0x30   :  { %8206 = vmatpush3.bf16.msra.mxu0 %v8984_v27  ;;  %7426 = vmatprep.mubr.msk.f32.mxu0 %vm8875_vm1, %v8876_v28 }
  0x31   :  { %8210 = vmatprep.subr.bf16.mxu0 %v8871_v14 }
  0xe2   :  { %v7355_v41 = vpop.f32.mrb[0].mxu0  ;;  %v7371_v44 = vpop.f32.mrb[0].mxu1 }
  0xe3   :  { %v9032_v42 = vadd.f32 %v7355_v41, %v6855_v39  ;;  %v291_v43 = vpop.f32.mrb[1].mxu0  ;;  %v9034_v45 = vadd.f32 %v7371_v44, %v6864_v40  ;;  %v405_v46 = vpop.f32.mrb[1].mxu1 }
  0xe4   :  { %v9036_v47 = vadd.f32 %v6864_v40, %v405_v46  ;;  %v292_v37 = vadd.f32 %v6855_v39, %v291_v43 }
  0xe6   :  { %v7358_v48 = vpop.f32.mrb[2].mxu0  ;;  %v7374_v51 = vpop.f32.mrb[2].mxu1 }
  0xe7   :  { %v9038_v49 = vadd.f32 %v7358_v48, %v6855_v39  ;;  %v301_v50 = vpop.f32.mrb[3].mxu0  ;;  %v9042_v53 = vadd.f32 %v7374_v51, %v6864_v40  ;;  %v415_v54 = vpop.f32.mrb[3].mxu1 }
  0xe8   :  { %v9040_v52 = vadd.f32 %v6855_v39, %v301_v50  ;;  %v9047_v55 = vadd.f32 %v6864_v40, %v415_v54 }
  0xea   :  { %v7361_v56 = vpop.f32.mrb[4].mxu0  ;;  %v7377_v59 = vpop.f32.mrb[4].mxu1 }
  0xeb   :  { %v9049_v57 = vadd.f32 %v7361_v56, %v6855_v39  ;;  %v311_v58 = vpop.f32.mrb[5].mxu0  ;;  %v9053_v61 = vadd.f32 %v7377_v59, %v6864_v40  ;;  %v425_v62 = vpop.f32.mrb[5].mxu1 }
  0xec   :  { %v9051_v60 = vadd.f32 %v6855_v39, %v311_v58  ;;  %v9055_v63 = vadd.f32 %v6864_v40, %v425_v62 }
  0xee   :  { %v7364_v0 = vpop.f32.mrb[6].mxu0  ;;  %v7380_v3 = vpop.f32.mrb[6].mxu1 }
  0xef   :  { %v9057_v1 = vadd.f32 %v7364_v0, %v6855_v39  ;;  %v321_v2 = vpop.f32.mrb[7].mxu0  ;;  %v441_v6 = vadd.f32 %v7380_v3, %v6864_v40  ;;  %v435_v7 = vpop.f32.mrb[7].mxu1 }
  0xf0   :  { %v9059_v4 = vadd.f32 %v6855_v39, %v321_v2  ;;  %v9061_v8 = vadd.f32 %v6864_v40, %v435_v7 }
  0xf2   :  { %v7387_v9 = vpop.f32.mrb[8].mxu0  ;;  %v750_v12 = vpop.f32.mrb[8].mxu1 }
  0xf3   :  { %v9063_v10 = vadd.f32 %v7387_v9, %v6873_v5  ;;  %v543_v11 = vpop.f32.mrb[9].mxu0  ;;  %v754_v13 = vadd.f32 %v750_v12, %v441_v6  ;;  %v7410_v16 = vpop.f32.mrb[9].mxu1 }
  0xf4   :  { %v544_v21 = vadd.f32 %v6873_v5, %v543_v11 }
  0xf6   :  { %v7390_v17 = vpop.f32.mrb[10].mxu0 }
  0xf7   :  { %v9065_v18 = vadd.f32 %v7390_v17, %v6873_v5  ;;  %v553_v19 = vpop.f32.mrb[11].mxu0 }
  0xf8   :  { %v9067_v20 = vadd.f32 %v6873_v5, %v553_v19 }
  0xfa   :  { %v7393_v22 = vpop.f32.mrb[12].mxu0  ;;  %v846_v23 = vpop.f32.mrb[10].mxu1 }
  0xfb   :  { %v9069_v24 = vadd.f32 %v7393_v22, %v6873_v5  ;;  %v563_v25 = vpop.f32.mrb[13].mxu0  ;;  %v850_v26 = vadd.f32 %v846_v23, %v544_v21  ;;  %v7421_v31 = vpop.f32.mrb[11].mxu1 }
  0xfc   :  { %v9071_v30 = vadd.f32 %v6873_v5, %v563_v25 }
  0xfd   :  { %8696 = vtanh.f32 %v850_v26 }
  0xfe   :  { %v7396_v32 = vpop.f32.mrb[14].mxu0 }
  0xff   :  { %v9073_v33 = vadd.f32 %v7396_v32, %v6873_v5  ;;  %v573_v35 = vpop.f32.mrb[15].mxu0 }
 0x100   :  { %v9075_v36 = vadd.f32 %v6873_v5, %v573_v35 }
 0x102   :  { %v659_v38 = vpop.f32.mrb[16].mxu0 }
 0x103   :  { %v663_v40 = vadd.f32 %v659_v38, %v292_v37  ;;  %v7403_v41 = vpop.f32.mrb[17].mxu0 }
 0x105   :  { %8698 = vtanh.f32 %v663_v40 }
 0x106   :  { %8700 = vtanh.f32 %v754_v13 }
 0x107   :  { %v8697_v44 = vpop.eup %8696 }
 0x108   :  { %856 = vrot.lane.b32.xlu1 %v8697_v44, %s8880_s17  ;;  %v852_v51 = vmul.f32 0.5, %v8697_v44 }
 0x10a   :  { %v853_v59 = vadd.f32 0.5, %v852_v51 }
 0x10c   :  { %v854_v11 = vmul.f32 0.0, %v853_v59 }
 0x10f   :  { %v8699_v46 = vpop.eup %8698 }
 0x110   :  { %669 = vrot.lane.b32.xlu0 %v8699_v46, %s8881_s18  ;;  %v8701_v48 = vpop.eup %8700  ;;  %v665_v50 = vmul.f32 0.5, %v8699_v46 }
 0x111   :  { %v756_v39 = vmul.f32 0.5, %v8701_v48 }
 0x112   :  { %v666_v54 = vadd.f32 0.5, %v665_v50 }
 0x113   :  { %v757_v62 = vadd.f32 0.5, %v756_v39 }
 0x114   :  { %760 = vrot.lane.b32.xlu0 %v8701_v48, %s8881_s18  ;;  %v667_v5 = vmul.f32 0.0, %v666_v54 }
 0x115   :  { %v758_v9 = vmul.f32 0.0, %v757_v62 }
 0x17a   :  { %v857_v58 = vpop.permute.xlu1 %856 }
 0x17b   :  { %v859_v2 = vmul.f32 %v857_v58, %v853_v59 }
 0x182   :  { %v670_v43 = vpop.permute.xlu0 %669 }
 0x183   :  { %v672_v56 = vmul.f32 %v670_v43, %v666_v54 }
 0x185   :  { %674 = vrot.lane.b32.xlu1 %v672_v56, %s8882_s19 }
 0x186   :  { %v761_v0 = vpop.permute.xlu0 %760 }
 0x187   :  { %v763_v3 = vmul.f32 %v761_v0, %v757_v62 }
 0x189   :  { %765 = vrot.lane.b32.xlu0 %v763_v3, %s8882_s19  ;;  %861 = vrot.lane.b32.xlu1 %v859_v2, %s8883_s20 }
 0x1f7   :  { %v675_v6 = vpop.permute.xlu1 %674 }
 0x1f8   :  { %v9083_v7 = vadd.f32 %v675_v6, %v667_v5 }
 0x1fa   :  { %8702 = vtanh.f32 %v9083_v7 }
 0x1fb   :  { %v766_v12 = vpop.permute.xlu0 %765  ;;  %v862_v13 = vpop.permute.xlu1 %861 }
 0x1fc   :  { %v9086_v16 = vadd.f32 %v766_v12, %v758_v9  ;;  %v9088_v17 = vadd.f32 %v862_v13, %v854_v11 }
 0x1fe   :  { %8704 = vtanh.f32 %v9086_v16 }
 0x1ff   :  { %8706 = vtanh.f32 %v9088_v17 }
 0x204   :  { %v8703_v19 = vpop.eup %8702 }
 0x205   :  { %680 = vrot.lane.b32.xlu0 %v8703_v19, %s8883_s20 }
 0x208   :  { %v8705_v21 = vpop.eup %8704 }
 0x209   :  { %v8707_v22 = vpop.eup %8706  ;;  %771 = vrot.lane.b32.xlu1 %v8705_v21, %s8883_s20 }
 0x20a   :  { %867 = vrot.lane.b32.xlu0 %v8707_v22, %s8880_s17 }
 0x277   :  { %v681_v23 = vpop.permute.xlu0 %680 }
 0x278   :  { %v9095_v25 = vmul.f32 %v681_v23, %v666_v54 }
 0x27a   :  { %879 = vrot.lane.b32.xlu1 %v9095_v25, %s8884_s21 }
 0x27b   :  { %v772_v26 = vpop.permute.xlu1 %771 }
 0x27c   :  { %v9099_v31 = vmul.f32 %v772_v26, %v757_v62  ;;  %v868_v32 = vpop.permute.xlu0 %867 }
 0x27d   :  { %v9101_v35 = vmul.f32 %v868_v32, %v853_v59 }
 0x27e   :  { %975 = vrot.lane.b32.xlu0 %v9099_v31, %s8884_s21 }
 0x27f   :  { %1073 = vrot.lane.b32.xlu1 %v9101_v35, %s8883_s20 }
 0x2ec   :  { %v880_v37 = vpop.permute.xlu1 %879 }
 0x2ed   :  { %7427 = vmatmul.mubr.msk.f32.vlgmr.msra.gmra.mrb[18].mxu0 %vm200_vm0, %v880_v37 }
 0x2ee   :  { %8212 = vmatpush3.bf16.msra.mxu0 %v8988_v29  ;;  %7444 = vmatprep.mubr.msk.f32.mxu0 %vm8875_vm1, %v8876_v28 }
 0x2ef   :  { %8213 = vmatprep.subr.bf16.mxu0 %v8871_v14 }
 0x2f0   :  { %v976_v38 = vpop.permute.xlu0 %975 }
 0x2f1   :  { %7434 = vmatmul.mubr.msk.f32.vlgmr.msra.gmra.mrb[12].mxu1 %vm200_vm0, %v976_v38  ;;  %v1074_v40 = vpop.permute.xlu1 %1073 }
 0x2f2   :  { %8215 = vmatpush3.bf16.msra.mxu0 %v8997_v34  ;;  %8218 = vmatpush3.bf16.msra.mxu1 %v8984_v27 }
 0x2f3   :  { %7451 = vmatprep.mubr.msk.f32.mxu1 %vm8875_vm1, %v8876_v28  ;;  %8222 = vmatprep.subr.bf16.mxu0 %v8871_v14 }
 0x2f4   :  { %8219 = vmatprep.subr.bf16.mxu1 %v8871_v14 }
 0x2f5   :  { %7445 = vmatmul.mubr.msk.f32.vlgmr.msra.gmra.mrb[20].mxu0 %vm777_vm2, %v1074_v40 }
 0x2f6   :  { %8224 = vmatpush3.bf16.msra.mxu0 %v8988_v29  ;;  %7469 = vmatprep.mubr.msk.f32.mxu0 %vm8875_vm1, %v8876_v28 }
 0x2f7   :  { %8225 = vmatprep.subr.bf16.mxu0 %v8871_v14 }
 0x2fa   :  { %8227 = vmatpush3.bf16.msra.mxu0 %v8997_v34 }
 0x2fb   :  { %8234 = vmatprep.subr.bf16.mxu0 %v8871_v14 }
 0x3c0   :  { %v949_v41 = vpop.f32.mrb[18].mxu0 }
 0x3c1   :  { %v953_v44 = vadd.f32 %v949_v41, %v9032_v42  ;;  %v7428_v46 = vpop.f32.mrb[19].mxu0 }
 0x3c3   :  { %8708 = vtanh.f32 %v953_v44 }
 0x3c4   :  { %v1045_v48 = vpop.f32.mrb[12].mxu1 }
 0x3c5   :  { %v1049_v50 = vadd.f32 %v1045_v48, %v9061_v8  ;;  %v7435_v51 = vpop.f32.mrb[13].mxu1 }
 0x3c7   :  { %8710 = vtanh.f32 %v1049_v50 }
 0x3c8   :  { %v1143_v54 = vpop.f32.mrb[20].mxu0 }
 0x3c9   :  { %v1147_v39 = vadd.f32 %v1143_v54, %v9063_v10  ;;  %v7446_v43 = vpop.f32.mrb[21].mxu0 }
 0x3cb   :  { %8712 = vtanh.f32 %v1147_v39 }
 0x3cd   :  { %v8709_v56 = vpop.eup %8708 }
 0x3ce   :  { %959 = vrot.lane.b32.xlu0 %v8709_v56, %s8881_s18  ;;  %v955_v42 = vmul.f32 0.5, %v8709_v56 }
 0x3d0   :  { %v956_v62 = vadd.f32 0.5, %v955_v42 }
 0x3d1   :  { %v8711_v58 = vpop.eup %8710 }
 0x3d2   :  { %1055 = vrot.lane.b32.xlu1 %v8711_v58, %s8881_s18  ;;  %v1051_v0 = vmul.f32 0.5, %v8711_v58  ;;  %v957_v13 = vmul.f32 %v956_v62, %v9083_v7 }
 0x3d4   :  { %v1052_v3 = vadd.f32 0.5, %v1051_v0 }
 0x3d5   :  { %v8713_v59 = vpop.eup %8712 }
 0x3d6   :  { %1153 = vrot.lane.b32.xlu0 %v8713_v59, %s8880_s17  ;;  %v1149_v10 = vmul.f32 0.5, %v8713_v59  ;;  %v1053_v22 = vmul.f32 %v1052_v3, %v9086_v16 }
 0x3d8   :  { %v1150_v9 = vadd.f32 0.5, %v1149_v10 }
 0x3da   :  { %v1151_v32 = vmul.f32 %v1150_v9, %v9088_v17 }
 0x440   :  { %v960_v8 = vpop.permute.xlu0 %959 }
 0x441   :  { %v962_v2 = vmul.f32 %v960_v8, %v956_v62 }
 0x443   :  { %964 = vrot.lane.b32.xlu1 %v962_v2, %s8882_s19 }
 0x444   :  { %v1056_v5 = vpop.permute.xlu1 %1055 }
 0x445   :  { %v1058_v6 = vmul.f32 %v1056_v5, %v1052_v3 }
 0x447   :  { %1060 = vrot.lane.b32.xlu0 %v1058_v6, %s8882_s19 }
 0x448   :  { %v1154_v11 = vpop.permute.xlu0 %1153 }
 0x449   :  { %v1156_v12 = vmul.f32 %v1154_v11, %v1150_v9 }
 0x44b   :  { %1158 = vrot.lane.b32.xlu1 %v1156_v12, %s8883_s20 }
 0x4b5   :  { %v965_v19 = vpop.permute.xlu1 %964 }
 0x4b6   :  { %v9136_v21 = vadd.f32 %v965_v19, %v957_v13 }
 0x4b8   :  { %8714 = vtanh.f32 %v9136_v21 }
 0x4b9   :  { %v1061_v23 = vpop.permute.xlu0 %1060 }
 0x4ba   :  { %v9140_v26 = vadd.f32 %v1061_v23, %v1053_v22 }
 0x4bc   :  { %8716 = vtanh.f32 %v9140_v26 }
 0x4bd   :  { %v1159_v37 = vpop.permute.xlu1 %1158 }
 0x4be   :  { %v9144_v38 = vadd.f32 %v1159_v37, %v1151_v32 }
 0x4c0   :  { %8718 = vtanh.f32 %v9144_v38 }
 0x4c2   :  { %v8715_v7 = vpop.eup %8714 }
 0x4c3   :  { %970 = vrot.lane.b32.xlu0 %v8715_v7, %s8883_s20 }
 0x4c6   :  { %v8717_v40 = vpop.eup %8716 }
 0x4c7   :  { %1066 = vrot.lane.b32.xlu1 %v8717_v40, %s8883_s20 }
 0x4ca   :  { %v8719_v41 = vpop.eup %8718 }
 0x4cb   :  { %1164 = vrot.lane.b32.xlu0 %v8719_v41, %s8880_s17 }
 0x535   :  { %v971_v16 = vpop.permute.xlu0 %970 }
 0x536   :  { %v9150_v44 = vmul.f32 %v971_v16, %v956_v62 }
 0x538   :  { %1176 = vrot.lane.b32.xlu1 %v9150_v44, %s8884_s21 }
 0x539   :  { %v1067_v17 = vpop.permute.xlu1 %1066 }
 0x53a   :  { %v9154_v46 = vmul.f32 %v1067_v17, %v1052_v3 }
 0x53c   :  { %1272 = vrot.lane.b32.xlu0 %v9154_v46, %s8884_s21 }
 0x53d   :  { %v1165_v48 = vpop.permute.xlu0 %1164 }
 0x53e   :  { %v9158_v50 = vmul.f32 %v1165_v48, %v1150_v9 }
 0x540   :  { %1370 = vrot.lane.b32.xlu1 %v9158_v50, %s8883_s20 }
 0x5aa   :  { %v1177_v51 = vpop.permute.xlu1 %1176 }
 0x5ab   :  { %7452 = vmatmul.mubr.msk.f32.vlgmr.msra.gmra.mrb[14].mxu1 %vm200_vm0, %v1177_v51 }
 0x5ac   :  { %8221 = vmatpush3.bf16.msra.mxu1 %v8946_v15  ;;  %7458 = vmatprep.mubr.msk.f32.mxu1 %vm8875_vm1, %v8876_v28 }
 0x5ad   :  { %8228 = vmatprep.subr.bf16.mxu1 %v8871_v14 }
 0x5ae   :  { %v1273_v54 = vpop.permute.xlu0 %1272 }
 0x5af   :  { %7459 = vmatmul.mubr.msk.f32.vlgmr.msra.gmra.mrb[16].mxu1 %vm200_vm0, %v1273_v54 }
 0x5b0   :  { %8230 = vmatpush3.bf16.msra.mxu1 %v8984_v27  ;;  %7476 = vmatprep.mubr.msk.f32.mxu1 %vm8875_vm1, %v8876_v28 }
 0x5b1   :  { %8231 = vmatprep.subr.bf16.mxu1 %v8871_v14 }
 0x5b2   :  { %v1371_v39 = vpop.permute.xlu1 %1370 }
 0x5b3   :  { %7470 = vmatmul.mubr.msk.f32.vlgmr.msra.gmra.mrb[22].mxu0 %vm777_vm2, %v1371_v39 }
 0x5b4   :  { %8236 = vmatpush3.bf16.msra.mxu0 %v8988_v29  ;;  %7494 = vmatprep.mubr.msk.f32.mxu0 %vm8875_vm1, %v8876_v28 }
 0x5b5   :  { %8237 = vmatprep.subr.bf16.mxu0 %v8871_v14 }
 0x5b8   :  { %8239 = vmatpush3.bf16.msra.mxu0 %v8997_v34 }
 0x5b9   :  { %8246 = vmatprep.subr.bf16.mxu0 %v8871_v14 }
 0x67e   :  { %v1246_v43 = vpop.f32.mrb[14].mxu1 }
 0x67f   :  { %v1250_v56 = vadd.f32 %v1246_v43, %v9040_v52  ;;  %v7453_v58 = vpop.f32.mrb[15].mxu1 }
 0x681   :  { %8720 = vtanh.f32 %v1250_v56  ;;  %v1070_v56 = vadd.f32 %v9150_v44, %v9095_v25 }
 0x682   :  { %v1342_v59 = vpop.f32.mrb[16].mxu1 }
 0x683   :  { %v1346_v42 = vadd.f32 %v1342_v59, %v9053_v61  ;;  %v7460_v62 = vpop.f32.mrb[17].mxu1 }
 0x685   :  { %8722 = vtanh.f32 %v1346_v42  ;;  %v1071_v42 = vadd.f32 %v9154_v46, %v9099_v31 }
 0x686   :  { %v1440_v0 = vpop.f32.mrb[22].mxu0 }
 0x687   :  { %v1444_v8 = vadd.f32 %v1440_v0, %v9067_v20  ;;  %v7471_v2 = vpop.f32.mrb[23].mxu0 }
 0x689   :  { %8724 = vtanh.f32 %v1444_v8 }
 0x68b   :  { %v8721_v3 = vpop.eup %8720 }
 0x68c   :  { %1256 = vrot.lane.b32.xlu0 %v8721_v3, %s8881_s18  ;;  %v1252_v52 = vmul.f32 0.5, %v8721_v3 }
 0x68e   :  { %v1253_v6 = vadd.f32 0.5, %v1252_v52 }
 0x68f   :  { %v8723_v10 = vpop.eup %8722 }
 0x690   :  { %1352 = vrot.lane.b32.xlu1 %v8723_v10, %s8881_s18  ;;  %v1348_v9 = vmul.f32 0.5, %v8723_v10  ;;  %v1254_v37 = vmul.f32 %v1253_v6, %v9136_v21 }
 0x692   :  { %v1349_v12 = vadd.f32 0.5, %v1348_v9 }
 0x693   :  { %v8725_v5 = vpop.eup %8724 }
 0x694   :  { %1450 = vrot.lane.b32.xlu0 %v8725_v5, %s8880_s17  ;;  %v1446_v20 = vmul.f32 0.5, %v8725_v5  ;;  %v1350_v41 = vmul.f32 %v1349_v12, %v9140_v26 }
 0x696   :  { %v1447_v22 = vadd.f32 0.5, %v1446_v20 }
 0x698   :  { %v1448_v48 = vmul.f32 %v1447_v22, %v9144_v38 }
 0x6fe   :  { %v1257_v61 = vpop.permute.xlu0 %1256 }
 0x6ff   :  { %v1259_v11 = vmul.f32 %v1257_v61, %v1253_v6 }
 0x701   :  { %1261 = vrot.lane.b32.xlu1 %v1259_v11, %s8882_s19 }
 0x702   :  { %v1353_v13 = vpop.permute.xlu1 %1352 }
 0x703   :  { %v1355_v19 = vmul.f32 %v1353_v13, %v1349_v12 }
 0x705   :  { %1357 = vrot.lane.b32.xlu0 %v1355_v19, %s8882_s19 }
 0x706   :  { %v1451_v23 = vpop.permute.xlu0 %1450 }
 0x707   :  { %v1453_v32 = vmul.f32 %v1451_v23, %v1447_v22 }
 0x709   :  { %1455 = vrot.lane.b32.xlu1 %v1453_v32, %s8883_s20 }
 0x773   :  { %v1262_v7 = vpop.permute.xlu1 %1261 }
 0x774   :  { %v9189_v40 = vadd.f32 %v1262_v7, %v1254_v37 }
 0x776   :  { %8726 = vtanh.f32 %v9189_v40 }
 0x777   :  { %v1358_v16 = vpop.permute.xlu0 %1357 }
 0x778   :  { %v9193_v17 = vadd.f32 %v1358_v16, %v1350_v41 }
 0x77a   :  { %8728 = vtanh.f32 %v9193_v17 }
 0x77b   :  { %v1456_v51 = vpop.permute.xlu1 %1455 }
 0x77c   :  { %v9197_v54 = vadd.f32 %v1456_v51, %v1448_v48 }
 0x77e   :  { %8730 = vtanh.f32 %v9197_v54 }
 0x780   :  { %v8727_v21 = vpop.eup %8726 }
 0x781   :  { %1267 = vrot.lane.b32.xlu0 %v8727_v21, %s8883_s20 }
 0x784   :  { %v8729_v39 = vpop.eup %8728 }
 0x785   :  { %1363 = vrot.lane.b32.xlu1 %v8729_v39, %s8883_s20 }
 0x788   :  { %v8731_v43 = vpop.eup %8730 }
 0x789   :  { %1461 = vrot.lane.b32.xlu0 %v8731_v43, %s8880_s17 }
 0x7f3   :  { %v1268_v26 = vpop.permute.xlu0 %1267 }
 0x7f4   :  { %v1270_v58 = vmul.f32 %v1268_v26, %v1253_v6 }
 0x7f6   :  { %v9205_v38 = vadd.f32 %v1270_v58, %v1070_v56  ;;  %1473 = vrot.lane.b32.xlu1 %v1270_v58, %s8884_s21 }
 0x7f7   :  { %v1364_v59 = vpop.permute.xlu1 %1363 }
 0x7f8   :  { %v1366_v62 = vmul.f32 %v1364_v59, %v1349_v12 }
 0x7fa   :  { %v9210_v0 = vadd.f32 %v1366_v62, %v1071_v42  ;;  %1569 = vrot.lane.b32.xlu0 %v1366_v62, %s8884_s21 }
 0x7fb   :  { %v1462_v8 = vpop.permute.xlu0 %1461 }
 0x7fc   :  { %v9213_v2 = vmul.f32 %v1462_v8, %v1447_v22 }
 0x7fe   :  { %1667 = vrot.lane.b32.xlu1 %v9213_v2, %s8883_s20 }
 0x868   :  { %v1474_v25 = vpop.permute.xlu1 %1473 }
 0x869   :  { %7477 = vmatmul.mubr.msk.f32.vlgmr.msra.gmra.mrb[18].mxu1 %vm200_vm0, %v1474_v25 }
 0x86a   :  { %8233 = vmatpush3.bf16.msra.mxu1 %v8946_v15  ;;  %7483 = vmatprep.mubr.msk.f32.mxu1 %vm8875_vm1, %v8876_v28 }
 0x86b   :  { %8240 = vmatprep.subr.bf16.mxu1 %v8871_v14 }
 0x86c   :  { %v1570_v31 = vpop.permute.xlu0 %1569 }
 0x86d   :  { %7484 = vmatmul.mubr.msk.f32.vlgmr.msra.gmra.mrb[20].mxu1 %vm200_vm0, %v1570_v31 }
 0x86e   :  { %8242 = vmatpush3.bf16.msra.mxu1 %v8984_v27  ;;  %7501 = vmatprep.mubr.msk.f32.mxu1 %vm8875_vm1, %v8876_v28 }
 0x86f   :  { %8243 = vmatprep.subr.bf16.mxu1 %v8871_v14 }
 0x870   :  { %v1668_v44 = vpop.permute.xlu1 %1667 }
 0x871   :  { %7495 = vmatmul.mubr.msk.f32.vlgmr.msra.gmra.mrb[24].mxu0 %vm777_vm2, %v1668_v44 }
 0x872   :  { %8248 = vmatpush3.bf16.msra.mxu0 %v8988_v29  ;;  %7519 = vmatprep.mubr.msk.f32.mxu0 %vm8875_vm1, %v8876_v28 }
 0x873   :  { %8249 = vmatprep.subr.bf16.mxu0 %v8871_v14 }
 0x876   :  { %8251 = vmatpush3.bf16.msra.mxu0 %v8997_v34 }
 0x877   :  { %8258 = vmatprep.subr.bf16.mxu0 %v8871_v14 }
 0x93c   :  { %v1543_v46 = vpop.f32.mrb[18].mxu1 }
 0x93d   :  { %v1547_v3 = vadd.f32 %v1543_v46, %v9038_v49  ;;  %v7478_v10 = vpop.f32.mrb[19].mxu1 }
 0x93f   :  { %8732 = vtanh.f32 %v1547_v3 }
 0x940   :  { %v1639_v5 = vpop.f32.mrb[20].mxu1 }
 0x941   :  { %v1643_v52 = vadd.f32 %v1639_v5, %v9055_v63  ;;  %v7485_v6 = vpop.f32.mrb[21].mxu1 }
 0x943   :  { %8734 = vtanh.f32 %v1643_v52 }
 0x944   :  { %v1737_v9 = vpop.f32.mrb[24].mxu0 }
 0x945   :  { %v1741_v61 = vadd.f32 %v1737_v9, %v9065_v18  ;;  %v7496_v11 = vpop.f32.mrb[25].mxu0 }
 0x947   :  { %8736 = vtanh.f32 %v1741_v61 }
 0x949   :  { %v8733_v12 = vpop.eup %8732 }
 0x94a   :  { %1553 = vrot.lane.b32.xlu0 %v8733_v12, %s8881_s18  ;;  %v1549_v49 = vmul.f32 0.5, %v8733_v12 }
 0x94c   :  { %v1550_v19 = vadd.f32 0.5, %v1549_v49 }
 0x94d   :  { %v8735_v20 = vpop.eup %8734 }
 0x94e   :  { %1649 = vrot.lane.b32.xlu1 %v8735_v20, %s8881_s18  ;;  %v1645_v22 = vmul.f32 0.5, %v8735_v20  ;;  %v1551_v51 = vmul.f32 %v1550_v19, %v9189_v40 }
 0x950   :  { %v1646_v32 = vadd.f32 0.5, %v1645_v22 }
 0x951   :  { %v8737_v13 = vpop.eup %8736 }
 0x952   :  { %1747 = vrot.lane.b32.xlu0 %v8737_v13, %s8880_s17  ;;  %v1743_v18 = vmul.f32 0.5, %v8737_v13  ;;  %v1647_v43 = vmul.f32 %v1646_v32, %v9193_v17 }
 0x954   :  { %v1744_v41 = vadd.f32 0.5, %v1743_v18 }
 0x956   :  { %v1745_v58 = vmul.f32 %v1744_v41, %v9197_v54 }
 0x9bc   :  { %v1554_v63 = vpop.permute.xlu0 %1553 }
 0x9bd   :  { %v1556_v23 = vmul.f32 %v1554_v63, %v1550_v19 }
 0x9bf   :  { %1558 = vrot.lane.b32.xlu1 %v1556_v23, %s8882_s19 }
 0x9c0   :  { %v1650_v37 = vpop.permute.xlu1 %1649 }
 0x9c1   :  { %v1652_v7 = vmul.f32 %v1650_v37, %v1646_v32 }
 0x9c3   :  { %1654 = vrot.lane.b32.xlu0 %v1652_v7, %s8882_s19 }
 0x9c4   :  { %v1748_v16 = vpop.permute.xlu0 %1747 }
 0x9c5   :  { %v1750_v48 = vmul.f32 %v1748_v16, %v1744_v41 }
 0x9c7   :  { %1752 = vrot.lane.b32.xlu1 %v1750_v48, %s8883_s20 }
 0xa31   :  { %v1559_v21 = vpop.permute.xlu1 %1558 }
 0xa32   :  { %v9244_v39 = vadd.f32 %v1559_v21, %v1551_v51 }
 0xa34   :  { %8738 = vtanh.f32 %v9244_v39 }
 0xa35   :  { %v1655_v26 = vpop.permute.xlu0 %1654 }
 0xa36   :  { %v9248_v56 = vadd.f32 %v1655_v26, %v1647_v43 }
 0xa38   :  { %8740 = vtanh.f32 %v9248_v56 }
 0xa39   :  { %v1753_v59 = vpop.permute.xlu1 %1752 }
 0xa3a   :  { %v9252_v42 = vadd.f32 %v1753_v59, %v1745_v58 }
 0xa3c   :  { %8742 = vtanh.f32 %v9252_v42 }
 0xa3e   :  { %v8739_v40 = vpop.eup %8738 }
 0xa3f   :  { %1564 = vrot.lane.b32.xlu0 %v8739_v40, %s8883_s20 }
 0xa42   :  { %v8741_v62 = vpop.eup %8740 }
 0xa43   :  { %1660 = vrot.lane.b32.xlu1 %v8741_v62, %s8883_s20 }
 0xa46   :  { %v8743_v8 = vpop.eup %8742 }
 0xa47   :  { %1758 = vrot.lane.b32.xlu0 %v8743_v8, %s8880_s17 }
 0xab1   :  { %v1565_v17 = vpop.permute.xlu0 %1564 }
 0xab2   :  { %v1567_v25 = vmul.f32 %v1565_v17, %v1550_v19 }
 0xab4   :  { %v9259_v31 = vadd.f32 %v1567_v25, %v9205_v38  ;;  %1770 = vrot.lane.b32.xlu1 %v1567_v25, %s8884_s21 }
 0xab5   :  { %v1661_v54 = vpop.permute.xlu1 %1660 }
 0xab6   :  { %v1663_v44 = vmul.f32 %v1661_v54, %v1646_v32 }
 0xab8   :  { %v9263_v46 = vadd.f32 %v1663_v44, %v9210_v0  ;;  %1866 = vrot.lane.b32.xlu0 %v1663_v44, %s8884_s21 }
 0xab9   :  { %v1759_v3 = vpop.permute.xlu0 %1758 }
 0xaba   :  { %v9266_v10 = vmul.f32 %v1759_v3, %v1744_v41 }
 0xabc   :  { %1964 = vrot.lane.b32.xlu1 %v9266_v10, %s8883_s20 }
 0xb26   :  { %v1771_v5 = vpop.permute.xlu1 %1770 }
 0xb27   :  { %7502 = vmatmul.mubr.msk.f32.vlgmr.msra.gmra.mrb[22].mxu1 %vm200_vm0, %v1771_v5 }
 0xb28   :  { %8245 = vmatpush3.bf16.msra.mxu1 %v8946_v15  ;;  %7508 = vmatprep.mubr.msk.f32.mxu1 %vm8875_vm1, %v8876_v28 }
 0xb29   :  { %8252 = vmatprep.subr.bf16.mxu1 %v8871_v14 }
 0xb2a   :  { %v1867_v38 = vpop.permute.xlu0 %1866 }
 0xb2b   :  { %7509 = vmatmul.mubr.msk.f32.vlgmr.msra.gmra.mrb[24].mxu1 %vm200_vm0, %v1867_v38 }
 0xb2c   :  { %8254 = vmatpush3.bf16.msra.mxu1 %v8984_v27  ;;  %7526 = vmatprep.mubr.msk.f32.mxu1 %vm8875_vm1, %v8876_v28 }
 0xb2d   :  { %8255 = vmatprep.subr.bf16.mxu1 %v8871_v14 }
 0xb2e   :  { %v1965_v0 = vpop.permute.xlu1 %1964 }
 0xb2f   :  { %7520 = vmatmul.mubr.msk.f32.vlgmr.msra.gmra.mrb[26].mxu0 %vm777_vm2, %v1965_v0 }
 0xb30   :  { %8260 = vmatpush3.bf16.msra.mxu0 %v8988_v29  ;;  %7544 = vmatprep.mubr.msk.f32.mxu0 %vm8875_vm1, %v8876_v28 }
 0xb31   :  { %8261 = vmatprep.subr.bf16.mxu0 %v8871_v14 }
 0xb34   :  { %8263 = vmatpush3.bf16.msra.mxu0 %v8997_v34 }
 0xb35   :  { %8270 = vmatprep.subr.bf16.mxu0 %v8871_v14 }
 0xbfa   :  { %v1840_v52 = vpop.f32.mrb[22].mxu1 }
 0xbfb   :  { %v1844_v6 = vadd.f32 %v1840_v52, %v9051_v60  ;;  %v7503_v9 = vpop.f32.mrb[23].mxu1 }
 0xbfd   :  { %8744 = vtanh.f32 %v1844_v6 }
 0xbfe   :  { %v1936_v61 = vpop.f32.mrb[24].mxu1 }
 0xbff   :  { %v1940_v11 = vadd.f32 %v1936_v61, %v9042_v53  ;;  %v7510_v12 = vpop.f32.mrb[25].mxu1 }
 0xc01   :  { %8746 = vtanh.f32 %v1940_v11 }
 0xc02   :  { %v2034_v20 = vpop.f32.mrb[26].mxu0 }
 0xc03   :  { %v2038_v13 = vadd.f32 %v2034_v20, %v9071_v30  ;;  %v7521_v49 = vpop.f32.mrb[27].mxu0 }
 0xc05   :  { %8748 = vtanh.f32 %v2038_v13 }
 0xc07   :  { %v8745_v19 = vpop.eup %8744 }
 0xc08   :  { %1850 = vrot.lane.b32.xlu0 %v8745_v19, %s8881_s18  ;;  %v1846_v60 = vmul.f32 0.5, %v8745_v19 }
 0xc0a   :  { %v1847_v23 = vadd.f32 0.5, %v1846_v60 }
 0xc0b   :  { %v8747_v22 = vpop.eup %8746 }
 0xc0c   :  { %1946 = vrot.lane.b32.xlu1 %v8747_v22, %s8881_s18  ;;  %v1942_v32 = vmul.f32 0.5, %v8747_v22  ;;  %v1848_v21 = vmul.f32 %v1847_v23, %v9244_v39 }
 0xc0e   :  { %v1943_v37 = vadd.f32 0.5, %v1942_v32 }
 0xc0f   :  { %v8749_v63 = vpop.eup %8748 }
 0xc10   :  { %2044 = vrot.lane.b32.xlu0 %v8749_v63, %s8880_s17  ;;  %v2040_v30 = vmul.f32 0.5, %v8749_v63  ;;  %v1944_v58 = vmul.f32 %v1943_v37, %v9248_v56 }
 0xc12   :  { %v2041_v16 = vadd.f32 0.5, %v2040_v30 }
 0xc14   :  { %v2042_v62 = vmul.f32 %v2041_v16, %v9252_v42 }
 0xc7a   :  { %v1851_v53 = vpop.permute.xlu0 %1850 }
 0xc7b   :  { %v1853_v18 = vmul.f32 %v1851_v53, %v1847_v23 }
 0xc7d   :  { %1855 = vrot.lane.b32.xlu1 %v1853_v18, %s8882_s19 }
 0xc7e   :  { %v1947_v7 = vpop.permute.xlu1 %1946 }
 0xc7f   :  { %v1949_v41 = vmul.f32 %v1947_v7, %v1943_v37 }
 0xc81   :  { %1951 = vrot.lane.b32.xlu0 %v1949_v41, %s8882_s19 }
 0xc82   :  { %v2045_v48 = vpop.permute.xlu0 %2044 }
 0xc83   :  { %v2047_v51 = vmul.f32 %v2045_v48, %v2041_v16 }
 0xc85   :  { %2049 = vrot.lane.b32.xlu1 %v2047_v51, %s8883_s20 }
 0xcef   :  { %v1856_v43 = vpop.permute.xlu1 %1855 }
 0xcf0   :  { %v9297_v26 = vadd.f32 %v1856_v43, %v1848_v21 }
 0xcf2   :  { %8750 = vtanh.f32 %v9297_v26 }
 0xcf3   :  { %v1952_v59 = vpop.permute.xlu0 %1951 }
 0xcf4   :  { %v9301_v40 = vadd.f32 %v1952_v59, %v1944_v58 }
 0xcf6   :  { %8752 = vtanh.f32 %v9301_v40 }
 0xcf7   :  { %v2050_v8 = vpop.permute.xlu1 %2049 }
 0xcf8   :  { %v9305_v17 = vadd.f32 %v2050_v8, %v2042_v62 }
 0xcfa   :  { %8754 = vtanh.f32 %v9305_v17 }
 0xcfc   :  { %v8751_v39 = vpop.eup %8750 }
 0xcfd   :  { %1861 = vrot.lane.b32.xlu0 %v8751_v39, %s8883_s20 }
 0xd00   :  { %v8753_v25 = vpop.eup %8752 }
 0xd01   :  { %1957 = vrot.lane.b32.xlu1 %v8753_v25, %s8883_s20 }
 0xd04   :  { %v8755_v54 = vpop.eup %8754 }
 0xd05   :  { %2055 = vrot.lane.b32.xlu0 %v8755_v54, %s8880_s17 }
 0xd6f   :  { %v1862_v56 = vpop.permute.xlu0 %1861 }
 0xd70   :  { %v1864_v44 = vmul.f32 %v1862_v56, %v1847_v23 }
 0xd72   :  { %v9312_v3 = vadd.f32 %v1864_v44, %v9259_v31  ;;  %2067 = vrot.lane.b32.xlu1 %v1864_v44, %s8884_s21 }
 0xd73   :  { %v1958_v42 = vpop.permute.xlu1 %1957 }
 0xd74   :  { %v1960_v5 = vmul.f32 %v1958_v42, %v1943_v37 }
 0xd76   :  { %v9316_v38 = vadd.f32 %v1960_v5, %v9263_v46  ;;  %2163 = vrot.lane.b32.xlu0 %v1960_v5, %s8884_s21 }
 0xd77   :  { %v2056_v0 = vpop.permute.xlu0 %2055 }
 0xd78   :  { %v9319_v52 = vmul.f32 %v2056_v0, %v2041_v16 }
 0xd7a   :  { %2261 = vrot.lane.b32.xlu1 %v9319_v52, %s8883_s20 }
 0xde4   :  { %v2068_v6 = vpop.permute.xlu1 %2067 }
 0xde5   :  { %7527 = vmatmul.mubr.msk.f32.vlgmr.msra.gmra.mrb[26].mxu1 %vm200_vm0, %v2068_v6 }
 0xde6   :  { %8257 = vmatpush3.bf16.msra.mxu1 %v8946_v15  ;;  %7533 = vmatprep.mubr.msk.f32.mxu1 %vm8875_vm1, %v8876_v28 }
 0xde7   :  { %8264 = vmatprep.subr.bf16.mxu1 %v8871_v14 }
 0xde8   :  { %v2164_v31 = vpop.permute.xlu0 %2163 }
 0xde9   :  { %7534 = vmatmul.mubr.msk.f32.vlgmr.msra.gmra.mrb[28].mxu1 %vm200_vm0, %v2164_v31 }
 0xdea   :  { %8266 = vmatpush3.bf16.msra.mxu1 %v8984_v27  ;;  %7551 = vmatprep.mubr.msk.f32.mxu1 %vm8875_vm1, %v8876_v28 }
 0xdeb   :  { %8267 = vmatprep.subr.bf16.mxu1 %v8871_v14 }
 0xdec   :  { %v2262_v46 = vpop.permute.xlu1 %2261 }
 0xded   :  { %7545 = vmatmul.mubr.msk.f32.vlgmr.msra.gmra.mrb[28].mxu0 %vm777_vm2, %v2262_v46 }
 0xdee   :  { %8272 = vmatpush3.bf16.msra.mxu0 %v8988_v29  ;;  %7569 = vmatprep.mubr.msk.f32.mxu0 %vm8875_vm1, %v8876_v28 }
 0xdef   :  { %8273 = vmatprep.subr.bf16.mxu0 %v8871_v14 }
 0xdf2   :  { %8275 = vmatpush3.bf16.msra.mxu0 %v8997_v34 }
 0xdf3   :  { %8282 = vmatprep.subr.bf16.mxu0 %v8871_v14 }
 0xeb8   :  { %v2137_v9 = vpop.f32.mrb[26].mxu1 }
 0xeb9   :  { %v2141_v61 = vadd.f32 %v2137_v9, %v9049_v57  ;;  %v7528_v11 = vpop.f32.mrb[27].mxu1 }
 0xebb   :  { %8756 = vtanh.f32 %v2141_v61 }
 0xebc   :  { %v2233_v12 = vpop.f32.mrb[28].mxu1 }
 0xebd   :  { %v2237_v20 = vadd.f32 %v2233_v12, %v9047_v55  ;;  %v7535_v13 = vpop.f32.mrb[29].mxu1 }
 0xebf   :  { %8758 = vtanh.f32 %v2237_v20 }
 0xec0   :  { %v2331_v49 = vpop.f32.mrb[28].mxu0 }
 0xec1   :  { %v2335_v19 = vadd.f32 %v2331_v49, %v9069_v24  ;;  %v7546_v22 = vpop.f32.mrb[29].mxu0 }
 0xec3   :  { %8760 = vtanh.f32 %v2335_v19 }
 0xec5   :  { %v8757_v63 = vpop.eup %8756 }
 0xec6   :  { %2147 = vrot.lane.b32.xlu0 %v8757_v63, %s8881_s18  ;;  %v2143_v57 = vmul.f32 0.5, %v8757_v63 }
 0xec8   :  { %v2144_v32 = vadd.f32 0.5, %v2143_v57 }
 0xec9   :  { %v8759_v60 = vpop.eup %8758 }
 0xeca   :  { %2243 = vrot.lane.b32.xlu1 %v8759_v60, %s8881_s18  ;;  %v2239_v53 = vmul.f32 0.5, %v8759_v60  ;;  %v2145_v51 = vmul.f32 %v2144_v32, %v9297_v26 }
 0xecc   :  { %v2240_v37 = vadd.f32 0.5, %v2239_v53 }
 0xecd   :  { %v8761_v23 = vpop.eup %8760 }
 0xece   :  { %2341 = vrot.lane.b32.xlu0 %v8761_v23, %s8880_s17  ;;  %v2337_v24 = vmul.f32 0.5, %v8761_v23  ;;  %v2241_v58 = vmul.f32 %v2240_v37, %v9301_v40 }
 0xed0   :  { %v2338_v41 = vadd.f32 0.5, %v2337_v24 }
 0xed2   :  { %v2339_v8 = vmul.f32 %v2338_v41, %v9305_v17 }
 0xf38   :  { %v2148_v55 = vpop.permute.xlu0 %2147 }
 0xf39   :  { %v2150_v18 = vmul.f32 %v2148_v55, %v2144_v32 }
 0xf3b   :  { %2152 = vrot.lane.b32.xlu1 %v2150_v18, %s8882_s19 }
 0xf3c   :  { %v2244_v30 = vpop.permute.xlu1 %2243 }
 0xf3d   :  { %v2246_v7 = vmul.f32 %v2244_v30, %v2240_v37 }
 0xf3f   :  { %2248 = vrot.lane.b32.xlu0 %v2246_v7, %s8882_s19 }
 0xf40   :  { %v2342_v16 = vpop.permute.xlu0 %2341 }
 0xf41   :  { %v2344_v48 = vmul.f32 %v2342_v16, %v2338_v41 }
 0xf43   :  { %2346 = vrot.lane.b32.xlu1 %v2344_v48, %s8883_s20 }
 0xfad   :  { %v2153_v21 = vpop.permute.xlu1 %2152 }
 0xfae   :  { %v9350_v43 = vadd.f32 %v2153_v21, %v2145_v51 }
 0xfb0   :  { %8762 = vtanh.f32 %v9350_v43 }
 0xfb1   :  { %v2249_v59 = vpop.permute.xlu0 %2248 }
 0xfb2   :  { %v9354_v62 = vadd.f32 %v2249_v59, %v2241_v58 }
 0xfb4   :  { %8764 = vtanh.f32 %v9354_v62 }
 0xfb5   :  { %v2347_v39 = vpop.permute.xlu1 %2346 }
 0xfb6   :  { %v9358_v25 = vadd.f32 %v2347_v39, %v2339_v8 }
 0xfb8   :  { %8766 = vtanh.f32 %v9358_v25 }
 0xfba   :  { %v8763_v26 = vpop.eup %8762 }
 0xfbb   :  { %2158 = vrot.lane.b32.xlu0 %v8763_v26, %s8883_s20 }
 0xfbe   :  { %v8765_v54 = vpop.eup %8764 }
 0xfbf   :  { %2254 = vrot.lane.b32.xlu1 %v8765_v54, %s8883_s20 }
 0xfc2   :  { %v8767_v56 = vpop.eup %8766 }
 0xfc3   :  { %2352 = vrot.lane.b32.xlu0 %v8767_v56, %s8880_s17 }
0x102d   :  { %v2159_v40 = vpop.permute.xlu0 %2158 }
0x102e   :  { %v2161_v44 = vmul.f32 %v2159_v40, %v2144_v32 }
0x1030   :  { %v9365_v42 = vadd.f32 %v2161_v44, %v9312_v3  ;;  %2364 = vrot.lane.b32.xlu1 %v2161_v44, %s8884_s21 }
0x1031   :  { %v2255_v17 = vpop.permute.xlu1 %2254 }
0x1032   :  { %v2257_v5 = vmul.f32 %v2255_v17, %v2240_v37 }
0x1034   :  { %v9369_v0 = vadd.f32 %v2257_v5, %v9316_v38  ;;  %2460 = vrot.lane.b32.xlu0 %v2257_v5, %s8884_s21 }
0x1035   :  { %v2353_v6 = vpop.permute.xlu0 %2352 }
0x1036   :  { %v9372_v31 = vmul.f32 %v2353_v6, %v2338_v41 }
0x1038   :  { %2558 = vrot.lane.b32.xlu1 %v9372_v31, %s8883_s20 }
0x10a2   :  { %v2365_v46 = vpop.permute.xlu1 %2364 }
0x10a3   :  { %7552 = vmatmul.mubr.msk.f32.vlgmr.msra.gmra.mrb[30].mxu1 %vm200_vm0, %v2365_v46 }
0x10a4   :  { %8269 = vmatpush3.bf16.msra.mxu1 %v8946_v15  ;;  %7558 = vmatprep.mubr.msk.f32.mxu1 %vm8875_vm1, %v8876_v28 }
0x10a5   :  { %8276 = vmatprep.subr.bf16.mxu1 %v8871_v14 }
0x10a6   :  { %v2461_v3 = vpop.permute.xlu0 %2460 }
0x10a7   :  { %7559 = vmatmul.mubr.msk.f32.vlgmr.msra.gmra.mrb[32].mxu1 %vm200_vm0, %v2461_v3 }
0x10a8   :  { %8278 = vmatpush3.bf16.msra.mxu1 %v8984_v27  ;;  %7576 = vmatprep.mubr.msk.f32.mxu1 %vm8875_vm1, %v8876_v28 }
0x10a9   :  { %8279 = vmatprep.subr.bf16.mxu1 %v8871_v14 }
0x10aa   :  { %v2559_v38 = vpop.permute.xlu1 %2558 }
0x10ab   :  { %7570 = vmatmul.mubr.msk.f32.vlgmr.msra.gmra.mrb[30].mxu0 %vm777_vm2, %v2559_v38 }
0x10ac   :  { %8284 = vmatpush3.bf16.msra.mxu0 %v8988_v29  ;;  %7594 = vmatprep.mubr.msk.f32.mxu0 %vm8875_vm1, %v8876_v28 }
0x10ad   :  { %8285 = vmatprep.subr.bf16.mxu0 %v8871_v14 }
0x10b0   :  { %8287 = vmatpush3.bf16.msra.mxu0 %v8997_v34 }
0x10b1   :  { %8310 = vmatprep.subr.bf16.mxu0 %v8871_v14 }
0x1176   :  { %v2434_v27 = vpop.f32.mrb[30].mxu1 }
0x1177   :  { %v2438_v9 = vadd.f32 %v2434_v27, %v9059_v4  ;;  %v7553_v61 = vpop.f32.mrb[31].mxu1 }
0x1179   :  { %8768 = vtanh.f32 %v2438_v9 }
0x117a   :  { %v2530_v11 = vpop.f32.mrb[32].mxu1 }
0x117b   :  { %v2534_v12 = vadd.f32 %v2530_v11, %v9034_v45  ;;  %v7560_v20 = vpop.f32.mrb[33].mxu1  ;;  %v8885_v11 = vmov 0  }
0x117c   :  { %8694 = vset.pattern.permute.xlu0 %v8885_v11  ;;  %8695 = vset.pattern.permute.xlu1 %v8885_v11 }
0x117d   :  { %8770 = vtanh.f32 %v2534_v12 }
0x117e   :  { %v2628_v29 = vpop.f32.mrb[30].mxu0 }
0x117f   :  { %v2632_v13 = vadd.f32 %v2628_v29, %v9075_v36  ;;  %v7571_v49 = vpop.f32.mrb[31].mxu0 }
0x1181   :  { %8772 = vtanh.f32 %v2632_v13  ;;  %v2968_v13 = vld [vmem:[%s6815_s29] sm:$0xff]  ;;  %s8894_s29 = smov 18  }
0x1182   :  { %s6831_s2 = sld [smem:[%s10112_s0 + %s8894_s29]]   ;;  %s8900_s29 = smov 33  }
0x1183   :  { %v8769_v19 = vpop.eup %8768 }
0x1184   :  { %2444 = vrot.lane.b32.xlu0 %v8769_v19, %s8881_s18  ;;  %v2440_v4 = vmul.f32 0.5, %v8769_v19 }
0x1186   :  { %v2441_v63 = vadd.f32 0.5, %v2440_v4 }
0x1187   :  { %v8771_v34 = vpop.eup %8770 }
0x1188   :  { %2540 = vrot.lane.b32.xlu1 %v8771_v34, %s8881_s18  ;;  %v2536_v60 = vmul.f32 0.5, %v8771_v34  ;;  %v2442_v24 = vmul.f32 %v2441_v63, %v9350_v43 }
0x118a   :  { %v2537_v57 = vadd.f32 0.5, %v2536_v60 }
0x118b   :  { %v8773_v22 = vpop.eup %8772 }
0x118c   :  { %2638 = vrot.lane.b32.xlu0 %v8773_v22, %s8880_s17  ;;  %v2634_v36 = vmul.f32 0.5, %v8773_v22  ;;  %v2538_v41 = vmul.f32 %v2537_v57, %v9354_v62 }
0x118e   :  { %v2635_v55 = vadd.f32 0.5, %v2634_v36 }
0x1190   :  { %v2636_v51 = vmul.f32 %v2635_v55, %v9358_v25 }
0x11f6   :  { %v2445_v45 = vpop.permute.xlu0 %2444 }
0x11f7   :  { %v2447_v23 = vmul.f32 %v2445_v45, %v2441_v63 }
0x11f9   :  { %2449 = vrot.lane.b32.xlu1 %v2447_v23, %s8882_s19 }
0x11fa   :  { %v2541_v32 = vpop.permute.xlu1 %2540 }
0x11fb   :  { %v2543_v53 = vmul.f32 %v2541_v32, %v2537_v57  ;;  %v183_v32 = vld [vmem:[%s6816_s3] sm:$0xff] }
0x11fd   :  { %2545 = vrot.lane.b32.xlu0 %v2543_v53, %s8882_s19 }
0x11fe   :  { %v2639_v18 = vpop.permute.xlu0 %2638 }
0x11ff   :  { %v2641_v37 = vmul.f32 %v2639_v18, %v2635_v55  ;;  %v186_v18 = vld [vmem:[%s6816_s3 + $0x18] sm:$0xff] }
0x1201   :  { %2643 = vrot.lane.b32.xlu1 %v2641_v37, %s8883_s20  ;;  %v185_v37 = vld [vmem:[%s6816_s3 + $0x10] sm:$0xff] }
0x126b   :  { %v2450_v30 = vpop.permute.xlu1 %2449 }
0x126c   :  { %v9403_v7 = vadd.f32 %v2450_v30, %v2442_v24  ;;  %v188_v24 = vld [vmem:[%s6816_s3 + $0x28] sm:$0xff]  ;;  %v187_v30 = vld [vmem:[%s6816_s3 + $0x20] sm:$0xff] }
0x126e   :  { %8774 = vtanh.f32 %v9403_v7 }
0x126f   :  { %v2546_v16 = vpop.permute.xlu0 %2545 }
0x1270   :  { %v9407_v48 = vadd.f32 %v2546_v16, %v2538_v41  ;;  %v190_v41 = vld [vmem:[%s6816_s3 + $0x38] sm:$0xff]  ;;  %v189_v16 = vld [vmem:[%s6816_s3 + $0x30] sm:$0xff] }
0x1272   :  { %8776 = vtanh.f32 %v9407_v48 }
0x1273   :  { %v2644_v21 = vpop.permute.xlu1 %2643 }
0x1274   :  { %v9411_v58 = vadd.f32 %v2644_v21, %v2636_v51 }
0x1276   :  { %8778 = vtanh.f32 %v9411_v58 }
0x1278   :  { %v8775_v43 = vpop.eup %8774 }
0x1279   :  { %2455 = vrot.lane.b32.xlu0 %v8775_v43, %s8883_s20 }
0x127c   :  { %v8777_v59 = vpop.eup %8776 }
0x127d   :  { %2551 = vrot.lane.b32.xlu1 %v8777_v59, %s8883_s20 }
0x1280   :  { %v8779_v8 = vpop.eup %8778 }
0x1281   :  { %2649 = vrot.lane.b32.xlu0 %v8779_v8, %s8880_s17 }
0x12eb   :  { %v2456_v62 = vpop.permute.xlu0 %2455 }
0x12ec   :  { %v2458_v39 = vmul.f32 %v2456_v62, %v2441_v63 }
0x12ee   :  { %v9418_v26 = vadd.f32 %v2458_v39, %v9365_v42  ;;  %2661 = vrot.lane.b32.xlu1 %v2458_v39, %s8884_s21 }
0x12ef   :  { %v2552_v25 = vpop.permute.xlu1 %2551 }
0x12f0   :  { %v2554_v54 = vmul.f32 %v2552_v25, %v2537_v57 }
0x12f2   :  { %v9422_v56 = vadd.f32 %v2554_v54, %v9369_v0  ;;  %2757 = vrot.lane.b32.xlu0 %v2554_v54, %s8884_s21 }
0x12f3   :  { %v2650_v40 = vpop.permute.xlu0 %2649 }
0x12f4   :  { %v9425_v44 = vmul.f32 %v2650_v40, %v2635_v55  ;;  %v184_v55 = vld [vmem:[%s6816_s3 + $0x8] sm:$0xff]  ;;  %s8895_s3 = smov 27  }
0x12f5   :  { %s6840_s6 = sld [smem:[%s10112_s0 + %s8895_s3]]   ;;  %s8901_s3 = smov 35  }
0x12f6   :  { %2855 = vrot.lane.b32.xlu1 %v9425_v44, %s8883_s20 }
0x1360   :  { %v2662_v17 = vpop.permute.xlu1 %2661 }
0x1361   :  { %7577 = vmatmul.mubr.msk.f32.vlgmr.msra.gmra.mrb[34].mxu1 %vm200_vm0, %v2662_v17 }
0x1362   :  { %8281 = vmatpush3.bf16.msra.mxu1 %v8946_v15  ;;  %7583 = vmatprep.mubr.msk.f32.mxu1 %vm8875_vm1, %v8876_v28 }
0x1363   :  { %8288 = vmatprep.subr.bf16.mxu1 %v8871_v14 }
0x1364   :  { %v2758_v42 = vpop.permute.xlu0 %2757 }
0x1365   :  { %7584 = vmatmul.mubr.msk.f32.vlgmr.msra.gmra.mrb[36].mxu1 %vm200_vm0, %v2758_v42 }
0x1366   :  { %7601 = vmatprep.mubr.msk.f32.mxu1 %vm8875_vm1, %v8876_v28 }
0x1368   :  { %v2856_v5 = vpop.permute.xlu1 %2855 }
0x1369   :  { %7595 = vmatmul.mubr.msk.f32.vlgmr.msra.gmra.mrb[32].mxu0 %vm777_vm2, %v2856_v5  ;;  %v3068_v5 = vld [vmem:[%s9483_s7 + $0x8] sm:$0xff] }
0x136a   :  { %7643 = vmatprep.mubr.msk.f32.mxu0 %vm8875_vm1, %v8876_v28 }
0x1434   :  { %v2731_v0 = vpop.f32.mrb[34].mxu1 }
0x1435   :  { %v2735_v15 = vadd.f32 %v2731_v0, %v9057_v1  ;;  %v7578_v6 = vpop.f32.mrb[35].mxu1  ;;  %v3069_v0 = vld [vmem:[%s9483_s7 + $0x10] sm:$0xff] }
0x1436   :  { %v3070_v6 = vld [vmem:[%s9483_s7 + $0x18] sm:$0xff] }
0x1437   :  { %8780 = vtanh.f32 %v2735_v15 }
0x1438   :  { %v2827_v46 = vpop.f32.mrb[36].mxu1 }
0x1439   :  { %v2831_v3 = vadd.f32 %v2827_v46, %v9036_v47  ;;  %v7585_v38 = vpop.f32.mrb[37].mxu1  ;;  %v2969_v47 = vld [vmem:[%s6826_s25] sm:$0xff]  ;;  %v8296_v46 = vpack.c.bf16 %v3070_v6, %v3069_v0  ;;  %v3164_v0 = vld [vmem:[%s6830_s16 + $0x18] sm:$0xff] }
0x143a   :  { %v3072_v38 = vld [vmem:[%s9483_s7 + $0x28] sm:$0xff]  ;;  %v3165_v6 = vld [vmem:[%s6830_s16 + $0x20] sm:$0xff] }
0x143b   :  { %8782 = vtanh.f32 %v2831_v3  ;;  %v3071_v3 = vld [vmem:[%s9483_s7 + $0x20] sm:$0xff] }
0x143c   :  { %v2925_v27 = vpop.f32.mrb[32].mxu0 }
0x143d   :  { %v2929_v9 = vadd.f32 %v2925_v27, %v9073_v33  ;;  %v7596_v61 = vpop.f32.mrb[33].mxu0  ;;  %v2970_v33 = vld [vmem:[%s6826_s25 + $0x8] sm:$0x7f]  ;;  %v8299_v27 = vpack.c.bf16 %v3072_v38, %v3071_v3  ;;  %v6906_v38 = vld [vmem:[%s6829_s24] ss:$0 sm:$0xff]  ;;  %s8893_s25 = smov 19  }
0x143e   :  { %v8289_v29 = vpack.c.bf16 %v2970_v33, %v2969_v47  ;;  %v3074_v61 = vld [vmem:[%s9483_s7 + $0x38] sm:$0xff]  ;;  %s6832_s28 = sld [smem:[%s10112_s0 + %s8893_s25]]   ;;  %s8899_s25 = smov 30  }
0x143f   :  { %8784 = vtanh.f32 %v2929_v9  ;;  %v3073_v9 = vld [vmem:[%s9483_s7 + $0x30] sm:$0xff] }
0x1440   :  { %8291 = vmatpush3.bf16.msk.msra.mxu1 %vm8290_vm5, %v8289_v29  ;;  %v8302_v11 = vpack.c.bf16 %v3074_v61, %v3073_v9 }
0x1441   :  { %v8781_v12 = vpop.eup %8780  ;;  %8292 = vmatprep.subr.bf16.mxu1 %v8871_v14 }
0x1442   :  { %2741 = vrot.lane.b32.xlu0 %v8781_v12, %s8881_s18  ;;  %v2737_v49 = vmul.f32 0.5, %v8781_v12 }
0x1443   :  { %7602 = vmatmul.mubr.msk.f32.vlgmr.msra.gmra.mrb[38].mxu1 %vm2978_vm6, %v2968_v13 }
0x1444   :  { %7628 = vmatprep.mubr.msk.f32.mxu1 %vm8875_vm1, %v8876_v28  ;;  %v9455_v19 = vadd.f32 0.5, %v2737_v49 }
0x1445   :  { %v8783_v20 = vpop.eup %8782 }
0x1446   :  { %2837 = vrot.lane.b32.xlu1 %v8783_v20, %s8881_s18  ;;  %v2833_v34 = vmul.f32 0.5, %v8783_v20  ;;  %v2739_v51 = vmul.f32 %v9455_v19, %v9403_v7 }
0x1448   :  { %v9462_v63 = vadd.f32 0.5, %v2833_v34 }
0x1449   :  { %v8785_v1 = vpop.eup %8784 }
0x144a   :  { %2935 = vrot.lane.b32.xlu0 %v8785_v1, %s8880_s17  ;;  %v2931_v60 = vmul.f32 0.5, %v8785_v1  ;;  %v2835_v59 = vmul.f32 %v9462_v63, %v9407_v48 }
0x144c   :  { %v9466_v57 = vadd.f32 0.5, %v2931_v60 }
0x144e   :  { %v2933_v39 = vmul.f32 %v9466_v57, %v9411_v58  ;;  %v3067_v58 = vld [vmem:[%s9483_s7] sm:$0xff] }
0x144f   :  { %v8293_v15 = vpack.c.bf16 %v3068_v5, %v3067_v58  ;;  %v3163_v5 = vld [vmem:[%s6830_s16 + $0x10] sm:$0xff] }
0x1451   :  { %8294 = vmatpush3.bf16.msra.mxu1 %v8293_v15  ;;  %v8314_v15 = vpack.c.bf16 %v3164_v0, %v3163_v5 }
0x1452   :  { %8295 = vmatprep.subr.bf16.mxu1 %v8871_v14 }
0x1455   :  { %8297 = vmatpush3.bf16.msra.mxu1 %v8296_v46  ;;  %v3166_v46 = vld [vmem:[%s6830_s16 + $0x28] sm:$0xff] }
0x1456   :  { %8298 = vmatprep.subr.bf16.mxu1 %v8871_v14  ;;  %v8317_v3 = vpack.c.bf16 %v3166_v46, %v3165_v6 }
0x1459   :  { %8300 = vmatpush3.bf16.msra.mxu1 %v8299_v27 }
0x145a   :  { %8301 = vmatprep.subr.bf16.mxu1 %v8871_v14 }
0x145d   :  { %8303 = vmatpush3.bf16.msra.mxu1 %v8302_v11 }
0x145e   :  { %8304 = vmatprep.subr.bf16.mxu1 %v8871_v14 }
0x14b4   :  { %v2742_v22 = vpop.permute.xlu0 %2741 }
0x14b5   :  { %v2744_v4 = vmul.f32 %v2742_v22, %v9455_v19  ;;  %v3075_v22 = vld [vmem:[%s9483_s7 + $0x40] sm:$0xff] }
0x14b7   :  { %2746 = vrot.lane.b32.xlu1 %v2744_v4, %s8882_s19  ;;  %v3076_v4 = vld [vmem:[%s9483_s7 + $0x48] sm:$0xff] }
0x14b8   :  { %v2838_v45 = vpop.permute.xlu1 %2837  ;;  %v8305_v60 = vpack.c.bf16 %v3076_v4, %v3075_v22 }
0x14b9   :  { %v2840_v23 = vmul.f32 %v2838_v45, %v9462_v63 }
0x14ba   :  { %8306 = vmatpush3.bf16.msra.mxu1 %v8305_v60  ;;  %v3343_v60 = vld [vmem:[%s6840_s6] sm:$0xff] }
0x14bb   :  { %2842 = vrot.lane.b32.xlu0 %v2840_v23, %s8882_s19  ;;  %8307 = vmatprep.subr.bf16.mxu1 %v8871_v14 }
0x14bc   :  { %v2936_v36 = vpop.permute.xlu0 %2935 }
0x14bd   :  { %v2938_v53 = vmul.f32 %v2936_v36, %v9466_v57 }
0x14bf   :  { %2940 = vrot.lane.b32.xlu1 %v2938_v53, %s8883_s20  ;;  %873 = vperm.xlu0 %8694, %v183_v32   ;;  %v3078_v53 = vld [vmem:[%s9483_s7 + $0x58] sm:$0xff] }
0x14c3   :  { %1170 = vperm.xlu1 %8695, %v184_v55   ;;  %1764 = vperm.xlu0 %8694, %v186_v18  }
0x14c7   :  { %1467 = vperm.xlu1 %8695, %v185_v37   ;;  %2358 = vperm.xlu0 %8694, %v188_v24  }
0x14cb   :  { %2061 = vperm.xlu1 %8695, %v187_v30   ;;  %2952 = vperm.xlu0 %8694, %v190_v41  }
0x14cf   :  { %2655 = vperm.xlu1 %8695, %v189_v16  }
0x1516   :  { %v9476_v17 = vpop.f32.mrb[38].mxu1 }
0x1517   :  { %v7603_v7 = vpop.f32.mrb[39].mxu1 }
0x1529   :  { %v2747_v21 = vpop.permute.xlu1 %2746 }
0x152a   :  { %v2749_v43 = vadd.f32 %v2747_v21, %v2739_v51 }
0x152c   :  { %8786 = vtanh.f32 %v2749_v43 }
0x152d   :  { %v2843_v8 = vpop.permute.xlu0 %2842 }
0x152e   :  { %v2845_v62 = vadd.f32 %v2843_v8, %v2835_v59  ;;  %v6903_v8 = vld [vmem:[%s6827_s11] ss:$0 sm:$0xff]  ;;  %s8897_s11 = smov 40  }
0x152f   :  { %s6853_s15 = sld [smem:[%s10112_s0 + %s8897_s11]]   ;;  %s8903_s11 = smov 37  }
0x1530   :  { %8788 = vtanh.f32 %v2845_v62 }
0x1531   :  { %v2941_v25 = vpop.permute.xlu1 %2940 }
0x1532   :  { %v2943_v54 = vadd.f32 %v2941_v25, %v2933_v39 }
0x1534   :  { %8790 = vtanh.f32 %v2943_v54  ;;  %v3053_v54 = vadd.f32 %v6903_v8, %v9476_v17 }
0x1536   :  { %v8787_v40 = vpop.eup %8786 }
0x1537   :  { %2752 = vrot.lane.b32.xlu1 %v8787_v40, %s8883_s20 }
0x153a   :  { %v8789_v42 = vpop.eup %8788 }
0x153b   :  { %2848 = vrot.lane.b32.xlu0 %v8789_v42, %s8883_s20  ;;  %v3161_v42 = vld [vmem:[%s6830_s16] sm:$0xff] }
0x153e   :  { %v8791_v48 = vpop.eup %8790  ;;  %v874_v20 = vpop.permute.xlu0 %873 }
0x153f   :  { %2946 = vrot.lane.b32.xlu1 %v8791_v48, %s8880_s17  ;;  %v876_v13 = vmul.f32 %v874_v20, %v9101_v35  ;;  %v3162_v48 = vld [vmem:[%s6830_s16 + $0x8] sm:$0xff]  ;;  %s8898_s16 = smov 28  }
0x1540   :  { %v8311_v58 = vpack.c.bf16 %v3162_v48, %v3161_v42  ;;  %v3250_v20 = vld [vmem:[%s6832_s28 + $0x8] sm:$0xff]  ;;  %s6841_s24 = sld [smem:[%s10112_s0 + %s8898_s16]]   ;;  %s8904_s16 = smov 31  }
0x1542   :  { %v1171_v12 = vpop.permute.xlu1 %1170  ;;  %v1765_v33 = vpop.permute.xlu0 %1764  ;;  %8312 = vmatpush3.bf16.msra.mxu0 %v8311_v58 }
0x1543   :  { %v1173_v47 = vmul.f32 %v1171_v12, %v9158_v50  ;;  %v1767_v32 = vmul.f32 %v1765_v33, %v9266_v10  ;;  %v3077_v50 = vld [vmem:[%s9483_s7 + $0x50] sm:$0xff]  ;;  %8313 = vmatprep.subr.bf16.mxu0 %v8871_v14  ;;  %v3249_v12 = vld [vmem:[%s6832_s28] sm:$0xff]  ;;  %v3252_v33 = vld [vmem:[%s6832_s28 + $0x18] sm:$0xff]  ;;  %s8896_s7 = smov 20  }
0x1544   :  { %v8308_v35 = vpack.c.bf16 %v3078_v53, %v3077_v50  ;;  %v3347_v53 = vld [vmem:[%s6840_s6 + $0x20] sm:$0xff]  ;;  %s6833_s10 = sld [smem:[%s10112_s0 + %s8896_s7]]   ;;  %s8902_s7 = smov 34  }
0x1545   :  { %v1174_v34 = vadd.f32 %v1173_v47, %v876_v13  ;;  %v8320_v47 = vpack.c.bf16 %v3250_v20, %v3249_v12  ;;  %v6908_v13 = vld [vmem:[%s6831_s2] ss:$0 sm:$0xff]  ;;  %s6846_s2 = sld [smem:[%s10112_s0 + %s8900_s29]]   ;;  %s8906_s29 = smov 29  }
0x1546   :  { %v1468_v1 = vpop.permute.xlu1 %1467  ;;  %v2359_v23 = vpop.permute.xlu0 %2358  ;;  %8309 = vmatpush3.bf16.msra.mxu1 %v8308_v35  ;;  %8315 = vmatpush3.bf16.msra.mxu0 %v8314_v15  ;;  %v3349_v35 = vld [vmem:[%s6840_s6 + $0x30] sm:$0xff] }
0x1547   :  { %v1470_v49 = vmul.f32 %v1468_v1, %v9213_v2  ;;  %8340 = vmatprep.subr.bf16.mxu1 %v8871_v14  ;;  %v2361_v16 = vmul.f32 %v2359_v23, %v9372_v31  ;;  %8316 = vmatprep.subr.bf16.mxu0 %v8871_v14  ;;  %v3251_v1 = vld [vmem:[%s6832_s28 + $0x10] sm:$0xff]  ;;  %s6843_s28 = sld [smem:[%s10112_s0 + %s8899_s25]]   ;;  %s8905_s25 = smov 36  }
0x1548   :  { %v3345_v23 = vld [vmem:[%s6840_s6 + $0x10] sm:$0xff] }
0x1549   :  { %v1471_v45 = vadd.f32 %v1470_v49, %v1174_v34 }
0x154a   :  { %v2062_v29 = vpop.permute.xlu1 %2061  ;;  %v2953_v37 = vpop.permute.xlu0 %2952  ;;  %8318 = vmatpush3.bf16.msra.mxu0 %v8317_v3 }
0x154b   :  { %v1768_v55 = vadd.f32 %v1767_v32, %v1471_v45  ;;  %v2064_v18 = vmul.f32 %v2062_v29, %v9319_v52  ;;  %8319 = vmatprep.subr.bf16.mxu0 %v8871_v14  ;;  %v8323_v29 = vpack.c.bf16 %v3252_v33, %v3251_v1  ;;  %v3344_v45 = vld [vmem:[%s6840_s6 + $0x8] sm:$0xff]  ;;  %v3346_v32 = vld [vmem:[%s6840_s6 + $0x18] sm:$0xff]  ;;  %v3522_v42 = vld [vmem:[%s6846_s2] sm:$0xff] }
0x154c   :  { %v8329_v50 = vpack.c.bf16 %v3346_v32, %v3345_v23  ;;  %v3523_v48 = vld [vmem:[%s6846_s2 + $0x8] sm:$0xff]  ;;  %v3524_v58 = vld [vmem:[%s6846_s2 + $0x10] sm:$0xff]  ;;  %v3525_v0 = vld [vmem:[%s6846_s2 + $0x18] sm:$0xff]  ;;  %s6842_s2 = sld [smem:[%s10112_s0 + %s8906_s29]]  }
0x154d   :  { %v2065_v10 = vadd.f32 %v2064_v18, %v1768_v55  ;;  %v3348_v55 = vld [vmem:[%s6840_s6 + $0x28] sm:$0xff]  ;;  %v9604_v5 = vpack.c.bf16 %v3523_v48, %v3522_v42  ;;  %v9607_v6 = vpack.c.bf16 %v3525_v0, %v3524_v58 }
0x154e   :  { %v2656_v36 = vpop.permute.xlu1 %2655  ;;  %v8332_v18 = vpack.c.bf16 %v3348_v55, %v3347_v53 }
0x154f   :  { %v2362_v21 = vadd.f32 %v2361_v16, %v2065_v10  ;;  %v2658_v43 = vmul.f32 %v2656_v36, %v9425_v44  ;;  %v8326_v36 = vpack.c.bf16 %v3344_v45, %v3343_v60  ;;  %v6910_v10 = vld [vmem:[%s6833_s10] ss:$0 sm:$0xff]  ;;  %s9638_s10 = sld [smem:[%s10112_s0 + %s8902_s7]]  }
0x1551   :  { %v2659_v25 = vadd.f32 %v2658_v43, %v2362_v21 }
0x15a9   :  { %v2753_v2 = vpop.permute.xlu1 %2752 }
0x15aa   :  { %v2755_v24 = vmul.f32 %v2753_v2, %v9455_v19 }
0x15ac   :  { %v2852_v30 = vadd.f32 %v2755_v24, %v9418_v26  ;;  %v3351_v24 = vld [vmem:[%s6840_s6 + $0x40] sm:$0xff] }
0x15ad   :  { %v2849_v41 = vpop.permute.xlu0 %2848 }
0x15ae   :  { %v2957_v52 = vmul.f32 0.125, %v2852_v30  ;;  %v2851_v51 = vmul.f32 %v2849_v41, %v9462_v63 }
0x15b0   :  { %v2853_v59 = vadd.f32 %v2851_v51, %v9422_v56  ;;  %2960 = vrot.lane.b32.xlu0 %v2957_v52, %s8884_s21  ;;  %v3433_v52 = vld [vmem:[%s6841_s24] sm:$0xff]  ;;  %v3434_v51 = vld [vmem:[%s6841_s24 + $0x8] sm:$0xff]  ;;  %s6844_s24 = sld [smem:[%s10112_s0 + %s8904_s16]]  }
0x15b1   :  { %v2947_v19 = vpop.permute.xlu1 %2946  ;;  %v8338_v43 = vpack.c.bf16 %v3434_v51, %v3433_v52  ;;  %v3516_v51 = vld [vmem:[%s6842_s2 + $0x10] sm:$0xff] }
0x15b2   :  { %v2958_v62 = vmul.f32 0.125, %v2853_v59  ;;  %v2949_v39 = vmul.f32 %v2947_v19, %v9466_v57 }
0x15b4   :  { %v2955_v26 = vmul.f32 %v2953_v37, %v2949_v39  ;;  %2964 = vrot.lane.b32.xlu1 %v2958_v62, %s8881_s18  ;;  %v3350_v37 = vld [vmem:[%s6840_s6 + $0x38] sm:$0xff]  ;;  %v6912_v39 = vld [vmem:[%s6843_s28] ss:$0 sm:$0xff]  ;;  %s6848_s6 = sld [smem:[%s10112_s0 + %s8901_s3]]  }
0x15b5   :  { %v8335_v2 = vpack.c.bf16 %v3350_v37, %v3349_v35  ;;  %v8864_v62 = vld [vmem:[%s8932_s13 + $0x38] sm:$0xff]  ;;  %s6849_s28 = sld [smem:[%s10112_s0 + %s8905_s25]]  }
0x15b6   :  { %v2956_v31 = vadd.f32 %v2955_v26, %v2659_v25  ;;  %v3518_v45 = vld [vmem:[%s6844_s24] sm:$0xff]  ;;  %v3520_v55 = vld [vmem:[%s6844_s24 + $0x10] sm:$0xff] }
0x15b8   :  { %3057 = vrot.lane.b32.xlu0 %v2956_v31, %s8880_s17  ;;  %3061 = vrot.lane.b32.xlu1 %v3053_v54, %s8880_s17 }
0x15ba   :  { %v3530_v12 = vld [vmem:[%s6848_s6 + $0x18] sm:$0xff]  ;;  %v3531_v1 = vld [vmem:[%s6848_s6 + $0x20] sm:$0xff] }
0x15bc   :  { %3334 = vrot.lane.b32.xlu0 %v3053_v54, %s8883_s20 }
0x1622   :  { %v2961_v56 = vpop.permute.xlu0 %2960 }
0x1626   :  { %v2965_v44 = vpop.permute.xlu1 %2964 }
0x1627   :  { %v9526_v63 = vsel %vm200_vm0, %v2961_v56, %v2965_v44 }
0x162a   :  { %v3058_v57 = vpop.permute.xlu0 %3057  ;;  %v3062_v40 = vpop.permute.xlu1 %3061 }
0x162b   :  { %v3064_v17 = vsel %vm777_vm2, %v9526_v63, %v3058_v57 }
0x162c   :  { %v3066_v7 = vsel %vm3065_vm7, %v3064_v17, %v3062_v40 }
0x162d   :  { %7629 = vmatmul.mubr.msk.f32.vlgmr.msra.gmra.mrb[40].mxu1 %vm3086_vm8, %v3066_v7 }
0x162e   :  { %7693 = vmatprep.mubr.msk.f32.mxu1 %vm8875_vm1, %v8876_v28  ;;  %v3335_v21 = vpop.permute.xlu0 %3334  ;;  %8342 = vmatpush3.bf16.msra.mxu1 %v9604_v5 }
0x162f   :  { %v9579_v59 = vsel %vm777_vm2, %v9526_v63, %v3335_v21  ;;  %8343 = vmatprep.subr.bf16.mxu1 %v8871_v14  ;;  %v3517_v21 = vld [vmem:[%s6842_s2 + $0x18] sm:$0xff] }
0x1632   :  { %8345 = vmatpush3.bf16.msra.mxu1 %v9607_v6 }
0x1633   :  { %8346 = vmatprep.subr.bf16.mxu1 %v8871_v14 }
0x1700   :  { %v3156_v27 = vpop.f32.mrb[40].mxu1 }
0x1701   :  { %v3157_v9 = vadd.f32 %v6906_v38, %v3156_v27  ;;  %v7630_v61 = vpop.f32.mrb[41].mxu1  ;;  %v3527_v27 = vld [vmem:[%s6848_s6] sm:$0xff] }
0x1703   :  { %8792 = vtanh.f32 %v3157_v9  ;;  %v3528_v9 = vld [vmem:[%s6848_s6 + $0x8] sm:$0xff] }
0x1704   :  { %v9623_v61 = vpack.c.bf16 %v3528_v9, %v3527_v27 }
0x170d   :  { %v8793_v11 = vpop.eup %8792 }
0x170e   :  { %7644 = vmatmul.mubr.msk.f32.vlgmr.msra.gmra.mrb[34].mxu0 %vm3174_vm9, %v8793_v11  ;;  %v3529_v11 = vld [vmem:[%s6848_s6 + $0x10] sm:$0xff] }
0x170f   :  { %7654 = vmatprep.mubr.msk.f32.mxu0 %vm8875_vm1, %v8876_v28  ;;  %8321 = vmatpush3.bf16.msra.mxu0 %v8320_v47  ;;  %v9626_v20 = vpack.c.bf16 %v3530_v12, %v3529_v11  ;;  %v3532_v47 = vld [vmem:[%s6848_s6 + $0x28] sm:$0xff]  ;;  %s8907_s6 = smov 38  }
0x1710   :  { %8322 = vmatprep.subr.bf16.mxu0 %v8871_v14  ;;  %v9630_v33 = vpack.c.bf16 %v3532_v47, %v3531_v1  ;;  %s6851_s9 = sld [smem:[%s10112_s0 + %s8907_s6]]   ;;  %s8916_s6 = smov 26  }
0x1713   :  { %8324 = vmatpush3.bf16.msra.mxu0 %v8323_v29  ;;  %v9641_v29 = vld [vmem:[%s9638_s10] ss:$0 sm:$0xff] }
0x1714   :  { %8325 = vmatprep.subr.bf16.mxu0 %v8871_v14 }
0x17e1   :  { %v3244_v49 = vpop.f32.mrb[34].mxu0 }
0x17e2   :  { %v3245_v34 = vadd.f32 %v6908_v13, %v3244_v49  ;;  %v7645_v22 = vpop.f32.mrb[35].mxu0 }
0x17e4   :  { %8794 = vtanh.f32 %v3245_v34 }
0x17ee   :  { %v8795_v4 = vpop.eup %8794 }
0x17ef   :  { %7655 = vmatmul.mubr.msk.f32.vlgmr.msra.gmra.mrb[36].mxu0 %vm777_vm2, %v8795_v4 }
0x17f0   :  { %7675 = vmatprep.mubr.msk.f32.mxu0 %vm8875_vm1, %v8876_v28  ;;  %8327 = vmatpush3.bf16.msra.mxu0 %v8326_v36  ;;  %v3519_v36 = vld [vmem:[%s6844_s24 + $0x8] sm:$0xff] }
0x17f1   :  { %8328 = vmatprep.subr.bf16.mxu0 %v8871_v14  ;;  %v9655_v53 = vpack.c.bf16 %v3519_v36, %v3518_v45 }
0x17f4   :  { %8330 = vmatpush3.bf16.msra.mxu0 %v8329_v50 }
0x17f5   :  { %8331 = vmatprep.subr.bf16.mxu0 %v8871_v14 }
0x17f8   :  { %8333 = vmatpush3.bf16.msra.mxu0 %v8332_v18  ;;  %v3521_v18 = vld [vmem:[%s6844_s24 + $0x18] sm:$0xff] }
0x17f9   :  { %8334 = vmatprep.subr.bf16.mxu0 %v8871_v14  ;;  %v9662_v37 = vpack.c.bf16 %v3521_v18, %v3520_v55 }
0x17fc   :  { %8336 = vmatpush3.bf16.msra.mxu0 %v8335_v2  ;;  %v9672_v2 = vld [vmem:[%s6849_s28] ss:$0 sm:$0xff]  ;;  %s8914_s28 = smov 24  }
0x17fd   :  { %7673 = vmatprep.subr.mxu0 %v8876_v28  ;;  %s6837_s1 = sld [smem:[%s10112_s0 + %s8914_s28]]  }
0x1800   :  { %7674 = vmatpush3.msra.mxu0 %v3351_v24 }
0x1801   :  { %8337 = vmatprep.subr.bf16.mxu0 %v8871_v14 }
0x18c2   :  { %v3329_v30 = vpop.f32.mrb[36].mxu0 }
0x18c3   :  { %v3330_v41 = vadd.f32 %v6910_v10, %v3329_v30  ;;  %v7656_v16 = vpop.f32.mrb[37].mxu0 }
0x18c4   :  { %v3515_v16 = vld [vmem:[%s6842_s2 + $0x8] sm:$0xff] }
0x18c5   :  { %3333 = vst.msk [vmem:[%s6853_s15] sm:$0xff] %vm200_vm0, %v3330_v41  ;;  %3338 = vrot.lane.b32.xlu1 %v3330_v41, %s8880_s17  ;;  %s6850_s15 = sld [smem:[%s10112_s0 + %s8903_s11]]   ;;  %v3514_v41 = vld [vmem:[%s6842_s2] sm:$0xff]  ;;  %s8908_s11 = smov 48  }
0x18c6   :  { %v9678_v52 = vpack.c.bf16 %v3515_v16, %v3514_v41  ;;  %s8915_s2 = smov 39  }
0x18cb   :  { %v3534_v4 = vld [vmem:[%s6850_s15] sm:$0xff]  ;;  %v3535_v60 = vld [vmem:[%s6850_s15 + $0x8] sm:$0xff]  ;;  %v3536_v32 = vld [vmem:[%s6850_s15 + $0x10] sm:$0xff] }
0x18cc   :  { %v9653_v23 = vpack.c.bf16 %v3535_v60, %v3534_v4  ;;  %v3537_v50 = vld [vmem:[%s6850_s15 + $0x18] sm:$0xff] }
0x18cd   :  { %v9658_v35 = vpack.c.bf16 %v3537_v50, %v3536_v32 }
0x1937   :  { %v3339_v19 = vpop.permute.xlu1 %3338 }
0x1938   :  { %v3342_v8 = vsel %vm3065_vm7, %v9579_v59, %v3339_v19  ;;  %v9683_v19 = vpack.c.bf16 %v3517_v21, %v3516_v51 }
0x1939   :  { %7676 = vmatmul.mubr.msk.f32.vlgmr.msra.gmra.mrb[38].mxu0 %vm3359_vm10, %v3342_v8 }
0x193a   :  { %8339 = vmatpush3.bf16.msra.mxu0 %v8338_v43  ;;  %7682 = vmatprep.mubr.msk.f32.mxu0 %vm8875_vm1, %v8876_v28 }
0x193b   :  { %8361 = vmatprep.subr.bf16.mxu0 %v8871_v14 }
0x1941   :  { %7683 = vmatmul.mubr.msk.f32.vlgmr.msra.gmra.mrb[38].mxu0 %vm200_vm0, %v8864_v62 }
0x1942   :  { %7730 = vmatprep.mubr.msk.f32.mxu0 %vm8875_vm1, %v8876_v28  ;;  %8363 = vmatpush3.bf16.msra.mxu0 %v9655_v53 }
0x1943   :  { %8364 = vmatprep.subr.bf16.mxu0 %v8871_v14 }
0x1946   :  { %8366 = vmatpush3.bf16.msra.mxu0 %v9662_v37 }
0x1947   :  { %8367 = vmatprep.subr.bf16.mxu0 %v8871_v14 }
0x1a14   :  { %v3501_v25 = vpop.f32.mrb[38].mxu0 }
0x1a15   :  { %v9593_v26 = vadd.f32 %v6912_v39, %v3501_v25  ;;  %v7684_v54 = vpop.f32.mrb[39].mxu0  ;;  %v6915_v39 = vld [vmem:[%s6845_s5] ss:$0 sm:$0xff]  ;;  %s6852_s5 = sld [smem:[%s10112_s0 + %s8915_s2]]  }
0x1a17   :  { %8796 = vtanh.f32 %v9593_v26  ;;  %v9711_v25 = vadd.f32 %v9593_v26, %v6915_v39 }
0x1a21   :  { %v8797_v31 = vpop.eup %8796 }
0x1a22   :  { %3544 = vrot.lane.b32.xlu0 %v8797_v31, %s8880_s17  ;;  %v3540_v56 = vmul.f32 0.5, %v8797_v31 }
0x1a24   :  { %v3541_v44 = vadd.f32 0.5, %v3540_v56 }
0x1a26   :  { %v3542_v40 = vmul.f32 0.0, %v3541_v44 }
0x1a94   :  { %v3545_v63 = vpop.permute.xlu0 %3544 }
0x1a95   :  { %v3547_v57 = vmul.f32 %v3545_v63, %v3541_v44 }
0x1a97   :  { %3549 = vrot.lane.b32.xlu1 %v3547_v57, %s8883_s20 }
0x1b09   :  { %v3550_v17 = vpop.permute.xlu1 %3549 }
0x1b0a   :  { %v9598_v7 = vadd.f32 %v3550_v17, %v3542_v40 }
0x1b0c   :  { %8798 = vtanh.f32 %v9598_v7 }
0x1b16   :  { %v8799_v15 = vpop.eup %8798 }
0x1b17   :  { %3555 = vrot.lane.b32.xlu0 %v8799_v15, %s8880_s17 }
0x1b89   :  { %v3556_v46 = vpop.permute.xlu0 %3555 }
0x1b8a   :  { %v3558_v3 = vmul.f32 %v3556_v46, %v3541_v44 }
0x1b8c   :  { %3566 = vrot.lane.b32.xlu1 %v3558_v3, %s8883_s20 }
0x1bfe   :  { %v9614_v38 = vpop.permute.xlu1 %3566 }
0x1bff   :  { %7694 = vmatmul.mubr.msk.f32.vlgmr.msra.gmra.mrb[42].mxu1 %vm777_vm2, %v9614_v38 }
0x1c00   :  { %7708 = vmatprep.mubr.msk.f32.mxu1 %vm8875_vm1, %v8876_v28  ;;  %8348 = vmatpush3.bf16.msra.mxu1 %v9623_v61 }
0x1c01   :  { %8349 = vmatprep.subr.bf16.mxu1 %v8871_v14 }
0x1c04   :  { %8351 = vmatpush3.bf16.msra.mxu1 %v9626_v20 }
0x1c05   :  { %8352 = vmatprep.subr.bf16.mxu1 %v8871_v14 }
0x1c08   :  { %8354 = vmatpush3.bf16.msra.mxu1 %v9630_v33 }
0x1c09   :  { %8355 = vmatprep.subr.bf16.mxu1 %v8871_v14 }
0x1cd2   :  { %v3636_v13 = vpop.f32.mrb[42].mxu1 }
0x1cd3   :  { %v3637_v49 = vadd.f32 %v9641_v29, %v3636_v13  ;;  %v7695_v34 = vpop.f32.mrb[43].mxu1 }
0x1cd5   :  { %8800 = vtanh.f32 %v3637_v49 }
0x1cdf   :  { %v8801_v22 = vpop.eup %8800 }
0x1ce0   :  { %7709 = vmatmul.mubr.msk.f32.vlgmr.msra.gmra.mrb[44].mxu1 %vm3174_vm9, %v8801_v22 }
0x1ce1   :  { %7719 = vmatprep.mubr.msk.f32.mxu1 %vm8875_vm1, %v8876_v28  ;;  %8357 = vmatpush3.bf16.msra.mxu1 %v9653_v23 }
0x1ce2   :  { %8358 = vmatprep.subr.bf16.mxu1 %v8871_v14 }
0x1ce5   :  { %8360 = vmatpush3.bf16.msra.mxu1 %v9658_v35 }
0x1ce6   :  { %8373 = vmatprep.subr.bf16.mxu1 %v8871_v14 }
0x1db3   :  { %v3716_v24 = vpop.f32.mrb[44].mxu1 }
0x1db4   :  { %v3717_v10 = vadd.f32 %v9672_v2, %v3716_v24  ;;  %v7710_v30 = vpop.f32.mrb[45].mxu1 }
0x1db6   :  { %8802 = vtanh.f32 %v3717_v10 }
0x1dc0   :  { %v8803_v43 = vpop.eup %8802 }
0x1dc1   :  { %7720 = vmatmul.mubr.msk.f32.vlgmr.msra.gmra.mrb[46].mxu1 %vm777_vm2, %v8803_v43  ;;  %7731 = vmatmul.mubr.msk.f32.vlgmr.msra.gmra.mrb[40].mxu0 %vm777_vm2, %v8803_v43 }
0x1dc2   :  { %8369 = vmatpush3.bf16.msra.mxu0 %v9678_v52  ;;  %7741 = vmatprep.mubr.msk.f32.mxu0 %vm8875_vm1, %v8876_v28 }
0x1dc3   :  { %8370 = vmatprep.subr.bf16.mxu0 %v8871_v14  ;;  %8375 = vmatpush3.bf16.msra.mxu1 %v9604_v5 }
0x1dc4   :  { %8376 = vmatprep.subr.bf16.mxu1 %v8871_v14  ;;  %7752 = vmatprep.mubr.msk.f32.mxu1 %vm8875_vm1, %v8876_v28 }
0x1dc6   :  { %8372 = vmatpush3.bf16.msra.mxu0 %v9683_v19 }
0x1dc7   :  { %8378 = vmatpush3.bf16.msra.mxu1 %v9607_v6  ;;  %8388 = vmatprep.subr.bf16.mxu0 %v8871_v14 }
0x1dc8   :  { %8379 = vmatprep.subr.bf16.mxu1 %v8871_v14 }
0x1dc9   :  { %7742 = vmatmul.mubr.msk.f32.vlgmr.msra.gmra.mrb[40].mxu0 %vm777_vm2, %v9614_v38 }
0x1dca   :  { %8390 = vmatpush3.bf16.msra.mxu0 %v9653_v23  ;;  %7778 = vmatprep.mubr.msk.f32.mxu0 %vm8875_vm1, %v8876_v28 }
0x1dcb   :  { %8391 = vmatprep.subr.bf16.mxu0 %v8871_v14 }
0x1dce   :  { %8393 = vmatpush3.bf16.msra.mxu0 %v9658_v35 }
0x1dcf   :  { %8394 = vmatprep.subr.bf16.mxu0 %v8871_v14 }
0x1e94   :  { %v9708_v8 = vpop.f32.mrb[46].mxu1 }
0x1e95   :  { %v7721_v62 = vpop.f32.mrb[47].mxu1 }
0x1e9c   :  { %v3938_v54 = vpop.f32.mrb[40].mxu0 }
0x1e9d   :  { %v8620_v31 = vadd.f32 %v3938_v54, %v9711_v25  ;;  %v7743_v56 = vpop.f32.mrb[41].mxu0 }
0x1e9f   :  { %8804 = vtanh.f32 %v8620_v31 }
0x1ea9   :  { %v8805_v44 = vpop.eup %8804 }
0x1eaa   :  { %3948 = vrot.lane.b32.xlu0 %v8805_v44, %s8880_s17  ;;  %v3944_v63 = vmul.f32 0.5, %v8805_v44 }
0x1eac   :  { %v3945_v57 = vadd.f32 0.5, %v3944_v63 }
0x1eae   :  { %v3946_v42 = vmul.f32 %v3945_v57, %v9598_v7 }
0x1f1c   :  { %v3949_v40 = vpop.permute.xlu0 %3948 }
0x1f1d   :  { %v3951_v17 = vmul.f32 %v3949_v40, %v3945_v57 }
0x1f1f   :  { %3953 = vrot.lane.b32.xlu1 %v3951_v17, %s8883_s20 }
0x1f91   :  { %v3954_v48 = vpop.permute.xlu1 %3953 }
0x1f92   :  { %v9717_v58 = vadd.f32 %v3954_v48, %v3946_v42 }
0x1f94   :  { %8806 = vtanh.f32 %v9717_v58 }
0x1f9e   :  { %v8807_v26 = vpop.eup %8806 }
0x1f9f   :  { %3959 = vrot.lane.b32.xlu0 %v8807_v26, %s8880_s17 }
0x2011   :  { %v3960_v0 = vpop.permute.xlu0 %3959 }
0x2012   :  { %v3962_v15 = vmul.f32 %v3960_v0, %v3945_v57 }
0x2014   :  { %3964 = vrot.lane.b32.xlu1 %v3962_v15, %s8883_s20 }
0x2086   :  { %v3965_v46 = vpop.permute.xlu1 %3964 }
0x2087   :  { %7753 = vmatmul.mubr.msk.f32.vlgmr.msra.gmra.mrb[48].mxu1 %vm777_vm2, %v3965_v46 }
0x2088   :  { %8381 = vmatpush3.bf16.msra.mxu1 %v9623_v61  ;;  %7767 = vmatprep.mubr.msk.f32.mxu1 %vm8875_vm1, %v8876_v28 }
0x2089   :  { %8382 = vmatprep.subr.bf16.mxu1 %v8871_v14 }
0x208c   :  { %8384 = vmatpush3.bf16.msra.mxu1 %v9626_v20 }
0x208d   :  { %8385 = vmatprep.subr.bf16.mxu1 %v8871_v14 }
0x2090   :  { %8387 = vmatpush3.bf16.msra.mxu1 %v9630_v33 }
0x2091   :  { %8406 = vmatprep.subr.bf16.mxu1 %v8871_v14 }
0x215a   :  { %v4034_v7 = vpop.f32.mrb[48].mxu1 }
0x215b   :  { %v4035_v3 = vadd.f32 %v9641_v29, %v4034_v7  ;;  %v7754_v38 = vpop.f32.mrb[49].mxu1 }
0x215d   :  { %8808 = vtanh.f32 %v4035_v3 }
0x2167   :  { %v8809_v27 = vpop.eup %8808 }
0x2168   :  { %7768 = vmatmul.mubr.msk.f32.vlgmr.msra.gmra.mrb[50].mxu1 %vm3174_vm9, %v8809_v27 }
0x2169   :  { %8408 = vmatpush3.bf16.msra.mxu1 %v9604_v5  ;;  %7811 = vmatprep.mubr.msk.f32.mxu1 %vm8875_vm1, %v8876_v28 }
0x216a   :  { %8409 = vmatprep.subr.bf16.mxu1 %v8871_v14 }
0x216d   :  { %8411 = vmatpush3.bf16.msra.mxu1 %v9607_v6 }
0x216e   :  { %8412 = vmatprep.subr.bf16.mxu1 %v8871_v14 }
0x223b   :  { %v4108_v9 = vpop.f32.mrb[50].mxu1 }
0x223c   :  { %v4109_v11 = vadd.f32 %v9672_v2, %v4108_v9  ;;  %v7769_v12 = vpop.f32.mrb[51].mxu1 }
0x223e   :  { %8810 = vtanh.f32 %v4109_v11 }
0x2248   :  { %v8811_v1 = vpop.eup %8810 }
0x2249   :  { %7779 = vmatmul.mubr.msk.f32.vlgmr.msra.gmra.mrb[42].mxu0 %vm777_vm2, %v8811_v1 }
0x224a   :  { %8396 = vmatpush3.bf16.msra.mxu0 %v9655_v53  ;;  %7789 = vmatprep.mubr.msk.f32.mxu0 %vm8875_vm1, %v8876_v28 }
0x224b   :  { %8397 = vmatprep.subr.bf16.mxu0 %v8871_v14 }
0x224e   :  { %8399 = vmatpush3.bf16.msra.mxu0 %v9662_v37 }
0x224f   :  { %8400 = vmatprep.subr.bf16.mxu0 %v8871_v14 }
0x2251   :  { %7790 = vmatmul.mubr.msk.f32.vlgmr.msra.gmra.mrb[44].mxu0 %vm777_vm2, %v8811_v1 }
0x2252   :  { %8402 = vmatpush3.bf16.msra.mxu0 %v9678_v52  ;;  %7800 = vmatprep.mubr.msk.f32.mxu0 %vm8875_vm1, %v8876_v28 }
0x2253   :  { %8403 = vmatprep.subr.bf16.mxu0 %v8871_v14 }
0x2256   :  { %8405 = vmatpush3.bf16.msra.mxu0 %v9683_v19 }
0x2257   :  { %8421 = vmatprep.subr.bf16.mxu0 %v8871_v14 }
0x2259   :  { %7801 = vmatmul.mubr.msk.f32.vlgmr.msra.gmra.mrb[44].mxu0 %vm777_vm2, %v3965_v46 }
0x225a   :  { %8423 = vmatpush3.bf16.msra.mxu0 %v9653_v23  ;;  %7837 = vmatprep.mubr.msk.f32.mxu0 %vm8875_vm1, %v8876_v28 }
0x225b   :  { %8424 = vmatprep.subr.bf16.mxu0 %v8871_v14 }
0x225e   :  { %8426 = vmatpush3.bf16.msra.mxu0 %v9658_v35 }
0x225f   :  { %8439 = vmatprep.subr.bf16.mxu0 %v8871_v14 }
0x231c   :  { %v9761_v47 = vpop.f32.mrb[42].mxu0 }
0x231d   :  { %v7780_v13 = vpop.f32.mrb[43].mxu0 }
0x232c   :  { %v4324_v49 = vpop.f32.mrb[44].mxu0 }
0x232d   :  { %v8621_v34 = vadd.f32 %v4324_v49, %v9711_v25  ;;  %v7802_v22 = vpop.f32.mrb[45].mxu0 }
0x232f   :  { %8812 = vtanh.f32 %v8621_v34 }
0x2339   :  { %v8813_v4 = vpop.eup %8812 }
0x233a   :  { %4334 = vrot.lane.b32.xlu0 %v8813_v4, %s8880_s17  ;;  %v4330_v60 = vmul.f32 0.5, %v8813_v4 }
0x233c   :  { %v4331_v45 = vadd.f32 0.5, %v4330_v60 }
0x233e   :  { %v4332_v50 = vmul.f32 %v4331_v45, %v9717_v58 }
0x23ac   :  { %v4335_v36 = vpop.permute.xlu0 %4334 }
0x23ad   :  { %v4337_v32 = vmul.f32 %v4335_v36, %v4331_v45 }
0x23af   :  { %4339 = vrot.lane.b32.xlu1 %v4337_v32, %s8883_s20 }
0x2421   :  { %v4340_v55 = vpop.permute.xlu1 %4339 }
0x2422   :  { %v9767_v18 = vadd.f32 %v4340_v55, %v4332_v50 }
0x2424   :  { %8814 = vtanh.f32 %v9767_v18 }
0x242e   :  { %v8815_v24 = vpop.eup %8814 }
0x242f   :  { %4345 = vrot.lane.b32.xlu0 %v8815_v24, %s8880_s17 }
0x24a1   :  { %v4346_v10 = vpop.permute.xlu0 %4345 }
0x24a2   :  { %v4348_v30 = vmul.f32 %v4346_v10, %v4331_v45 }
0x24a4   :  { %4350 = vrot.lane.b32.xlu1 %v4348_v30, %s8883_s20 }
0x2516   :  { %v4351_v41 = vpop.permute.xlu1 %4350 }
0x2517   :  { %7812 = vmatmul.mubr.msk.f32.vlgmr.msra.gmra.mrb[52].mxu1 %vm777_vm2, %v4351_v41 }
0x2518   :  { %8414 = vmatpush3.bf16.msra.mxu1 %v9623_v61  ;;  %7826 = vmatprep.mubr.msk.f32.mxu1 %vm8875_vm1, %v8876_v28 }
0x2519   :  { %8415 = vmatprep.subr.bf16.mxu1 %v8871_v14 }
0x251c   :  { %8417 = vmatpush3.bf16.msra.mxu1 %v9626_v20 }
0x251d   :  { %8418 = vmatprep.subr.bf16.mxu1 %v8871_v14 }
0x2520   :  { %8420 = vmatpush3.bf16.msra.mxu1 %v9630_v33 }
0x2521   :  { %8427 = vmatprep.subr.bf16.mxu1 %v8871_v14 }
0x25ea   :  { %v4420_v16 = vpop.f32.mrb[52].mxu1 }
0x25eb   :  { %v4421_v51 = vadd.f32 %v9641_v29, %v4420_v16  ;;  %v7813_v21 = vpop.f32.mrb[53].mxu1 }
0x25ed   :  { %8816 = vtanh.f32 %v4421_v51 }
0x25f7   :  { %v8817_v43 = vpop.eup %8816 }
0x25f8   :  { %7827 = vmatmul.mubr.msk.f32.vlgmr.msra.gmra.mrb[54].mxu1 %vm3174_vm9, %v8817_v43 }
0x25f9   :  { %8429 = vmatpush3.bf16.msra.mxu1 %v9655_v53  ;;  %7848 = vmatprep.mubr.msk.f32.mxu1 %vm8875_vm1, %v8876_v28 }
0x25fa   :  { %8430 = vmatprep.subr.bf16.mxu1 %v8871_v14 }
0x25fd   :  { %8432 = vmatpush3.bf16.msra.mxu1 %v9662_v37 }
0x25fe   :  { %8433 = vmatprep.subr.bf16.mxu1 %v8871_v14 }
0x26cb   :  { %v4494_v62 = vpop.f32.mrb[54].mxu1 }
0x26cc   :  { %v4495_v39 = vadd.f32 %v9672_v2, %v4494_v62  ;;  %v7828_v54 = vpop.f32.mrb[55].mxu1 }
0x26ce   :  { %8818 = vtanh.f32 %v4495_v39 }
0x26d8   :  { %v8819_v31 = vpop.eup %8818 }
0x26d9   :  { %7838 = vmatmul.mubr.msk.f32.vlgmr.msra.gmra.mrb[46].mxu0 %vm777_vm2, %v8819_v31  ;;  %7849 = vmatmul.mubr.msk.f32.vlgmr.msra.gmra.mrb[56].mxu1 %vm777_vm2, %v8819_v31 }
0x26da   :  { %8435 = vmatpush3.bf16.msra.mxu1 %v9678_v52  ;;  %7859 = vmatprep.mubr.msk.f32.mxu1 %vm8875_vm1, %v8876_v28 }
0x26db   :  { %8436 = vmatprep.subr.bf16.mxu1 %v8871_v14  ;;  %8441 = vmatpush3.bf16.msra.mxu0 %v9604_v5 }
0x26dc   :  { %8442 = vmatprep.subr.bf16.mxu0 %v8871_v14  ;;  %7870 = vmatprep.mubr.msk.f32.mxu0 %vm8875_vm1, %v8876_v28 }
0x26de   :  { %8438 = vmatpush3.bf16.msra.mxu1 %v9683_v19 }
0x26df   :  { %8444 = vmatpush3.bf16.msra.mxu0 %v9607_v6  ;;  %8454 = vmatprep.subr.bf16.mxu1 %v8871_v14 }
0x26e0   :  { %8445 = vmatprep.subr.bf16.mxu0 %v8871_v14 }
0x26e1   :  { %7860 = vmatmul.mubr.msk.f32.vlgmr.msra.gmra.mrb[56].mxu1 %vm777_vm2, %v4351_v41 }
0x26e2   :  { %8456 = vmatpush3.bf16.msra.mxu1 %v9653_v23  ;;  %7896 = vmatprep.mubr.msk.f32.mxu1 %vm8875_vm1, %v8876_v28 }
0x26e3   :  { %8457 = vmatprep.subr.bf16.mxu1 %v8871_v14 }
0x26e6   :  { %8459 = vmatpush3.bf16.msra.mxu1 %v9658_v35 }
0x26e7   :  { %8472 = vmatprep.subr.bf16.mxu1 %v8871_v14 }
0x27ac   :  { %v9811_v56 = vpop.f32.mrb[46].mxu0 }
0x27ad   :  { %v7839_v44 = vpop.f32.mrb[47].mxu0 }
0x27b4   :  { %v4710_v63 = vpop.f32.mrb[56].mxu1 }
0x27b5   :  { %v8622_v57 = vadd.f32 %v4710_v63, %v9711_v25  ;;  %v7861_v40 = vpop.f32.mrb[57].mxu1 }
0x27b7   :  { %8820 = vtanh.f32 %v8622_v57 }
0x27c1   :  { %v8821_v17 = vpop.eup %8820 }
0x27c2   :  { %4720 = vrot.lane.b32.xlu0 %v8821_v17, %s8880_s17  ;;  %v4716_v42 = vmul.f32 0.5, %v8821_v17 }
0x27c4   :  { %v4717_v48 = vadd.f32 0.5, %v4716_v42 }
0x27c6   :  { %v4718_v0 = vmul.f32 %v4717_v48, %v9767_v18 }
0x2834   :  { %v4721_v58 = vpop.permute.xlu0 %4720 }
0x2835   :  { %v4723_v26 = vmul.f32 %v4721_v58, %v4717_v48 }
0x2837   :  { %4725 = vrot.lane.b32.xlu1 %v4723_v26, %s8883_s20 }
0x28a9   :  { %v4726_v15 = vpop.permute.xlu1 %4725 }
0x28aa   :  { %v9817_v46 = vadd.f32 %v4726_v15, %v4718_v0 }
0x28ac   :  { %8822 = vtanh.f32 %v9817_v46 }
0x28b6   :  { %v8823_v7 = vpop.eup %8822 }
0x28b7   :  { %4731 = vrot.lane.b32.xlu0 %v8823_v7, %s8880_s17 }
0x2929   :  { %v4732_v3 = vpop.permute.xlu0 %4731 }
0x292a   :  { %v4734_v38 = vmul.f32 %v4732_v3, %v4717_v48 }
0x292c   :  { %4736 = vrot.lane.b32.xlu1 %v4734_v38, %s8883_s20 }
0x299e   :  { %v4737_v27 = vpop.permute.xlu1 %4736 }
0x299f   :  { %7871 = vmatmul.mubr.msk.f32.vlgmr.msra.gmra.mrb[48].mxu0 %vm777_vm2, %v4737_v27 }
0x29a0   :  { %8447 = vmatpush3.bf16.msra.mxu0 %v9623_v61  ;;  %7885 = vmatprep.mubr.msk.f32.mxu0 %vm8875_vm1, %v8876_v28 }
0x29a1   :  { %8448 = vmatprep.subr.bf16.mxu0 %v8871_v14 }
0x29a4   :  { %8450 = vmatpush3.bf16.msra.mxu0 %v9626_v20 }
0x29a5   :  { %8451 = vmatprep.subr.bf16.mxu0 %v8871_v14 }
0x29a8   :  { %8453 = vmatpush3.bf16.msra.mxu0 %v9630_v33 }
0x29a9   :  { %8460 = vmatprep.subr.bf16.mxu0 %v8871_v14 }
0x2a72   :  { %v4806_v9 = vpop.f32.mrb[48].mxu0 }
0x2a73   :  { %v4807_v11 = vadd.f32 %v9641_v29, %v4806_v9  ;;  %v7872_v12 = vpop.f32.mrb[49].mxu0 }
0x2a75   :  { %8824 = vtanh.f32 %v4807_v11 }
0x2a7f   :  { %v8825_v1 = vpop.eup %8824 }
0x2a80   :  { %7886 = vmatmul.mubr.msk.f32.vlgmr.msra.gmra.mrb[50].mxu0 %vm3174_vm9, %v8825_v1 }
0x2a81   :  { %8462 = vmatpush3.bf16.msra.mxu0 %v9655_v53  ;;  %7907 = vmatprep.mubr.msk.f32.mxu0 %vm8875_vm1, %v8876_v28 }
0x2a82   :  { %8463 = vmatprep.subr.bf16.mxu0 %v8871_v14 }
0x2a85   :  { %8465 = vmatpush3.bf16.msra.mxu0 %v9662_v37 }
0x2a86   :  { %8466 = vmatprep.subr.bf16.mxu0 %v8871_v14 }
0x2b53   :  { %v4880_v13 = vpop.f32.mrb[50].mxu0 }
0x2b54   :  { %v4881_v49 = vadd.f32 %v9672_v2, %v4880_v13  ;;  %v7887_v34 = vpop.f32.mrb[51].mxu0 }
0x2b56   :  { %8826 = vtanh.f32 %v4881_v49 }
0x2b60   :  { %v8827_v22 = vpop.eup %8826 }
0x2b61   :  { %7897 = vmatmul.mubr.msk.f32.vlgmr.msra.gmra.mrb[58].mxu1 %vm777_vm2, %v8827_v22  ;;  %7908 = vmatmul.mubr.msk.f32.vlgmr.msra.gmra.mrb[52].mxu0 %vm777_vm2, %v8827_v22 }
0x2b62   :  { %8468 = vmatpush3.bf16.msra.mxu0 %v9678_v52  ;;  %7918 = vmatprep.mubr.msk.f32.mxu0 %vm8875_vm1, %v8876_v28 }
0x2b63   :  { %8469 = vmatprep.subr.bf16.mxu0 %v8871_v14  ;;  %8474 = vmatpush3.bf16.msra.mxu1 %v9604_v5 }
0x2b64   :  { %8475 = vmatprep.subr.bf16.mxu1 %v8871_v14  ;;  %7929 = vmatprep.mubr.msk.f32.mxu1 %vm8875_vm1, %v8876_v28 }
0x2b66   :  { %8471 = vmatpush3.bf16.msra.mxu0 %v9683_v19 }
0x2b67   :  { %8477 = vmatpush3.bf16.msra.mxu1 %v9607_v6  ;;  %8487 = vmatprep.subr.bf16.mxu0 %v8871_v14 }
0x2b68   :  { %8478 = vmatprep.subr.bf16.mxu1 %v8871_v14 }
0x2b69   :  { %7919 = vmatmul.mubr.msk.f32.vlgmr.msra.gmra.mrb[52].mxu0 %vm777_vm2, %v4737_v27 }
0x2b6a   :  { %8489 = vmatpush3.bf16.msra.mxu0 %v9653_v23  ;;  %7955 = vmatprep.mubr.msk.f32.mxu0 %vm8875_vm1, %v8876_v28 }
0x2b6b   :  { %8490 = vmatprep.subr.bf16.mxu0 %v8871_v14 }
0x2b6e   :  { %8492 = vmatpush3.bf16.msra.mxu0 %v9658_v35 }
0x2b6f   :  { %8505 = vmatprep.subr.bf16.mxu0 %v8871_v14 }
0x2c34   :  { %v9861_v4 = vpop.f32.mrb[58].mxu1 }
0x2c35   :  { %v7898_v60 = vpop.f32.mrb[59].mxu1 }
0x2c3c   :  { %v5096_v45 = vpop.f32.mrb[52].mxu0 }
0x2c3d   :  { %v8623_v36 = vadd.f32 %v5096_v45, %v9711_v25  ;;  %v7920_v32 = vpop.f32.mrb[53].mxu0 }
0x2c3f   :  { %8828 = vtanh.f32 %v8623_v36 }
0x2c49   :  { %v8829_v50 = vpop.eup %8828 }
0x2c4a   :  { %5106 = vrot.lane.b32.xlu0 %v8829_v50, %s8880_s17  ;;  %v5102_v55 = vmul.f32 0.5, %v8829_v50 }
0x2c4c   :  { %v5103_v18 = vadd.f32 0.5, %v5102_v55 }
0x2c4e   :  { %v5104_v30 = vmul.f32 %v5103_v18, %v9817_v46 }
0x2cbc   :  { %v5107_v24 = vpop.permute.xlu0 %5106 }
0x2cbd   :  { %v5109_v10 = vmul.f32 %v5107_v24, %v5103_v18 }
0x2cbf   :  { %5111 = vrot.lane.b32.xlu1 %v5109_v10, %s8883_s20 }
0x2d31   :  { %v5112_v41 = vpop.permute.xlu1 %5111 }
0x2d32   :  { %v9867_v16 = vadd.f32 %v5112_v41, %v5104_v30 }
0x2d34   :  { %8830 = vtanh.f32 %v9867_v16 }
0x2d3e   :  { %v8831_v51 = vpop.eup %8830 }
0x2d3f   :  { %5117 = vrot.lane.b32.xlu0 %v8831_v51, %s8880_s17 }
0x2db1   :  { %v5118_v21 = vpop.permute.xlu0 %5117 }
0x2db2   :  { %v5120_v43 = vmul.f32 %v5118_v21, %v5103_v18 }
0x2db4   :  { %5122 = vrot.lane.b32.xlu1 %v5120_v43, %s8883_s20 }
0x2e26   :  { %v5123_v62 = vpop.permute.xlu1 %5122 }
0x2e27   :  { %7930 = vmatmul.mubr.msk.f32.vlgmr.msra.gmra.mrb[60].mxu1 %vm777_vm2, %v5123_v62 }
0x2e28   :  { %8480 = vmatpush3.bf16.msra.mxu1 %v9623_v61  ;;  %7944 = vmatprep.mubr.msk.f32.mxu1 %vm8875_vm1, %v8876_v28 }
0x2e29   :  { %8481 = vmatprep.subr.bf16.mxu1 %v8871_v14 }
0x2e2c   :  { %8483 = vmatpush3.bf16.msra.mxu1 %v9626_v20 }
0x2e2d   :  { %8484 = vmatprep.subr.bf16.mxu1 %v8871_v14 }
0x2e30   :  { %8486 = vmatpush3.bf16.msra.mxu1 %v9630_v33 }
0x2e31   :  { %8493 = vmatprep.subr.bf16.mxu1 %v8871_v14 }
0x2efa   :  { %v5192_v39 = vpop.f32.mrb[60].mxu1 }
0x2efb   :  { %v5193_v54 = vadd.f32 %v9641_v29, %v5192_v39  ;;  %v7931_v31 = vpop.f32.mrb[61].mxu1 }
0x2efd   :  { %8832 = vtanh.f32 %v5193_v54 }
0x2f07   :  { %v8833_v44 = vpop.eup %8832 }
0x2f08   :  { %7945 = vmatmul.mubr.msk.f32.vlgmr.msra.gmra.mrb[62].mxu1 %vm3174_vm9, %v8833_v44 }
0x2f09   :  { %8495 = vmatpush3.bf16.msra.mxu1 %v9655_v53  ;;  %7966 = vmatprep.mubr.msk.f32.mxu1 %vm8875_vm1, %v8876_v28 }
0x2f0a   :  { %8496 = vmatprep.subr.bf16.mxu1 %v8871_v14 }
0x2f0d   :  { %8498 = vmatpush3.bf16.msra.mxu1 %v9662_v37 }
0x2f0e   :  { %8499 = vmatprep.subr.bf16.mxu1 %v8871_v14 }
0x2fdb   :  { %v5266_v63 = vpop.f32.mrb[62].mxu1 }
0x2fdc   :  { %v5267_v57 = vadd.f32 %v9672_v2, %v5266_v63  ;;  %v7946_v40 = vpop.f32.mrb[63].mxu1 }
0x2fde   :  { %8834 = vtanh.f32 %v5267_v57 }
0x2fe8   :  { %v8835_v17 = vpop.eup %8834 }
0x2fe9   :  { %7956 = vmatmul.mubr.msk.f32.vlgmr.msra.gmra.mrb[54].mxu0 %vm777_vm2, %v8835_v17  ;;  %7967 = vmatmul.mubr.msk.f32.vlgmr.msra.gmra.mrb[64].mxu1 %vm777_vm2, %v8835_v17 }
0x2fea   :  { %8501 = vmatpush3.bf16.msra.mxu1 %v9678_v52  ;;  %7977 = vmatprep.mubr.msk.f32.mxu1 %vm8875_vm1, %v8876_v28 }
0x2feb   :  { %8502 = vmatprep.subr.bf16.mxu1 %v8871_v14  ;;  %8507 = vmatpush3.bf16.msra.mxu0 %v9604_v5 }
0x2fec   :  { %8508 = vmatprep.subr.bf16.mxu0 %v8871_v14  ;;  %7988 = vmatprep.mubr.msk.f32.mxu0 %vm8875_vm1, %v8876_v28 }
0x2fee   :  { %8504 = vmatpush3.bf16.msra.mxu1 %v9683_v19 }
0x2fef   :  { %8510 = vmatpush3.bf16.msra.mxu0 %v9607_v6  ;;  %8520 = vmatprep.subr.bf16.mxu1 %v8871_v14 }
0x2ff0   :  { %8511 = vmatprep.subr.bf16.mxu0 %v8871_v14 }
0x2ff1   :  { %7978 = vmatmul.mubr.msk.f32.vlgmr.msra.gmra.mrb[64].mxu1 %vm777_vm2, %v5123_v62 }
0x2ff2   :  { %8522 = vmatpush3.bf16.msra.mxu1 %v9653_v23  ;;  %8014 = vmatprep.mubr.msk.f32.mxu1 %vm8875_vm1, %v8876_v28 }
0x2ff3   :  { %8523 = vmatprep.subr.bf16.mxu1 %v8871_v14 }
0x2ff6   :  { %8525 = vmatpush3.bf16.msra.mxu1 %v9658_v35 }
0x2ff7   :  { %8538 = vmatprep.subr.bf16.mxu1 %v8871_v14 }
0x30bc   :  { %v9911_v42 = vpop.f32.mrb[54].mxu0 }
0x30bd   :  { %v7957_v48 = vpop.f32.mrb[55].mxu0 }
0x30c4   :  { %v5482_v58 = vpop.f32.mrb[64].mxu1 }
0x30c5   :  { %v8624_v26 = vadd.f32 %v5482_v58, %v9711_v25  ;;  %v7979_v0 = vpop.f32.mrb[65].mxu1 }
0x30c7   :  { %8836 = vtanh.f32 %v8624_v26 }
0x30d1   :  { %v8837_v15 = vpop.eup %8836 }
0x30d2   :  { %5492 = vrot.lane.b32.xlu0 %v8837_v15, %s8880_s17  ;;  %v5488_v46 = vmul.f32 0.5, %v8837_v15 }
0x30d4   :  { %v5489_v7 = vadd.f32 0.5, %v5488_v46 }
0x30d6   :  { %v5490_v27 = vmul.f32 %v5489_v7, %v9867_v16 }
0x3144   :  { %v5493_v3 = vpop.permute.xlu0 %5492 }
0x3145   :  { %v5495_v38 = vmul.f32 %v5493_v3, %v5489_v7 }
0x3147   :  { %5497 = vrot.lane.b32.xlu1 %v5495_v38, %s8883_s20 }
0x31b9   :  { %v5498_v9 = vpop.permute.xlu1 %5497 }
0x31ba   :  { %v9917_v11 = vadd.f32 %v5498_v9, %v5490_v27 }
0x31bc   :  { %8838 = vtanh.f32 %v9917_v11 }
0x31c6   :  { %v8839_v12 = vpop.eup %8838 }
0x31c7   :  { %5503 = vrot.lane.b32.xlu0 %v8839_v12, %s8880_s17 }
0x3239   :  { %v5504_v1 = vpop.permute.xlu0 %5503 }
0x323a   :  { %v5506_v13 = vmul.f32 %v5504_v1, %v5489_v7  ;;  %v10024_v1 = vld [vmem:[%s8932_s13 + $0x38] sm:$0xff]  ;;  %s8909_s13 = smov 21  }
0x323c   :  { %5508 = vrot.lane.b32.xlu1 %v5506_v13, %s8883_s20 }
0x32ae   :  { %v5509_v49 = vpop.permute.xlu1 %5508 }
0x32af   :  { %7989 = vmatmul.mubr.msk.f32.vlgmr.msra.gmra.mrb[56].mxu0 %vm777_vm2, %v5509_v49 }
0x32b0   :  { %8513 = vmatpush3.bf16.msra.mxu0 %v9623_v61  ;;  %8003 = vmatprep.mubr.msk.f32.mxu0 %vm8875_vm1, %v8876_v28 }
0x32b1   :  { %8514 = vmatprep.subr.bf16.mxu0 %v8871_v14 }
0x32b4   :  { %8516 = vmatpush3.bf16.msra.mxu0 %v9626_v20 }
0x32b5   :  { %8517 = vmatprep.subr.bf16.mxu0 %v8871_v14 }
0x32b8   :  { %8519 = vmatpush3.bf16.msra.mxu0 %v9630_v33 }
0x32b9   :  { %8526 = vmatprep.subr.bf16.mxu0 %v8871_v14 }
0x3382   :  { %v5578_v34 = vpop.f32.mrb[56].mxu0 }
0x3383   :  { %v5579_v22 = vadd.f32 %v9641_v29, %v5578_v34  ;;  %v7990_v60 = vpop.f32.mrb[57].mxu0 }
0x3385   :  { %8840 = vtanh.f32 %v5579_v22 }
0x338f   :  { %v8841_v45 = vpop.eup %8840 }
0x3390   :  { %8004 = vmatmul.mubr.msk.f32.vlgmr.msra.gmra.mrb[58].mxu0 %vm3174_vm9, %v8841_v45 }
0x3391   :  { %8528 = vmatpush3.bf16.msra.mxu0 %v9655_v53  ;;  %8025 = vmatprep.mubr.msk.f32.mxu0 %vm8875_vm1, %v8876_v28 }
0x3392   :  { %8529 = vmatprep.subr.bf16.mxu0 %v8871_v14 }
0x3395   :  { %8531 = vmatpush3.bf16.msra.mxu0 %v9662_v37 }
0x3396   :  { %8532 = vmatprep.subr.bf16.mxu0 %v8871_v14 }
0x3463   :  { %v5652_v36 = vpop.f32.mrb[58].mxu0 }
0x3464   :  { %v5653_v32 = vadd.f32 %v9672_v2, %v5652_v36  ;;  %v8005_v50 = vpop.f32.mrb[59].mxu0 }
0x3466   :  { %8842 = vtanh.f32 %v5653_v32 }
0x3470   :  { %v8843_v55 = vpop.eup %8842 }
0x3471   :  { %8015 = vmatmul.mubr.msk.f32.vlgmr.msra.gmra.mrb[66].mxu1 %vm777_vm2, %v8843_v55  ;;  %8026 = vmatmul.mubr.msk.f32.vlgmr.msra.gmra.mrb[60].mxu0 %vm777_vm2, %v8843_v55 }
0x3472   :  { %8534 = vmatpush3.bf16.msra.mxu0 %v9678_v52  ;;  %8036 = vmatprep.mubr.msk.f32.mxu0 %vm8875_vm1, %v8876_v28 }
0x3473   :  { %8535 = vmatprep.subr.bf16.mxu0 %v8871_v14  ;;  %8540 = vmatpush3.bf16.msra.mxu1 %v9604_v5 }
0x3474   :  { %8541 = vmatprep.subr.bf16.mxu1 %v8871_v14  ;;  %8047 = vmatprep.mubr.msk.f32.mxu1 %vm8875_vm1, %v8876_v28 }
0x3476   :  { %8537 = vmatpush3.bf16.msra.mxu0 %v9683_v19 }
0x3477   :  { %8543 = vmatpush3.bf16.msra.mxu1 %v9607_v6  ;;  %8553 = vmatprep.subr.bf16.mxu0 %v8871_v14 }
0x3478   :  { %8544 = vmatprep.subr.bf16.mxu1 %v8871_v14 }
0x3479   :  { %8037 = vmatmul.mubr.msk.f32.vlgmr.msra.gmra.mrb[60].mxu0 %vm777_vm2, %v5509_v49 }
0x347a   :  { %8555 = vmatpush3.bf16.msra.mxu0 %v9653_v23  ;;  %8073 = vmatprep.mubr.msk.f32.mxu0 %vm8875_vm1, %v8876_v28 }
0x347b   :  { %8556 = vmatprep.subr.bf16.mxu0 %v8871_v14 }
0x347e   :  { %8558 = vmatpush3.bf16.msra.mxu0 %v9658_v35 }
0x347f   :  { %8571 = vmatprep.subr.bf16.mxu0 %v8871_v14 }
0x3544   :  { %v9961_v18 = vpop.f32.mrb[66].mxu1 }
0x3545   :  { %v8016_v24 = vpop.f32.mrb[67].mxu1 }
0x354c   :  { %v5868_v10 = vpop.f32.mrb[60].mxu0 }
0x354d   :  { %v8625_v30 = vadd.f32 %v5868_v10, %v9711_v25  ;;  %v8038_v41 = vpop.f32.mrb[61].mxu0 }
0x354f   :  { %8844 = vtanh.f32 %v8625_v30 }
0x3559   :  { %v8845_v16 = vpop.eup %8844 }
0x355a   :  { %5878 = vrot.lane.b32.xlu0 %v8845_v16, %s8880_s17  ;;  %v5874_v51 = vmul.f32 0.5, %v8845_v16 }
0x355c   :  { %v5875_v21 = vadd.f32 0.5, %v5874_v51 }
0x355e   :  { %v5876_v39 = vmul.f32 %v5875_v21, %v9917_v11 }
0x35cc   :  { %v5879_v43 = vpop.permute.xlu0 %5878 }
0x35cd   :  { %v5881_v62 = vmul.f32 %v5879_v43, %v5875_v21 }
0x35cf   :  { %5883 = vrot.lane.b32.xlu1 %v5881_v62, %s8883_s20 }
0x3641   :  { %v5884_v54 = vpop.permute.xlu1 %5883 }
0x3642   :  { %v9967_v31 = vadd.f32 %v5884_v54, %v5876_v39 }
0x3644   :  { %8846 = vtanh.f32 %v9967_v31 }
0x364e   :  { %v8847_v44 = vpop.eup %8846 }
0x364f   :  { %5889 = vrot.lane.b32.xlu0 %v8847_v44, %s8880_s17 }
0x36c1   :  { %v5890_v63 = vpop.permute.xlu0 %5889 }
0x36c2   :  { %v5892_v57 = vmul.f32 %v5890_v63, %v5875_v21 }
0x36c4   :  { %5894 = vrot.lane.b32.xlu1 %v5892_v57, %s8883_s20 }
0x3736   :  { %v5895_v40 = vpop.permute.xlu1 %5894 }
0x3737   :  { %8048 = vmatmul.mubr.msk.f32.vlgmr.msra.gmra.mrb[68].mxu1 %vm777_vm2, %v5895_v40 }
0x3738   :  { %8546 = vmatpush3.bf16.msra.mxu1 %v9623_v61  ;;  %8062 = vmatprep.mubr.msk.f32.mxu1 %vm8875_vm1, %v8876_v28 }
0x3739   :  { %8547 = vmatprep.subr.bf16.mxu1 %v8871_v14 }
0x373c   :  { %8549 = vmatpush3.bf16.msra.mxu1 %v9626_v20 }
0x373d   :  { %8550 = vmatprep.subr.bf16.mxu1 %v8871_v14 }
0x3740   :  { %8552 = vmatpush3.bf16.msra.mxu1 %v9630_v33 }
0x3741   :  { %8559 = vmatprep.subr.bf16.mxu1 %v8871_v14 }
0x380a   :  { %v5964_v17 = vpop.f32.mrb[68].mxu1 }
0x380b   :  { %v5965_v48 = vadd.f32 %v9641_v29, %v5964_v17  ;;  %v8049_v58 = vpop.f32.mrb[69].mxu1 }
0x380d   :  { %8848 = vtanh.f32 %v5965_v48 }
0x3817   :  { %v8849_v26 = vpop.eup %8848 }
0x3818   :  { %8063 = vmatmul.mubr.msk.f32.vlgmr.msra.gmra.mrb[70].mxu1 %vm3174_vm9, %v8849_v26 }
0x3819   :  { %8561 = vmatpush3.bf16.msra.mxu1 %v9655_v53  ;;  %8084 = vmatprep.mubr.msk.f32.mxu1 %vm8875_vm1, %v8876_v28 }
0x381a   :  { %8562 = vmatprep.subr.bf16.mxu1 %v8871_v14 }
0x381d   :  { %8564 = vmatpush3.bf16.msra.mxu1 %v9662_v37 }
0x381e   :  { %8565 = vmatprep.subr.bf16.mxu1 %v8871_v14 }
0x38eb   :  { %v6038_v0 = vpop.f32.mrb[70].mxu1 }
0x38ec   :  { %v6039_v15 = vadd.f32 %v9672_v2, %v6038_v0  ;;  %v8064_v29 = vpop.f32.mrb[71].mxu1 }
0x38ee   :  { %8850 = vtanh.f32 %v6039_v15  ;;  %v6957_v15 = vld [vmem:[%s6835_s22] ss:$0 sm:$0xff] }
0x38f8   :  { %v8851_v46 = vpop.eup %8850 }
0x38f9   :  { %8074 = vmatmul.mubr.msk.f32.vlgmr.msra.gmra.mrb[62].mxu0 %vm777_vm2, %v8851_v46  ;;  %8085 = vmatmul.mubr.msk.f32.vlgmr.msra.gmra.mrb[72].mxu1 %vm777_vm2, %v8851_v46 }
0x38fa   :  { %8567 = vmatpush3.bf16.msra.mxu1 %v9678_v52  ;;  %8095 = vmatprep.mubr.msk.f32.mxu1 %vm8875_vm1, %v8876_v28 }
0x38fb   :  { %8568 = vmatprep.subr.bf16.mxu1 %v8871_v14  ;;  %8573 = vmatpush3.bf16.msra.mxu0 %v9604_v5 }
0x38fc   :  { %8574 = vmatprep.subr.bf16.mxu0 %v8871_v14  ;;  %8106 = vmatprep.mubr.msk.f32.mxu0 %vm8875_vm1, %v8876_v28 }
0x38fe   :  { %8570 = vmatpush3.bf16.msra.mxu1 %v9683_v19 }
0x38ff   :  { %8576 = vmatpush3.bf16.msra.mxu0 %v9607_v6  ;;  %8586 = vmatprep.subr.bf16.mxu1 %v8871_v14 }
0x3900   :  { %8577 = vmatprep.subr.bf16.mxu0 %v8871_v14 }
0x3901   :  { %8096 = vmatmul.mubr.msk.f32.vlgmr.msra.gmra.mrb[72].mxu1 %vm777_vm2, %v5895_v40 }
0x3902   :  { %8588 = vmatpush3.bf16.msra.mxu1 %v9653_v23  ;;  %8132 = vmatprep.mubr.msk.f32.mxu1 %vm8875_vm1, %v8876_v28 }
0x3903   :  { %8589 = vmatprep.subr.bf16.mxu1 %v8871_v14 }
0x3906   :  { %8591 = vmatpush3.bf16.msra.mxu1 %v9658_v35 }
0x3907   :  { %8604 = vmatprep.subr.bf16.mxu1 %v8871_v14 }
0x39cc   :  { %v6112_v5 = vpop.f32.mrb[62].mxu0 }
0x39cd   :  { %v8075_v53 = vpop.f32.mrb[63].mxu0 }
0x39d4   :  { %v6254_v6 = vpop.f32.mrb[72].mxu1 }
0x39d5   :  { %v8626_v37 = vadd.f32 %v6254_v6, %v9711_v25  ;;  %v8097_v52 = vpop.f32.mrb[73].mxu1  ;;  %v10018_v25 = vld [vmem:[%s6851_s9] ss:$0 sm:$0xff]  ;;  %s6839_s9 = sld [smem:[%s10112_s0 + %s8916_s6]]  }
0x39d6   :  { %v4183_v11 = vadd.f32 %v10018_v25, %v9761_v47  ;;  %v4955_v49 = vadd.f32 %v10018_v25, %v9861_v4  ;;  %v5727_v22 = vadd.f32 %v10018_v25, %v9961_v18  ;;  %v4569_v45 = vadd.f32 %v10018_v25, %v9811_v56 }
0x39d7   :  { %8852 = vtanh.f32 %v8626_v37  ;;  %v5341_v32 = vadd.f32 %v10018_v25, %v9911_v42  ;;  %v6113_v55 = vadd.f32 %v10018_v25, %v6112_v5 }
0x39d8   :  { %v4186_v13 = vadd.f32 %v10024_v1, %v4183_v11  ;;  %v4958_v34 = vadd.f32 %v10024_v1, %v4955_v49  ;;  %v5730_v47 = vadd.f32 %v10024_v1, %v5727_v22  ;;  %v4572_v4 = vadd.f32 %v10024_v1, %v4569_v45 }
0x39d9   :  { %v5344_v50 = vadd.f32 %v10024_v1, %v5341_v32  ;;  %v6116_v18 = vadd.f32 %v10024_v1, %v6113_v55 }
0x39e1   :  { %v8853_v19 = vpop.eup %8852 }
0x39e2   :  { %6264 = vrot.lane.b32.xlu0 %v8853_v19, %s8880_s17  ;;  %v6260_v23 = vmul.f32 0.5, %v8853_v19  ;;  %v6717_v19 = vld [vmem:[%s6838_s26] sm:$0xff] }
0x39e4   :  { %v6261_v7 = vadd.f32 0.5, %v6260_v23  ;;  %v6718_v23 = vld [vmem:[%s6838_s26 + $0x8] sm:$0xff] }
0x39e6   :  { %v6262_v35 = vmul.f32 %v6261_v7, %v9967_v31 }
0x3a54   :  { %v6265_v3 = vpop.permute.xlu0 %6264 }
0x3a55   :  { %v6267_v38 = vmul.f32 %v6265_v3, %v6261_v7  ;;  %v8614_v3 = vpack.c.bf16 %v6718_v23, %v6717_v19 }
0x3a57   :  { %6269 = vrot.lane.b32.xlu1 %v6267_v38, %s8883_s20  ;;  %v6720_v38 = vld [vmem:[%s6838_s26 + $0x18] sm:$0xff] }
0x3ac9   :  { %v6270_v27 = vpop.permute.xlu1 %6269 }
0x3aca   :  { %v6272_v9 = vadd.f32 %v6270_v27, %v6262_v35 }
0x3acc   :  { %8854 = vtanh.f32 %v6272_v9 }
0x3ad6   :  { %v8855_v12 = vpop.eup %8854 }
0x3ad7   :  { %6275 = vrot.lane.b32.xlu0 %v8855_v12, %s8880_s17  ;;  %v6959_v12 = vld [vmem:[%s6837_s1] ss:$0 sm:$0xff] }
0x3adb   :  { %6504 = vrot.lane.b32.xlu0 %v4186_v13, %s8882_s19  ;;  %s6834_s19 = sld [smem:[%s10112_s0 + %s8909_s13]]  }
0x3adf   :  { %6512 = vrot.lane.b32.xlu0 %v4958_v34, %s8908_s11  ;;  %s8917_s11 = smov 41  }
0x3ae1   :  { %v6541_v30 = vld [vmem:[%s6834_s19] sm:$0xff]  ;;  %v6542_v41 = vld [vmem:[%s6834_s19 + $0x8] sm:$0xff]  ;;  %v6544_v51 = vld [vmem:[%s6834_s19 + $0x18] sm:$0xff] }
0x3ae2   :  { %v8593_v16 = vpack.c.bf16 %v6542_v41, %v6541_v30  ;;  %v6545_v43 = vld [vmem:[%s6834_s19 + $0x20] sm:$0xff]  ;;  %v6546_v62 = vld [vmem:[%s6834_s19 + $0x28] sm:$0xff]  ;;  %v6547_v54 = vld [vmem:[%s6834_s19 + $0x30] sm:$0xff] }
0x3ae3   :  { %6520 = vrot.lane.b32.xlu0 %v5730_v47, %s8884_s21  ;;  %v8599_v39 = vpack.c.bf16 %v6546_v62, %v6545_v43  ;;  %v6548_v31 = vld [vmem:[%s6834_s19 + $0x38] sm:$0xff]  ;;  %v3797_v47 = vadd.f32 %v10018_v25, %v9708_v8 }
0x3ae4   :  { %v8602_v44 = vpack.c.bf16 %v6548_v31, %v6547_v54 }
0x3ae5   :  { %v3800_v45 = vadd.f32 %v10024_v1, %v3797_v47 }
0x3b49   :  { %v6276_v60 = vpop.permute.xlu0 %6275 }
0x3b4a   :  { %v6278_v36 = vmul.f32 %v6276_v60, %v6261_v7  ;;  %v6719_v7 = vld [vmem:[%s6838_s26 + $0x10] sm:$0xff] }
0x3b4b   :  { %v8617_v35 = vpack.c.bf16 %v6720_v38, %v6719_v7 }
0x3b4c   :  { %6280 = vrot.lane.b32.xlu1 %v6278_v36, %s8883_s20 }
0x3b4d   :  { %v6505_v22 = vpop.permute.xlu0 %6504 }
0x3b50   :  { %6508 = vrot.lane.b32.xlu1 %v4572_v4, %s8883_s20  ;;  %s8910_s20 = smov 23   ;;  %v6531_v4 = vsel %vm200_vm0, %v3800_v45, %v6505_v22 }
0x3b51   :  { %s6836_s12 = sld [smem:[%s10112_s0 + %s8910_s20]]   ;;  %v6513_v36 = vpop.permute.xlu0 %6512 }
0x3b54   :  { %6516 = vrot.lane.b32.xlu1 %v5344_v50, %s8880_s17 }
0x3b57   :  { %v6630_v17 = vld [vmem:[%s6836_s12] sm:$0xff]  ;;  %v6631_v48 = vld [vmem:[%s6836_s12 + $0x8] sm:$0xff]  ;;  %v6632_v26 = vld [vmem:[%s6836_s12 + $0x10] sm:$0xff] }
0x3b58   :  { %6524 = vrot.lane.b32.xlu1 %v6116_v18, %s8881_s18  ;;  %v8605_v58 = vpack.c.bf16 %v6631_v48, %v6630_v17  ;;  %v6634_v46 = vld [vmem:[%s6836_s12 + $0x20] sm:$0xff]  ;;  %v6635_v5 = vld [vmem:[%s6836_s12 + $0x28] sm:$0xff]  ;;  %v6521_v18 = vpop.permute.xlu0 %6520  ;;  %s6854_s18 = sld [smem:[%s10112_s0 + %s8917_s11]]  }
0x3b59   :  { %v8611_v37 = vpack.c.bf16 %v6635_v5, %v6634_v46 }
0x3bbe   :  { %v6281_v56 = vpop.permute.xlu1 %6280 }
0x3bbf   :  { %8107 = vmatmul.mubr.msk.f32.vlgmr.msra.gmra.mrb[64].mxu0 %vm777_vm2, %v6281_v56 }
0x3bc0   :  { %8579 = vmatpush3.bf16.msra.mxu0 %v9623_v61  ;;  %8121 = vmatprep.mubr.msk.f32.mxu0 %vm8875_vm1, %v8876_v28  ;;  %v8866_v61 = vld [vmem:[%s9638_s10] ss:$0 sm:$0xff] }
0x3bc1   :  { %8580 = vmatprep.subr.bf16.mxu0 %v8871_v14 }
0x3bc2   :  { %v6509_v60 = vpop.permute.xlu1 %6508 }
0x3bc3   :  { %v6532_v50 = vsel %vm777_vm2, %v6531_v4, %v6509_v60 }
0x3bc4   :  { %8582 = vmatpush3.bf16.msra.mxu0 %v9626_v20  ;;  %v6543_v20 = vld [vmem:[%s6834_s19 + $0x10] sm:$0xff]  ;;  %v6533_v55 = vsel %vm3174_vm9, %v6532_v50, %v6513_v36 }
0x3bc5   :  { %8583 = vmatprep.subr.bf16.mxu0 %v8871_v14 }
0x3bc6   :  { %v6517_v32 = vpop.permute.xlu1 %6516 }
0x3bc7   :  { %v6534_v56 = vsel %vm3065_vm7, %v6533_v55, %v6517_v32 }
0x3bc8   :  { %8585 = vmatpush3.bf16.msra.mxu0 %v9630_v33  ;;  %v8596_v33 = vpack.c.bf16 %v6544_v51, %v6543_v20 }
0x3bc9   :  { %8592 = vmatprep.subr.bf16.mxu0 %v8871_v14 }
0x3bca   :  { %v6525_v8 = vpop.permute.xlu1 %6524 }
0x3c92   :  { %v6350_v42 = vpop.f32.mrb[64].mxu0 }
0x3c93   :  { %v6351_v24 = vadd.f32 %v8866_v61, %v6350_v42  ;;  %v8108_v10 = vpop.f32.mrb[65].mxu0 }
0x3c95   :  { %8856 = vtanh.f32 %v6351_v24  ;;  %v6961_v24 = vld [vmem:[%s6839_s9] ss:$0 sm:$0xff] }
0x3c9f   :  { %v8857_v21 = vpop.eup %8856 }
0x3ca0   :  { %8122 = vmatmul.mubr.msk.f32.vlgmr.msra.gmra.mrb[66].mxu0 %vm3174_vm9, %v8857_v21 }
0x3ca1   :  { %8594 = vmatpush3.bf16.msra.mxu0 %v8593_v16  ;;  %8151 = vmatprep.mubr.msk.f32.mxu0 %vm8875_vm1, %v8876_v28 }
0x3ca2   :  { %8595 = vmatprep.subr.bf16.mxu0 %v8871_v14 }
0x3ca5   :  { %8597 = vmatpush3.bf16.msra.mxu0 %v8596_v33 }
0x3ca6   :  { %8598 = vmatprep.subr.bf16.mxu0 %v8871_v14 }
0x3ca9   :  { %8600 = vmatpush3.bf16.msra.mxu0 %v8599_v39 }
0x3caa   :  { %8601 = vmatprep.subr.bf16.mxu0 %v8871_v14 }
0x3cad   :  { %8603 = vmatpush3.bf16.msra.mxu0 %v8602_v44 }
0x3cb0   :  { %8152 = vmatmul.mubr.msk.f32.vlgmr.msra.gmra.mrb[68].mxu0 %vm3065_vm7, %v9579_v59  ;;  %v6633_v59 = vld [vmem:[%s6836_s12 + $0x18] sm:$0xff] }
0x3cb1   :  { %v8608_v29 = vpack.c.bf16 %v6633_v59, %v6632_v26 }
0x3d73   :  { %v6424_v63 = vpop.f32.mrb[66].mxu0 }
0x3d74   :  { %v6425_v57 = vadd.f32 %v9672_v2, %v6424_v63  ;;  %v8123_v40 = vpop.f32.mrb[67].mxu0 }
0x3d76   :  { %8858 = vtanh.f32 %v6425_v57 }
0x3d80   :  { %v8859_v0 = vpop.eup %8858 }
0x3d81   :  { %8133 = vmatmul.mubr.msk.f32.vlgmr.msra.gmra.mrb[74].mxu1 %vm777_vm2, %v8859_v0 }
0x3d82   :  { %8606 = vmatpush3.bf16.msra.mxu1 %v8605_v58  ;;  %8166 = vmatprep.mubr.msk.f32.mxu1 %vm8875_vm1, %v8876_v28 }
0x3d83   :  { %v6625_v2 = vpop.f32.mrb[68].mxu0  ;;  %8607 = vmatprep.subr.bf16.mxu1 %v8871_v14 }
0x3d84   :  { %v6626_v53 = vadd.f32 %v6957_v15, %v6625_v2  ;;  %v8153_v6 = vpop.f32.mrb[69].mxu0 }
0x3d86   :  { %8860 = vtanh.f32 %v6626_v53  ;;  %8609 = vmatpush3.bf16.msra.mxu1 %v8608_v29 }
0x3d87   :  { %8610 = vmatprep.subr.bf16.mxu1 %v8871_v14 }
0x3d8a   :  { %8612 = vmatpush3.bf16.msra.mxu1 %v8611_v37 }
0x3d8b   :  { %8613 = vmatprep.subr.bf16.mxu1 %v8871_v14 }
0x3d90   :  { %v8861_v52 = vpop.eup %8860 }
0x3d91   :  { %8167 = vmatmul.mubr.msk.f32.vlgmr.msra.gmra.mrb[76].mxu1 %vm3174_vm9, %v8861_v52 }
0x3d92   :  { %8177 = vmatprep.mubr.msk.f32.mxu1 %vm8875_vm1, %v8876_v28  ;;  %8615 = vmatpush3.bf16.msra.mxu1 %v8614_v3 }
0x3d93   :  { %8616 = vmatprep.subr.bf16.mxu1 %v8871_v14 }
0x3d96   :  { %8618 = vmatpush3.bf16.msra.mxu1 %v8617_v35 }
0x3e54   :  { %v6498_v27 = vpop.f32.mrb[74].mxu1 }
0x3e55   :  { %v6499_v9 = vadd.f32 %v10018_v25, %v6498_v27  ;;  %v8134_v11 = vpop.f32.mrb[75].mxu1  ;;  %v6536_v25 = vsel %vm6535_vm11, %v6534_v56, %v6521_v18 }
0x3e57   :  { %v6502_v28 = vadd.f32 %v10024_v1, %v6499_v9  ;;  %v6537_v1 = vsel %vm3086_vm8, %v6536_v25, %v6525_v8 }
0x3e59   :  { %6528 = vrot.lane.b32.xlu0 %v6502_v28, %s8913_s27 }
0x3e64   :  { %v6712_v13 = vpop.f32.mrb[76].mxu1 }
0x3e65   :  { %v6713_v49 = vadd.f32 %v6959_v12, %v6712_v13  ;;  %v8168_v34 = vpop.f32.mrb[77].mxu1 }
0x3e67   :  { %8862 = vtanh.f32 %v6713_v49 }
0x3e71   :  { %v8863_v14 = vpop.eup %8862 }
0x3e72   :  { %8178 = vmatmul.mubr.msk.f32.vlgmr.msra.gmra.mrb[78].mxu1 %vm777_vm2, %v8863_v14 }
0x3ecb   :  { %v6529_v42 = vpop.permute.xlu0 %6528 }
0x3ecc   :  { %v6539_v61 = vsel %vm6538_vm12, %v6537_v1, %v6529_v42 }
0x3ecd   :  { %6540 = vst [vmem:[%s6852_s5] sm:$0xff] %v6539_v61 }
0x3f45   :  { %v6797_v10 = vpop.f32.mrb[78].mxu1 }
0x3f46   :  { %v6798_v30 = vadd.f32 %v6961_v24, %v6797_v10  ;;  %v8179_v41 = vpop.f32.mrb[79].mxu1 }
0x3f48   :  { %6801 = vst.msk [vmem:[%s6854_s18] sm:$0xff] %vm200_vm0, %v6798_v30 }

</bundles_post_ra>
